<compile_context>
chip_gen: v7x
topology: tpu7x:2x2x1
jax: 0.10.0
libtpu: 0.0.40
codegen_flags: <defaults>
</compile_context>

<pallas_src>
import jax
import jax.numpy as jnp
from jax import lax
from jax.experimental import pallas as pl
from jax.experimental.pallas import tpu as pltpu

# ----------------------------- module config -------------------------------
EMBED_DIM = 64
HIDDEN_DIM = 128
NUM_LAYERS = 2
ENGLISH_SENTENCES = ['hello', 'how are you', 'good morning', 'thank you', 'good night']


def build_vocab(sentences):
    vocab = {'<PAD>': 0, '<SOS>': 1, '<EOS>': 2, '<UNK>': 3}
    for sentence in sentences:
        for word in sentence.split():
            if word not in vocab:
                vocab[word] = len(vocab)
    return vocab


ENGLISH_VOCAB = build_vocab(ENGLISH_SENTENCES)
INPUT_DIM = len(ENGLISH_VOCAB)  # = 12


# ------------------------------- kernel ------------------------------------
def _encoder_lstm2_kernel(pregates_ref,       # VMEM (T, Bq, 4H) f32 : layer-0 input gates (+ biases)
                          whh0_ref,           # VMEM (H,  4H)    f32 : layer-0 recurrent weights
                          w1_ref,             # VMEM (2H, 4H)    f32 : layer-1 [W_ih1 ; W_hh1]
                          b1_ref,             # VMEM (1,  4H)    f32 : layer-1 bias (b_ih1 + b_hh1)
                          hidden_ref,         # VMEM (2, Bq, H)  f32 : h_n output
                          cell_ref):          # VMEM (2, Bq, H)  f32 : c_n output
    T, Bq, G = pregates_ref.shape
    H = hidden_ref.shape[2]

    # Hoisted once (loop-invariant): weights, bias row, activation column constants.
    whh0 = whh0_ref[...]                                   # (H, 4H)
    w1 = w1_ref[...]                                       # (2H, 4H)
    b1 = b1_ref[...]                                       # (1, 4H)  (broadcast in the add)

    # Column constants so i/f/o use sigmoid(x) = 0.5*tanh(0.5*x)+0.5 and g uses
    # tanh(x), all with a SINGLE tanh over the whole (Bq, 4H) gate slab.
    col = lax.broadcasted_iota(jnp.int32, (1, G), 1)
    is_g = jnp.logical_and(col >= 2 * H, col < 3 * H)
    pre_scale = jnp.where(is_g, 1.0, 0.5).astype(jnp.float32)
    post_shift = jnp.where(is_g, 0.0, 0.5).astype(jnp.float32)

    def activate(gates):
        act = jnp.tanh(gates * pre_scale) * pre_scale + post_shift
        return (act[:, 0:H], act[:, H:2 * H], act[:, 2 * H:3 * H], act[:, 3 * H:4 * H])

    def lstm_update(gates, c):
        i, f, g, o = activate(gates)
        c_new = f * c + i * g
        h_new = o * jnp.tanh(c_new)
        return h_new, c_new

    # ---- prologue: layer-0 step at t = 0 (h0 = c0 = 0 => gates are exactly
    # the precomputed input gates; the recurrent matmul is skipped entirely).
    i0, f0, g0, o0 = activate(pregates_ref[0])
    c0 = i0 * g0
    h0 = o0 * jnp.tanh(c0)
    h1 = jnp.zeros((Bq, H), jnp.float32)
    c1 = jnp.zeros((Bq, H), jnp.float32)

    # ---- wavefront: iteration t computes layer0 @ t and layer1 @ t-1.
    # Layer-1 consumes the carried h0 (layer-0 output from the previous step),
    # so the two matmuls inside one iteration are independent.
    def wavefront(t, carry):
        h0, c0, h1, c1 = carry
        # layer 0 @ t : K = H = 128, input projection already folded into pregates.
        gates0 = pregates_ref[t] + jnp.dot(h0, whh0,
                                           preferred_element_type=jnp.float32)
        nh0, nc0 = lstm_update(gates0, c0)
        # layer 1 @ t-1 : single fused matmul, K = 2H = 256, no zero rows.
        gates1 = jnp.dot(jnp.concatenate([h0, h1], axis=1), w1,
                         preferred_element_type=jnp.float32) + b1
        nh1, nc1 = lstm_update(gates1, c1)
        return nh0, nc0, nh1, nc1

    h0, c0, h1, c1 = lax.fori_loop(1, T, wavefront, (h0, c0, h1, c1), unroll=True)

    # ---- epilogue: final layer-1 step (consumes layer-0 output at t = T-1).
    gates1 = jnp.dot(jnp.concatenate([h0, h1], axis=1), w1,
                     preferred_element_type=jnp.float32) + b1
    h1, c1 = lstm_update(gates1, c1)

    hidden_ref[0] = h0
    hidden_ref[1] = h1
    cell_ref[0] = c0
    cell_ref[1] = c1


# ------------------------------ wrapper -------------------------------------
def init_encoder_params(key, input_dim, embed_dim, hidden_dim):
    """Deterministic synthetic params mirroring nn.Embedding + 2-layer nn.LSTM."""
    ks = jax.random.split(key, 9)
    s = 1.0 / jnp.sqrt(hidden_dim)
    p = {
        'embedding': jax.random.normal(ks[0], (input_dim, embed_dim), jnp.float32),
        # layer 0
        'w_ih0': jax.random.uniform(ks[1], (4 * hidden_dim, embed_dim), jnp.float32, -s, s),
        'w_hh0': jax.random.uniform(ks[2], (4 * hidden_dim, hidden_dim), jnp.float32, -s, s),
        'b_ih0': jax.random.uniform(ks[3], (4 * hidden_dim,), jnp.float32, -s, s),
        'b_hh0': jax.random.uniform(ks[4], (4 * hidden_dim,), jnp.float32, -s, s),
        # layer 1
        'w_ih1': jax.random.uniform(ks[5], (4 * hidden_dim, hidden_dim), jnp.float32, -s, s),
        'w_hh1': jax.random.uniform(ks[6], (4 * hidden_dim, hidden_dim), jnp.float32, -s, s),
        'b_ih1': jax.random.uniform(ks[7], (4 * hidden_dim,), jnp.float32, -s, s),
        'b_hh1': jax.random.uniform(ks[8], (4 * hidden_dim,), jnp.float32, -s, s),
    }
    return p


def encoder_forward(tokens, params, hidden_dim=HIDDEN_DIM):
    """tokens: int32 (B, T). Returns (hidden, cell), each (NUM_LAYERS, B, hidden_dim)."""
    B, T = tokens.shape
    H = hidden_dim
    BQ = 8                                   # one sublane group per grid step
    Bp = ((B + BQ - 1) // BQ) * BQ

    # Padded rows use token 0 (<PAD>): a valid table row; their garbage state is
    # sliced off below.
    tokens_p = jnp.zeros((Bp, T), jnp.int32).at[:B, :].set(tokens)

    # ---- hoisted off the recurrence critical path: embedding gather + layer-0
    # input projection as ONE batched matmul over all Bp*T rows, biases folded in.
    emb = jnp.take(params['embedding'], tokens_p, axis=0)                 # (Bp, T, E)
    pregates0 = jnp.einsum('bte,ge->tbg', emb, params['w_ih0'],
                           preferred_element_type=jnp.float32)
    pregates0 = pregates0 + (params['b_ih0'] + params['b_hh0'])[None, None, :]  # (T, Bp, 4H)

    whh0 = params['w_hh0'].T                                              # (H, 4H)  f32
    w1 = jnp.concatenate([params['w_ih1'].T, params['w_hh1'].T], axis=0)  # (2H, 4H) f32
    b1 = (params['b_ih1'] + params['b_hh1'])[None, :]                     # (1, 4H)  f32

    # Advisory cost estimate (per-step recurrent matmuls only; input proj is XLA-side).
    flops = int(Bp) * T * 2 * (H + 2 * H) * (4 * H)
    transcendentals = int(Bp) * T * NUM_LAYERS * 5 * H
    bytes_accessed = int(pregates0.size * 4 + whh0.size * 4 + w1.size * 4
                         + b1.size * 4 + 2 * NUM_LAYERS * Bp * H * 4)

    grid = (Bp // BQ,)
    hidden, cell = pl.pallas_call(
        _encoder_lstm2_kernel,
        grid=grid,
        out_shape=(jax.ShapeDtypeStruct((NUM_LAYERS, Bp, H), jnp.float32),
                   jax.ShapeDtypeStruct((NUM_LAYERS, Bp, H), jnp.float32)),
        in_specs=[
            pl.BlockSpec((T, BQ, 4 * H), lambda b: (0, b, 0)),   # per-tile input gates
            pl.BlockSpec((H, 4 * H), lambda b: (0, 0)),          # W_hh0 (shared)
            pl.BlockSpec((2 * H, 4 * H), lambda b: (0, 0)),      # [W_ih1 ; W_hh1] (shared)
            pl.BlockSpec((1, 4 * H), lambda b: (0, 0)),          # b1 (shared)
        ],
        out_specs=(pl.BlockSpec((NUM_LAYERS, BQ, H), lambda b: (0, b, 0)),
                   pl.BlockSpec((NUM_LAYERS, BQ, H), lambda b: (0, b, 0))),
        compiler_params=pltpu.CompilerParams(
            dimension_semantics=("parallel",)),                  # batch tiles shard across TCs (v7x)
        cost_estimate=pl.CostEstimate(flops=flops,
                                      transcendentals=transcendentals,
                                      bytes_accessed=bytes_accessed),
    )(pregates0, whh0, w1, b1)

    # Slice away batch padding.
    return hidden[:, :B, :], cell[:, :B, :]


# ------------------------- pure-JAX reference -------------------------------
def _reference_forward(tokens, params, hidden_dim=HIDDEN_DIM):
    emb = jnp.take(params['embedding'], tokens, axis=0)    # (B, T, E)
    B = tokens.shape[0]
    H = hidden_dim

    def run_layer(x_seq, w_ih, w_hh, b_ih, b_hh):
        def step(carry, x_t):
            h, c = carry
            gates = x_t @ w_ih.T + b_ih + h @ w_hh.T + b_hh
            i = jax.nn.sigmoid(gates[:, 0:H])
            f = jax.nn.sigmoid(gates[:, H:2 * H])
            g = jnp.tanh(gates[:, 2 * H:3 * H])
            o = jax.nn.sigmoid(gates[:, 3 * H:4 * H])
            c = f * c + i * g
            h = o * jnp.tanh(c)
            return (h, c), h

        init = (jnp.zeros((B, H), jnp.float32), jnp.zeros((B, H), jnp.float32))
        (h, c), outs = lax.scan(step, init, jnp.transpose(x_seq, (1, 0, 2)))
        return jnp.transpose(outs, (1, 0, 2)), h, c

    out0, h0, c0 = run_layer(emb, params['w_ih0'], params['w_hh0'],
                             params['b_ih0'], params['b_hh0'])
    _, h1, c1 = run_layer(out0, params['w_ih1'], params['w_hh1'],
                          params['b_ih1'], params['b_hh1'])
    return jnp.stack([h0, h1], axis=0), jnp.stack([c0, c1], axis=0)


# --------------------------------- main --------------------------------------
if __name__ == "__main__":
    key = jax.random.PRNGKey(0)
    pkey, xkey = jax.random.split(key)

    params = init_encoder_params(pkey, INPUT_DIM, EMBED_DIM, HIDDEN_DIM)

    # Small deterministic token batch: batch=2, seq_len=6, ids in [0, INPUT_DIM)
    B, T = 2, 6
    tokens = jax.random.randint(xkey, (B, T), 0, INPUT_DIM, dtype=jnp.int32)

    hidden, cell = encoder_forward(tokens, params)
    jax.block_until_ready((hidden, cell))

    ref_hidden, ref_cell = _reference_forward(tokens, params)
    assert hidden.shape == (NUM_LAYERS, B, HIDDEN_DIM)
    assert cell.shape == (NUM_LAYERS, B, HIDDEN_DIM)
    # All-f32 kernel; tolerance covers default-precision matmul differences and the
    # tanh-form sigmoid.
    assert jnp.allclose(hidden, ref_hidden, atol=2e-2, rtol=2e-2)
    assert jnp.allclose(cell, ref_cell, atol=2e-2, rtol=2e-2)

    print("KERNEL_OK")
</pallas_src>

<mosaic_0001>
module attributes {stable_mosaic.version = 11 : i64} {
  func.func @_encoder_lstm2_kernel(%arg0: i32, %arg1: memref<6x8x512xf32, #tpu.memory_space<vmem>>, %arg2: memref<128x512xf32, #tpu.memory_space<vmem>>, %arg3: memref<256x512xf32, #tpu.memory_space<vmem>>, %arg4: memref<1x512xf32, #tpu.memory_space<vmem>>, %arg5: memref<2x8x128xf32, #tpu.memory_space<vmem>>, %arg6: memref<2x8x128xf32, #tpu.memory_space<vmem>>) attributes {dimension_semantics = [#tpu.dimension_semantics<parallel>], iteration_bounds = array<i64: 1>, scalar_prefetch = 0 : i64, scratch_operands = 0 : i64, tpu.core_type = #tpu.core_type<tc>, window_params = [{transform_indices = @transform_0, window_bounds = array<i64: 6, 8, 512>}, {pipeline_mode = #tpu.pipeline_mode<synchronous>, transform_indices = @transform_1, window_bounds = array<i64: 128, 512>}, {pipeline_mode = #tpu.pipeline_mode<synchronous>, transform_indices = @transform_2, window_bounds = array<i64: 256, 512>}, {pipeline_mode = #tpu.pipeline_mode<synchronous>, transform_indices = @transform_3, window_bounds = array<i64: 1, 512>}, {transform_indices = @transform_4, window_bounds = array<i64: 2, 8, 128>}, {transform_indices = @transform_5, window_bounds = array<i64: 2, 8, 128>}]} {
    %c0 = arith.constant 0 : index
    %c0_0 = arith.constant 0 : index
    %0 = vector.load %arg2[%c0, %c0_0] : memref<128x512xf32, #tpu.memory_space<vmem>>, vector<128x512xf32>
    %c0_1 = arith.constant 0 : index
    %c0_2 = arith.constant 0 : index
    %1 = vector.load %arg3[%c0_1, %c0_2] : memref<256x512xf32, #tpu.memory_space<vmem>>, vector<256x512xf32>
    %c0_3 = arith.constant 0 : index
    %c0_4 = arith.constant 0 : index
    %2 = vector.load %arg4[%c0_3, %c0_4] : memref<1x512xf32, #tpu.memory_space<vmem>>, vector<1x512xf32>
    %3 = tpu.iota {dimensions = array<i32: 1>} : vector<1x512xi32>
    %c256_i32 = arith.constant 256 : i32
    %4 = vector.broadcast %c256_i32 : i32 to vector<1x512xi32>
    %5 = arith.cmpi sge, %3, %4 : vector<1x512xi32>
    %c384_i32 = arith.constant 384 : i32
    %6 = vector.broadcast %c384_i32 : i32 to vector<1x512xi32>
    %7 = arith.cmpi slt, %3, %6 : vector<1x512xi32>
    %8 = arith.andi %5, %7 : vector<1x512xi1>
    %cst = arith.constant 1.000000e+00 : f32
    %cst_5 = arith.constant 5.000000e-01 : f32
    %9 = vector.broadcast %cst : f32 to vector<1x512xf32>
    %10 = vector.broadcast %cst_5 : f32 to vector<1x512xf32>
    %11 = arith.select %8, %9, %10 : vector<1x512xi1>, vector<1x512xf32>
    %cst_6 = arith.constant 0.000000e+00 : f32
    %cst_7 = arith.constant 5.000000e-01 : f32
    %12 = vector.broadcast %cst_6 : f32 to vector<1x512xf32>
    %13 = vector.broadcast %cst_7 : f32 to vector<1x512xf32>
    %14 = arith.select %8, %12, %13 : vector<1x512xi1>, vector<1x512xf32>
    %c0_8 = arith.constant 0 : index
    %c0_9 = arith.constant 0 : index
    %c0_10 = arith.constant 0 : index
    %15 = vector.load %arg1[%c0_8, %c0_9, %c0_10] : memref<6x8x512xf32, #tpu.memory_space<vmem>>, vector<1x8x512xf32>
    %16 = vector.shape_cast %15 : vector<1x8x512xf32> to vector<8x512xf32>
    %17 = vector.broadcast %11 : vector<1x512xf32> to vector<8x512xf32>
    %18 = arith.mulf %16, %17 : vector<8x512xf32>
    %19 = math.tanh %18 : vector<8x512xf32>
    %20 = vector.broadcast %11 : vector<1x512xf32> to vector<8x512xf32>
    %21 = arith.mulf %19, %20 : vector<8x512xf32>
    %22 = vector.broadcast %14 : vector<1x512xf32> to vector<8x512xf32>
    %23 = arith.addf %21, %22 : vector<8x512xf32>
    %24 = vector.extract_strided_slice %23 {offsets = [0, 0], sizes = [8, 128], strides = [1, 1]} : vector<8x512xf32> to vector<8x128xf32>
    %25 = vector.extract_strided_slice %23 {offsets = [0, 256], sizes = [8, 128], strides = [1, 1]} : vector<8x512xf32> to vector<8x128xf32>
    %26 = vector.extract_strided_slice %23 {offsets = [0, 384], sizes = [8, 128], strides = [1, 1]} : vector<8x512xf32> to vector<8x128xf32>
    %27 = arith.mulf %24, %25 : vector<8x128xf32>
    %28 = math.tanh %27 : vector<8x128xf32>
    %29 = arith.mulf %26, %28 : vector<8x128xf32>
    %cst_11 = arith.constant 0.000000e+00 : f32
    %30 = vector.broadcast %cst_11 : f32 to vector<8x128xf32>
    %cst_12 = arith.constant 0.000000e+00 : f32
    %31 = vector.broadcast %cst_12 : f32 to vector<8x128xf32>
    %c1_i32 = arith.constant 1 : i32
    %32 = arith.index_cast %c1_i32 : i32 to index
    %c0_13 = arith.constant 0 : index
    %c0_14 = arith.constant 0 : index
    %33 = vector.load %arg1[%32, %c0_13, %c0_14] : memref<6x8x512xf32, #tpu.memory_space<vmem>>, vector<1x8x512xf32>
    %34 = vector.shape_cast %33 : vector<1x8x512xf32> to vector<8x512xf32>
    %cst_15 = arith.constant dense<0.000000e+00> : vector<8x512xf32>
    %35 = tpu.matmul %29, %0, %cst_15 {dimension_numbers = #tpu.dot_dimension_numbers<[1], [0], [0], [1], [0, 0, 1, 1], [], []>} : vector<8x128xf32>, vector<128x512xf32>, vector<8x512xf32> -> vector<8x512xf32>
    %36 = arith.addf %34, %35 : vector<8x512xf32>
    %37 = vector.broadcast %11 : vector<1x512xf32> to vector<8x512xf32>
    %38 = arith.mulf %36, %37 : vector<8x512xf32>
    %39 = math.tanh %38 : vector<8x512xf32>
    %40 = vector.broadcast %11 : vector<1x512xf32> to vector<8x512xf32>
    %41 = arith.mulf %39, %40 : vector<8x512xf32>
    %42 = vector.broadcast %14 : vector<1x512xf32> to vector<8x512xf32>
    %43 = arith.addf %41, %42 : vector<8x512xf32>
    %44 = vector.extract_strided_slice %43 {offsets = [0, 0], sizes = [8, 128], strides = [1, 1]} : vector<8x512xf32> to vector<8x128xf32>
    %45 = vector.extract_strided_slice %43 {offsets = [0, 128], sizes = [8, 128], strides = [1, 1]} : vector<8x512xf32> to vector<8x128xf32>
    %46 = vector.extract_strided_slice %43 {offsets = [0, 256], sizes = [8, 128], strides = [1, 1]} : vector<8x512xf32> to vector<8x128xf32>
    %47 = vector.extract_strided_slice %43 {offsets = [0, 384], sizes = [8, 128], strides = [1, 1]} : vector<8x512xf32> to vector<8x128xf32>
    %48 = arith.mulf %45, %27 : vector<8x128xf32>
    %49 = arith.mulf %44, %46 : vector<8x128xf32>
    %50 = arith.addf %48, %49 : vector<8x128xf32>
    %51 = math.tanh %50 : vector<8x128xf32>
    %52 = arith.mulf %47, %51 : vector<8x128xf32>
    %53 = tpu.concatenate %29, %30 in 1 : vector<8x128xf32>, vector<8x128xf32> -> vector<8x256xf32>
    %cst_16 = arith.constant dense<0.000000e+00> : vector<8x512xf32>
    %54 = tpu.matmul %53, %1, %cst_16 {dimension_numbers = #tpu.dot_dimension_numbers<[1], [0], [0], [1], [0, 0, 1, 1], [], []>} : vector<8x256xf32>, vector<256x512xf32>, vector<8x512xf32> -> vector<8x512xf32>
    %55 = vector.broadcast %2 : vector<1x512xf32> to vector<8x512xf32>
    %56 = arith.addf %54, %55 : vector<8x512xf32>
    %57 = vector.broadcast %11 : vector<1x512xf32> to vector<8x512xf32>
    %58 = arith.mulf %56, %57 : vector<8x512xf32>
    %59 = math.tanh %58 : vector<8x512xf32>
    %60 = vector.broadcast %11 : vector<1x512xf32> to vector<8x512xf32>
    %61 = arith.mulf %59, %60 : vector<8x512xf32>
    %62 = vector.broadcast %14 : vector<1x512xf32> to vector<8x512xf32>
    %63 = arith.addf %61, %62 : vector<8x512xf32>
    %64 = vector.extract_strided_slice %63 {offsets = [0, 0], sizes = [8, 128], strides = [1, 1]} : vector<8x512xf32> to vector<8x128xf32>
    %65 = vector.extract_strided_slice %63 {offsets = [0, 128], sizes = [8, 128], strides = [1, 1]} : vector<8x512xf32> to vector<8x128xf32>
    %66 = vector.extract_strided_slice %63 {offsets = [0, 256], sizes = [8, 128], strides = [1, 1]} : vector<8x512xf32> to vector<8x128xf32>
    %67 = vector.extract_strided_slice %63 {offsets = [0, 384], sizes = [8, 128], strides = [1, 1]} : vector<8x512xf32> to vector<8x128xf32>
    %68 = arith.mulf %65, %31 : vector<8x128xf32>
    %69 = arith.mulf %64, %66 : vector<8x128xf32>
    %70 = arith.addf %68, %69 : vector<8x128xf32>
    %71 = math.tanh %70 : vector<8x128xf32>
    %72 = arith.mulf %67, %71 : vector<8x128xf32>
    %c2_i32 = arith.constant 2 : i32
    %73 = arith.index_cast %c2_i32 : i32 to index
    %c0_17 = arith.constant 0 : index
    %c0_18 = arith.constant 0 : index
    %74 = vector.load %arg1[%73, %c0_17, %c0_18] : memref<6x8x512xf32, #tpu.memory_space<vmem>>, vector<1x8x512xf32>
    %75 = vector.shape_cast %74 : vector<1x8x512xf32> to vector<8x512xf32>
    %cst_19 = arith.constant dense<0.000000e+00> : vector<8x512xf32>
    %76 = tpu.matmul %52, %0, %cst_19 {dimension_numbers = #tpu.dot_dimension_numbers<[1], [0], [0], [1], [0, 0, 1, 1], [], []>} : vector<8x128xf32>, vector<128x512xf32>, vector<8x512xf32> -> vector<8x512xf32>
    %77 = arith.addf %75, %76 : vector<8x512xf32>
    %78 = vector.broadcast %11 : vector<1x512xf32> to vector<8x512xf32>
    %79 = arith.mulf %77, %78 : vector<8x512xf32>
    %80 = math.tanh %79 : vector<8x512xf32>
    %81 = vector.broadcast %11 : vector<1x512xf32> to vector<8x512xf32>
    %82 = arith.mulf %80, %81 : vector<8x512xf32>
    %83 = vector.broadcast %14 : vector<1x512xf32> to vector<8x512xf32>
    %84 = arith.addf %82, %83 : vector<8x512xf32>
    %85 = vector.extract_strided_slice %84 {offsets = [0, 0], sizes = [8, 128], strides = [1, 1]} : vector<8x512xf32> to vector<8x128xf32>
    %86 = vector.extract_strided_slice %84 {offsets = [0, 128], sizes = [8, 128], strides = [1, 1]} : vector<8x512xf32> to vector<8x128xf32>
    %87 = vector.extract_strided_slice %84 {offsets = [0, 256], sizes = [8, 128], strides = [1, 1]} : vector<8x512xf32> to vector<8x128xf32>
    %88 = vector.extract_strided_slice %84 {offsets = [0, 384], sizes = [8, 128], strides = [1, 1]} : vector<8x512xf32> to vector<8x128xf32>
    %89 = arith.mulf %86, %50 : vector<8x128xf32>
    %90 = arith.mulf %85, %87 : vector<8x128xf32>
    %91 = arith.addf %89, %90 : vector<8x128xf32>
    %92 = math.tanh %91 : vector<8x128xf32>
    %93 = arith.mulf %88, %92 : vector<8x128xf32>
    %94 = tpu.concatenate %52, %72 in 1 : vector<8x128xf32>, vector<8x128xf32> -> vector<8x256xf32>
    %cst_20 = arith.constant dense<0.000000e+00> : vector<8x512xf32>
    %95 = tpu.matmul %94, %1, %cst_20 {dimension_numbers = #tpu.dot_dimension_numbers<[1], [0], [0], [1], [0, 0, 1, 1], [], []>} : vector<8x256xf32>, vector<256x512xf32>, vector<8x512xf32> -> vector<8x512xf32>
    %96 = vector.broadcast %2 : vector<1x512xf32> to vector<8x512xf32>
    %97 = arith.addf %95, %96 : vector<8x512xf32>
    %98 = vector.broadcast %11 : vector<1x512xf32> to vector<8x512xf32>
    %99 = arith.mulf %97, %98 : vector<8x512xf32>
    %100 = math.tanh %99 : vector<8x512xf32>
    %101 = vector.broadcast %11 : vector<1x512xf32> to vector<8x512xf32>
    %102 = arith.mulf %100, %101 : vector<8x512xf32>
    %103 = vector.broadcast %14 : vector<1x512xf32> to vector<8x512xf32>
    %104 = arith.addf %102, %103 : vector<8x512xf32>
    %105 = vector.extract_strided_slice %104 {offsets = [0, 0], sizes = [8, 128], strides = [1, 1]} : vector<8x512xf32> to vector<8x128xf32>
    %106 = vector.extract_strided_slice %104 {offsets = [0, 128], sizes = [8, 128], strides = [1, 1]} : vector<8x512xf32> to vector<8x128xf32>
    %107 = vector.extract_strided_slice %104 {offsets = [0, 256], sizes = [8, 128], strides = [1, 1]} : vector<8x512xf32> to vector<8x128xf32>
    %108 = vector.extract_strided_slice %104 {offsets = [0, 384], sizes = [8, 128], strides = [1, 1]} : vector<8x512xf32> to vector<8x128xf32>
    %109 = arith.mulf %106, %70 : vector<8x128xf32>
    %110 = arith.mulf %105, %107 : vector<8x128xf32>
    %111 = arith.addf %109, %110 : vector<8x128xf32>
    %112 = math.tanh %111 : vector<8x128xf32>
    %113 = arith.mulf %108, %112 : vector<8x128xf32>
    %c3_i32 = arith.constant 3 : i32
    %114 = arith.index_cast %c3_i32 : i32 to index
    %c0_21 = arith.constant 0 : index
    %c0_22 = arith.constant 0 : index
    %115 = vector.load %arg1[%114, %c0_21, %c0_22] : memref<6x8x512xf32, #tpu.memory_space<vmem>>, vector<1x8x512xf32>
    %116 = vector.shape_cast %115 : vector<1x8x512xf32> to vector<8x512xf32>
    %cst_23 = arith.constant dense<0.000000e+00> : vector<8x512xf32>
    %117 = tpu.matmul %93, %0, %cst_23 {dimension_numbers = #tpu.dot_dimension_numbers<[1], [0], [0], [1], [0, 0, 1, 1], [], []>} : vector<8x128xf32>, vector<128x512xf32>, vector<8x512xf32> -> vector<8x512xf32>
    %118 = arith.addf %116, %117 : vector<8x512xf32>
    %119 = vector.broadcast %11 : vector<1x512xf32> to vector<8x512xf32>
    %120 = arith.mulf %118, %119 : vector<8x512xf32>
    %121 = math.tanh %120 : vector<8x512xf32>
    %122 = vector.broadcast %11 : vector<1x512xf32> to vector<8x512xf32>
    %123 = arith.mulf %121, %122 : vector<8x512xf32>
    %124 = vector.broadcast %14 : vector<1x512xf32> to vector<8x512xf32>
    %125 = arith.addf %123, %124 : vector<8x512xf32>
    %126 = vector.extract_strided_slice %125 {offsets = [0, 0], sizes = [8, 128], strides = [1, 1]} : vector<8x512xf32> to vector<8x128xf32>
    %127 = vector.extract_strided_slice %125 {offsets = [0, 128], sizes = [8, 128], strides = [1, 1]} : vector<8x512xf32> to vector<8x128xf32>
    %128 = vector.extract_strided_slice %125 {offsets = [0, 256], sizes = [8, 128], strides = [1, 1]} : vector<8x512xf32> to vector<8x128xf32>
    %129 = vector.extract_strided_slice %125 {offsets = [0, 384], sizes = [8, 128], strides = [1, 1]} : vector<8x512xf32> to vector<8x128xf32>
    %130 = arith.mulf %127, %91 : vector<8x128xf32>
    %131 = arith.mulf %126, %128 : vector<8x128xf32>
    %132 = arith.addf %130, %131 : vector<8x128xf32>
    %133 = math.tanh %132 : vector<8x128xf32>
    %134 = arith.mulf %129, %133 : vector<8x128xf32>
    %135 = tpu.concatenate %93, %113 in 1 : vector<8x128xf32>, vector<8x128xf32> -> vector<8x256xf32>
    %cst_24 = arith.constant dense<0.000000e+00> : vector<8x512xf32>
    %136 = tpu.matmul %135, %1, %cst_24 {dimension_numbers = #tpu.dot_dimension_numbers<[1], [0], [0], [1], [0, 0, 1, 1], [], []>} : vector<8x256xf32>, vector<256x512xf32>, vector<8x512xf32> -> vector<8x512xf32>
    %137 = vector.broadcast %2 : vector<1x512xf32> to vector<8x512xf32>
    %138 = arith.addf %136, %137 : vector<8x512xf32>
    %139 = vector.broadcast %11 : vector<1x512xf32> to vector<8x512xf32>
    %140 = arith.mulf %138, %139 : vector<8x512xf32>
    %141 = math.tanh %140 : vector<8x512xf32>
    %142 = vector.broadcast %11 : vector<1x512xf32> to vector<8x512xf32>
    %143 = arith.mulf %141, %142 : vector<8x512xf32>
    %144 = vector.broadcast %14 : vector<1x512xf32> to vector<8x512xf32>
    %145 = arith.addf %143, %144 : vector<8x512xf32>
    %146 = vector.extract_strided_slice %145 {offsets = [0, 0], sizes = [8, 128], strides = [1, 1]} : vector<8x512xf32> to vector<8x128xf32>
    %147 = vector.extract_strided_slice %145 {offsets = [0, 128], sizes = [8, 128], strides = [1, 1]} : vector<8x512xf32> to vector<8x128xf32>
    %148 = vector.extract_strided_slice %145 {offsets = [0, 256], sizes = [8, 128], strides = [1, 1]} : vector<8x512xf32> to vector<8x128xf32>
    %149 = vector.extract_strided_slice %145 {offsets = [0, 384], sizes = [8, 128], strides = [1, 1]} : vector<8x512xf32> to vector<8x128xf32>
    %150 = arith.mulf %147, %111 : vector<8x128xf32>
    %151 = arith.mulf %146, %148 : vector<8x128xf32>
    %152 = arith.addf %150, %151 : vector<8x128xf32>
    %153 = math.tanh %152 : vector<8x128xf32>
    %154 = arith.mulf %149, %153 : vector<8x128xf32>
    %c4_i32 = arith.constant 4 : i32
    %155 = arith.index_cast %c4_i32 : i32 to index
    %c0_25 = arith.constant 0 : index
    %c0_26 = arith.constant 0 : index
    %156 = vector.load %arg1[%155, %c0_25, %c0_26] : memref<6x8x512xf32, #tpu.memory_space<vmem>>, vector<1x8x512xf32>
    %157 = vector.shape_cast %156 : vector<1x8x512xf32> to vector<8x512xf32>
    %cst_27 = arith.constant dense<0.000000e+00> : vector<8x512xf32>
    %158 = tpu.matmul %134, %0, %cst_27 {dimension_numbers = #tpu.dot_dimension_numbers<[1], [0], [0], [1], [0, 0, 1, 1], [], []>} : vector<8x128xf32>, vector<128x512xf32>, vector<8x512xf32> -> vector<8x512xf32>
    %159 = arith.addf %157, %158 : vector<8x512xf32>
    %160 = vector.broadcast %11 : vector<1x512xf32> to vector<8x512xf32>
    %161 = arith.mulf %159, %160 : vector<8x512xf32>
    %162 = math.tanh %161 : vector<8x512xf32>
    %163 = vector.broadcast %11 : vector<1x512xf32> to vector<8x512xf32>
    %164 = arith.mulf %162, %163 : vector<8x512xf32>
    %165 = vector.broadcast %14 : vector<1x512xf32> to vector<8x512xf32>
    %166 = arith.addf %164, %165 : vector<8x512xf32>
    %167 = vector.extract_strided_slice %166 {offsets = [0, 0], sizes = [8, 128], strides = [1, 1]} : vector<8x512xf32> to vector<8x128xf32>
    %168 = vector.extract_strided_slice %166 {offsets = [0, 128], sizes = [8, 128], strides = [1, 1]} : vector<8x512xf32> to vector<8x128xf32>
    %169 = vector.extract_strided_slice %166 {offsets = [0, 256], sizes = [8, 128], strides = [1, 1]} : vector<8x512xf32> to vector<8x128xf32>
    %170 = vector.extract_strided_slice %166 {offsets = [0, 384], sizes = [8, 128], strides = [1, 1]} : vector<8x512xf32> to vector<8x128xf32>
    %171 = arith.mulf %168, %132 : vector<8x128xf32>
    %172 = arith.mulf %167, %169 : vector<8x128xf32>
    %173 = arith.addf %171, %172 : vector<8x128xf32>
    %174 = math.tanh %173 : vector<8x128xf32>
    %175 = arith.mulf %170, %174 : vector<8x128xf32>
    %176 = tpu.concatenate %134, %154 in 1 : vector<8x128xf32>, vector<8x128xf32> -> vector<8x256xf32>
    %cst_28 = arith.constant dense<0.000000e+00> : vector<8x512xf32>
    %177 = tpu.matmul %176, %1, %cst_28 {dimension_numbers = #tpu.dot_dimension_numbers<[1], [0], [0], [1], [0, 0, 1, 1], [], []>} : vector<8x256xf32>, vector<256x512xf32>, vector<8x512xf32> -> vector<8x512xf32>
    %178 = vector.broadcast %2 : vector<1x512xf32> to vector<8x512xf32>
    %179 = arith.addf %177, %178 : vector<8x512xf32>
    %180 = vector.broadcast %11 : vector<1x512xf32> to vector<8x512xf32>
    %181 = arith.mulf %179, %180 : vector<8x512xf32>
    %182 = math.tanh %181 : vector<8x512xf32>
    %183 = vector.broadcast %11 : vector<1x512xf32> to vector<8x512xf32>
    %184 = arith.mulf %182, %183 : vector<8x512xf32>
    %185 = vector.broadcast %14 : vector<1x512xf32> to vector<8x512xf32>
    %186 = arith.addf %184, %185 : vector<8x512xf32>
    %187 = vector.extract_strided_slice %186 {offsets = [0, 0], sizes = [8, 128], strides = [1, 1]} : vector<8x512xf32> to vector<8x128xf32>
    %188 = vector.extract_strided_slice %186 {offsets = [0, 128], sizes = [8, 128], strides = [1, 1]} : vector<8x512xf32> to vector<8x128xf32>
    %189 = vector.extract_strided_slice %186 {offsets = [0, 256], sizes = [8, 128], strides = [1, 1]} : vector<8x512xf32> to vector<8x128xf32>
    %190 = vector.extract_strided_slice %186 {offsets = [0, 384], sizes = [8, 128], strides = [1, 1]} : vector<8x512xf32> to vector<8x128xf32>
    %191 = arith.mulf %188, %152 : vector<8x128xf32>
    %192 = arith.mulf %187, %189 : vector<8x128xf32>
    %193 = arith.addf %191, %192 : vector<8x128xf32>
    %194 = math.tanh %193 : vector<8x128xf32>
    %195 = arith.mulf %190, %194 : vector<8x128xf32>
    %c5_i32 = arith.constant 5 : i32
    %196 = arith.index_cast %c5_i32 : i32 to index
    %c0_29 = arith.constant 0 : index
    %c0_30 = arith.constant 0 : index
    %197 = vector.load %arg1[%196, %c0_29, %c0_30] : memref<6x8x512xf32, #tpu.memory_space<vmem>>, vector<1x8x512xf32>
    %198 = vector.shape_cast %197 : vector<1x8x512xf32> to vector<8x512xf32>
    %cst_31 = arith.constant dense<0.000000e+00> : vector<8x512xf32>
    %199 = tpu.matmul %175, %0, %cst_31 {dimension_numbers = #tpu.dot_dimension_numbers<[1], [0], [0], [1], [0, 0, 1, 1], [], []>} : vector<8x128xf32>, vector<128x512xf32>, vector<8x512xf32> -> vector<8x512xf32>
    %200 = arith.addf %198, %199 : vector<8x512xf32>
    %201 = vector.broadcast %11 : vector<1x512xf32> to vector<8x512xf32>
    %202 = arith.mulf %200, %201 : vector<8x512xf32>
    %203 = math.tanh %202 : vector<8x512xf32>
    %204 = vector.broadcast %11 : vector<1x512xf32> to vector<8x512xf32>
    %205 = arith.mulf %203, %204 : vector<8x512xf32>
    %206 = vector.broadcast %14 : vector<1x512xf32> to vector<8x512xf32>
    %207 = arith.addf %205, %206 : vector<8x512xf32>
    %208 = vector.extract_strided_slice %207 {offsets = [0, 0], sizes = [8, 128], strides = [1, 1]} : vector<8x512xf32> to vector<8x128xf32>
    %209 = vector.extract_strided_slice %207 {offsets = [0, 128], sizes = [8, 128], strides = [1, 1]} : vector<8x512xf32> to vector<8x128xf32>
    %210 = vector.extract_strided_slice %207 {offsets = [0, 256], sizes = [8, 128], strides = [1, 1]} : vector<8x512xf32> to vector<8x128xf32>
    %211 = vector.extract_strided_slice %207 {offsets = [0, 384], sizes = [8, 128], strides = [1, 1]} : vector<8x512xf32> to vector<8x128xf32>
    %212 = arith.mulf %209, %173 : vector<8x128xf32>
    %213 = arith.mulf %208, %210 : vector<8x128xf32>
    %214 = arith.addf %212, %213 : vector<8x128xf32>
    %215 = math.tanh %214 : vector<8x128xf32>
    %216 = arith.mulf %211, %215 : vector<8x128xf32>
    %217 = tpu.concatenate %175, %195 in 1 : vector<8x128xf32>, vector<8x128xf32> -> vector<8x256xf32>
    %cst_32 = arith.constant dense<0.000000e+00> : vector<8x512xf32>
    %218 = tpu.matmul %217, %1, %cst_32 {dimension_numbers = #tpu.dot_dimension_numbers<[1], [0], [0], [1], [0, 0, 1, 1], [], []>} : vector<8x256xf32>, vector<256x512xf32>, vector<8x512xf32> -> vector<8x512xf32>
    %219 = vector.broadcast %2 : vector<1x512xf32> to vector<8x512xf32>
    %220 = arith.addf %218, %219 : vector<8x512xf32>
    %221 = vector.broadcast %11 : vector<1x512xf32> to vector<8x512xf32>
    %222 = arith.mulf %220, %221 : vector<8x512xf32>
    %223 = math.tanh %222 : vector<8x512xf32>
    %224 = vector.broadcast %11 : vector<1x512xf32> to vector<8x512xf32>
    %225 = arith.mulf %223, %224 : vector<8x512xf32>
    %226 = vector.broadcast %14 : vector<1x512xf32> to vector<8x512xf32>
    %227 = arith.addf %225, %226 : vector<8x512xf32>
    %228 = vector.extract_strided_slice %227 {offsets = [0, 0], sizes = [8, 128], strides = [1, 1]} : vector<8x512xf32> to vector<8x128xf32>
    %229 = vector.extract_strided_slice %227 {offsets = [0, 128], sizes = [8, 128], strides = [1, 1]} : vector<8x512xf32> to vector<8x128xf32>
    %230 = vector.extract_strided_slice %227 {offsets = [0, 256], sizes = [8, 128], strides = [1, 1]} : vector<8x512xf32> to vector<8x128xf32>
    %231 = vector.extract_strided_slice %227 {offsets = [0, 384], sizes = [8, 128], strides = [1, 1]} : vector<8x512xf32> to vector<8x128xf32>
    %232 = arith.mulf %229, %193 : vector<8x128xf32>
    %233 = arith.mulf %228, %230 : vector<8x128xf32>
    %234 = arith.addf %232, %233 : vector<8x128xf32>
    %235 = math.tanh %234 : vector<8x128xf32>
    %236 = arith.mulf %231, %235 : vector<8x128xf32>
    %c5_i32_33 = arith.constant 5 : i32
    %237 = tpu.concatenate %216, %236 in 1 : vector<8x128xf32>, vector<8x128xf32> -> vector<8x256xf32>
    %cst_34 = arith.constant dense<0.000000e+00> : vector<8x512xf32>
    %238 = tpu.matmul %237, %1, %cst_34 {dimension_numbers = #tpu.dot_dimension_numbers<[1], [0], [0], [1], [0, 0, 1, 1], [], []>} : vector<8x256xf32>, vector<256x512xf32>, vector<8x512xf32> -> vector<8x512xf32>
    %239 = vector.broadcast %2 : vector<1x512xf32> to vector<8x512xf32>
    %240 = arith.addf %238, %239 : vector<8x512xf32>
    %241 = vector.broadcast %11 : vector<1x512xf32> to vector<8x512xf32>
    %242 = arith.mulf %240, %241 : vector<8x512xf32>
    %243 = math.tanh %242 : vector<8x512xf32>
    %244 = vector.broadcast %11 : vector<1x512xf32> to vector<8x512xf32>
    %245 = arith.mulf %243, %244 : vector<8x512xf32>
    %246 = vector.broadcast %14 : vector<1x512xf32> to vector<8x512xf32>
    %247 = arith.addf %245, %246 : vector<8x512xf32>
    %248 = vector.extract_strided_slice %247 {offsets = [0, 0], sizes = [8, 128], strides = [1, 1]} : vector<8x512xf32> to vector<8x128xf32>
    %249 = vector.extract_strided_slice %247 {offsets = [0, 128], sizes = [8, 128], strides = [1, 1]} : vector<8x512xf32> to vector<8x128xf32>
    %250 = vector.extract_strided_slice %247 {offsets = [0, 256], sizes = [8, 128], strides = [1, 1]} : vector<8x512xf32> to vector<8x128xf32>
    %251 = vector.extract_strided_slice %247 {offsets = [0, 384], sizes = [8, 128], strides = [1, 1]} : vector<8x512xf32> to vector<8x128xf32>
    %252 = arith.mulf %249, %234 : vector<8x128xf32>
    %253 = arith.mulf %248, %250 : vector<8x128xf32>
    %254 = arith.addf %252, %253 : vector<8x128xf32>
    %255 = math.tanh %254 : vector<8x128xf32>
    %256 = arith.mulf %251, %255 : vector<8x128xf32>
    %c0_35 = arith.constant 0 : index
    %c0_36 = arith.constant 0 : index
    %c0_37 = arith.constant 0 : index
    %257 = vector.load %arg5[%c0_35, %c0_36, %c0_37] : memref<2x8x128xf32, #tpu.memory_space<vmem>>, vector<1x8x128xf32>
    %258 = vector.shape_cast %257 : vector<1x8x128xf32> to vector<8x128xf32>
    %259 = vector.shape_cast %216 : vector<8x128xf32> to vector<1x8x128xf32>
    tpu.vector_store %arg5[%c0_35, %c0_36, %c0_37], %259 {strides = array<i32>} : memref<2x8x128xf32, #tpu.memory_space<vmem>>, vector<1x8x128xf32>,
    %c1 = arith.constant 1 : index
    %c0_38 = arith.constant 0 : index
    %c0_39 = arith.constant 0 : index
    %260 = vector.load %arg5[%c1, %c0_38, %c0_39] : memref<2x8x128xf32, #tpu.memory_space<vmem>>, vector<1x8x128xf32>
    %261 = vector.shape_cast %260 : vector<1x8x128xf32> to vector<8x128xf32>
    %262 = vector.shape_cast %256 : vector<8x128xf32> to vector<1x8x128xf32>
    tpu.vector_store %arg5[%c1, %c0_38, %c0_39], %262 {strides = array<i32>} : memref<2x8x128xf32, #tpu.memory_space<vmem>>, vector<1x8x128xf32>,
    %c0_40 = arith.constant 0 : index
    %c0_41 = arith.constant 0 : index
    %c0_42 = arith.constant 0 : index
    %263 = vector.load %arg6[%c0_40, %c0_41, %c0_42] : memref<2x8x128xf32, #tpu.memory_space<vmem>>, vector<1x8x128xf32>
    %264 = vector.shape_cast %263 : vector<1x8x128xf32> to vector<8x128xf32>
    %265 = vector.shape_cast %214 : vector<8x128xf32> to vector<1x8x128xf32>
    tpu.vector_store %arg6[%c0_40, %c0_41, %c0_42], %265 {strides = array<i32>} : memref<2x8x128xf32, #tpu.memory_space<vmem>>, vector<1x8x128xf32>,
    %c1_43 = arith.constant 1 : index
    %c0_44 = arith.constant 0 : index
    %c0_45 = arith.constant 0 : index
    %266 = vector.load %arg6[%c1_43, %c0_44, %c0_45] : memref<2x8x128xf32, #tpu.memory_space<vmem>>, vector<1x8x128xf32>
    %267 = vector.shape_cast %266 : vector<1x8x128xf32> to vector<8x128xf32>
    %268 = vector.shape_cast %254 : vector<8x128xf32> to vector<1x8x128xf32>
    tpu.vector_store %arg6[%c1_43, %c0_44, %c0_45], %268 {strides = array<i32>} : memref<2x8x128xf32, #tpu.memory_space<vmem>>, vector<1x8x128xf32>,
    return
  }
  func.func @transform_0(%arg0: i32) -> (i32, i32, i32) {
    %c0_i32 = arith.constant 0 : i32
    %c0_i32_0 = arith.constant 0 : i32
    %c0_i32_1 = arith.constant 0 : i32
    return %c0_i32, %arg0, %c0_i32_0 : i32, i32, i32
  }
  func.func @transform_1(%arg0: i32) -> (i32, i32) {
    %c0_i32 = arith.constant 0 : i32
    %c0_i32_0 = arith.constant 0 : i32
    %c0_i32_1 = arith.constant 0 : i32
    return %c0_i32, %c0_i32_0 : i32, i32
  }
  func.func @transform_2(%arg0: i32) -> (i32, i32) {
    %c0_i32 = arith.constant 0 : i32
    %c0_i32_0 = arith.constant 0 : i32
    %c0_i32_1 = arith.constant 0 : i32
    return %c0_i32, %c0_i32_0 : i32, i32
  }
  func.func @transform_3(%arg0: i32) -> (i32, i32) {
    %c0_i32 = arith.constant 0 : i32
    %c0_i32_0 = arith.constant 0 : i32
    %c0_i32_1 = arith.constant 0 : i32
    return %c0_i32, %c0_i32_0 : i32, i32
  }
  func.func @transform_4(%arg0: i32) -> (i32, i32, i32) {
    %c0_i32 = arith.constant 0 : i32
    %c0_i32_0 = arith.constant 0 : i32
    %c0_i32_1 = arith.constant 0 : i32
    return %c0_i32, %arg0, %c0_i32_0 : i32, i32, i32
  }
  func.func @transform_5(%arg0: i32) -> (i32, i32, i32) {
    %c0_i32 = arith.constant 0 : i32
    %c0_i32_0 = arith.constant 0 : i32
    %c0_i32_1 = arith.constant 0 : i32
    return %c0_i32, %arg0, %c0_i32_0 : i32, i32, i32
  }
}

</mosaic_0001>

<bundles_post_ra>
// kernel: tpu_custom_call.1
= control target key start
LH: loop header
LB: loop body
LE: loop exit
PB: predicated region body
PF: predicated region fallthrough
CT: control target
= control target key end

     0   :  { %11 = vsyncpa [#allocation3], 0  ;;  %s4496_s0 = inlined_call_operand.hbm [shape: f32[6,8,512], index: 0, kind: input, shape index: {}]   ;;  %s4497_s1 = inlined_call_operand.hbm [shape: f32[128,512], index: 1, kind: input, shape index: {}]   ;;  %s4498_s2 = inlined_call_operand.hbm [shape: f32[256,512], index: 2, kind: input, shape index: {}]   ;;  %s4499_s3 = inlined_call_operand.vmem [shape: f32[1,512], index: 3, kind: input, shape index: {}]   ;;  %s4500_s4 = inlined_call_operand.hbm [shape: f32[2,8,128], index: 4, kind: output, shape index: {0}]   ;;  %s4501_s5 = inlined_call_operand.hbm [shape: f32[2,8,128], index: 5, kind: output, shape index: {1}]  }
   0x1   :  { %12 = vsyncpa [#allocation6], 0 }
   0x2   :  { %13 = vsyncpa [#allocation4], 0 }
   0x3   :  { %14 = vsyncpa [#allocation10], 0  ;;  %s3531_s18 = smov [#allocation5]   ;;  %s3532_s20 = smov [#allocation2]  }
   0x4   :  { %s32_s19 = sshll.u32 %s3531_s18, 4  ;;  %s20_s21 = sshll.u32 %s3532_s20, 4  ;;  %s33_s19 = int_to_ptr.vmem [resolvable:$true] %s32_s19  ;;  %s3571_s21 = int_to_ptr.vmem [resolvable:$true] %s20_s21 }
   0x5   :  { %s3413_s24 = scalar_lea.hbm %s4497_s1, 8192 }
   0x6   :  { %p3414_p0 = scmp.ne.s32.totalorder %s4497_s1, %s3413_s24  ;;  %p3417_p1 = scmp.lt.u32.totalorder %s3413_s24, %s4497_s1 }
   0x8   :  { %p3419_p2 = pnand %p3417_p1, %p3414_p0 }
   0xa   :  { %3422 = shalt.err (!%p3419_p2)
}
   0xb   :  { %s3423_s29 = scalar_lea.vmem %s33_s19, 8192  ;;  %p3428_p4 = scmp.lt.s32.totalorder %s33_s19, %s33_s19 }
   0xc   :  { %p3424_p3 = scmp.ne.s32.totalorder %s33_s19, %s3423_s29  ;;  %p3429_p5 = scmp.lt.s32.totalorder %s3423_s29, %s3423_s29 }
   0xe   :  { %p3430_p6 = por %p3429_p5, %p3428_p4 }
  0x10   :  { %p3431_p7 = pnand %p3430_p6, %p3424_p3 }
  0x12   :  { %3434 = shalt.err (!%p3431_p7)
}
  0x13   :  { %s3533_s30 = smov 512   ;;  %s3534_s6 = smov 32  }
  0x14   :  { %38 = dma.hbm_to_vmem [thread:$0]  %s4497_s1, 8192, %s33_s19, [#allocation6], %s3533_s30, %s3533_s30, %s3534_s6  }
  0x15   :  { %s3435_s11 = scalar_lea.hbm %s4496_s0, 3072 }
  0x16   :  { %p3436_p8 = scmp.ne.s32.totalorder %s4496_s0, %s3435_s11  ;;  %p3439_p9 = scmp.lt.u32.totalorder %s3435_s11, %s4496_s0 }
  0x18   :  { %p3441_p10 = pnand %p3439_p9, %p3436_p8 }
  0x1a   :  { %3444 = shalt.err (!%p3441_p10)
}
  0x1b   :  { %s3445_s16 = scalar_lea.vmem %s3571_s21, 3072  ;;  %p3450_p12 = scmp.lt.s32.totalorder %s3571_s21, %s3571_s21 }
  0x1c   :  { %p3446_p11 = scmp.ne.s32.totalorder %s3571_s21, %s3445_s16  ;;  %p3451_p13 = scmp.lt.s32.totalorder %s3445_s16, %s3445_s16 }
  0x1e   :  { %p3452_p0 = por %p3451_p13, %p3450_p12 }
  0x20   :  { %p3453_p1 = pnand %p3452_p0, %p3446_p11 }
  0x22   :  { %3456 = shalt.err (!%p3453_p1)
}
  0x23   :  { %26 = dma.hbm_to_vmem [thread:$0]  %s4496_s0, 3072, %s3571_s21, [#allocation3], %s3533_s30, %s3533_s30, %s3534_s6  }
  0x24   :  { %s3535_s18 = smov [#allocation7]   ;;  %s3457_s23 = scalar_lea.hbm %s4498_s2, 16384 }
  0x25   :  { %s44_s19 = sshll.u32 %s3535_s18, 4  ;;  %p3458_p2 = scmp.ne.s32.totalorder %s4498_s2, %s3457_s23  ;;  %s45_s19 = int_to_ptr.vmem [resolvable:$true] %s44_s19 }
  0x26   :  { %p3461_p3 = scmp.lt.u32.totalorder %s3457_s23, %s4498_s2 }
  0x28   :  { %p3463_p4 = pnand %p3461_p3, %p3458_p2 }
  0x2a   :  { %3466 = shalt.err (!%p3463_p4)
}
  0x2b   :  { %s3467_s28 = scalar_lea.vmem %s45_s19, 16384  ;;  %p3472_p6 = scmp.lt.s32.totalorder %s45_s19, %s45_s19 }
  0x2c   :  { %p3468_p5 = scmp.ne.s32.totalorder %s45_s19, %s3467_s28  ;;  %p3473_p7 = scmp.lt.s32.totalorder %s3467_s28, %s3467_s28 }
  0x2e   :  { %p3474_p8 = por %p3473_p7, %p3472_p6 }
  0x30   :  { %p3475_p9 = pnand %p3474_p8, %p3468_p5 }
  0x32   :  { %3478 = shalt.err (!%p3475_p9)
}
  0x33   :  { %50 = dma.hbm_to_vmem [thread:$0]  %s4498_s2, 16384, %s45_s19, [#allocation6], %s3533_s30, %s3533_s30, %s3534_s6  }
  0x34   :  { %3523 = dma.done.wait [#allocation3], 3072  }
  0x35   :  { %3524 = vsyncadd [#allocation3], 4294964224 }
  0x36   :  { %3525 = dma.done.wait [#allocation6], 24576  }
  0x37   :  { %3526 = vsyncadd [#allocation6], 4294942720  ;;  %v4502_v0 = vmov 0.0   ;;  %v63_v1 = vld [vmem:[#allocation5 + $0x8] sm:$0xff]  ;;  %v62_v3 = vld [vmem:[#allocation5] sm:$0xff] }
  0x38   :  { %367 = vmatprep.mubr.f32.mxu0 %v4502_v0  ;;  %438 = vmatprep.mubr.f32.mxu1 %v4502_v0  ;;  %v67_v2 = vld [vmem:[#allocation5 + $0x28] sm:$0xff]  ;;  %v66_v5 = vld [vmem:[#allocation5 + $0x20] sm:$0xff]  ;;  %v65_v12 = vld [vmem:[#allocation5 + $0x18] sm:$0xff] }
  0x39   :  { %v3625_v4 = vpack.c.bf16 %v67_v2, %v63_v1  ;;  %v71_v6 = vld [vmem:[#allocation5 + $0x48] sm:$0xff]  ;;  %v3627_v8 = vpack.c.bf16 %v66_v5, %v62_v3  ;;  %v70_v10 = vld [vmem:[#allocation5 + $0x40] sm:$0xff]  ;;  %v69_v13 = vld [vmem:[#allocation5 + $0x38] sm:$0xff] }
  0x3a   :  { %v75_v7 = vld [vmem:[#allocation5 + $0x68] sm:$0xff]  ;;  %v74_v11 = vld [vmem:[#allocation5 + $0x60] sm:$0xff]  ;;  %v64_v14 = vld [vmem:[#allocation5 + $0x10] sm:$0xff]  ;;  %v3635_v17 = vpack.c.bf16 %v69_v13, %v65_v12 }
  0x3b   :  { %4682 = vst [vmem:[#allocation15_spill] sm:$0xff] %v3627_v8  ;;  %v3629_v9 = vpack.c.bf16 %v75_v7, %v71_v6  ;;  %2198 = vmatprep.subr.bf16.mxu0 %v3625_v4  ;;  %v68_v15 = vld [vmem:[#allocation5 + $0x30] sm:$0xff]  ;;  %v3633_v16 = vpack.c.bf16 %v74_v11, %v70_v10  ;;  %v79_v19 = vld [vmem:[#allocation5 + $0x88] sm:$0xff]  ;;  %v78_v21 = vld [vmem:[#allocation5 + $0x80] sm:$0xff] }
  0x3c   :  { %2200 = vmatpush1.bf16.msra.mxu0 %v3627_v8  ;;  %v3637_v18 = vpack.c.bf16 %v68_v15, %v64_v14  ;;  %v83_v20 = vld [vmem:[#allocation5 + $0xa8] sm:$0xff]  ;;  %v82_v23 = vld [vmem:[#allocation5 + $0xa0] sm:$0xff]  ;;  %v73_v24 = vld [vmem:[#allocation5 + $0x58] sm:$0xff]  ;;  %2230 = vmatprep.subr.bf16.mxu1 %v3635_v17 }
  0x3d   :  { %4683 = vst [vmem:[#allocation16_spill] sm:$0xff] %v3629_v9  ;;  %4684 = vst [vmem:[#allocation17_spill] sm:$0xff] %v3633_v16  ;;  %2202 = vmatprep.subr.bf16.mxu0 %v3629_v9  ;;  %v3640_v22 = vpack.c.bf16 %v83_v20, %v79_v19  ;;  %v77_v25 = vld [vmem:[#allocation5 + $0x78] sm:$0xff]  ;;  %v72_v27 = vld [vmem:[#allocation5 + $0x50] sm:$0xff]  ;;  %v3649_v32 = vpack.c.bf16 %v82_v23, %v78_v21 }
  0x3e   :  { %4685 = vst [vmem:[#allocation18_spill] sm:$0xff] %v3637_v18  ;;  %v3643_v26 = vpack.c.bf16 %v77_v25, %v73_v24  ;;  %v76_v28 = vld [vmem:[#allocation5 + $0x70] sm:$0xff]  ;;  %v87_v29 = vld [vmem:[#allocation5 + $0xc8] sm:$0xff]  ;;  %2232 = vmatpush1.bf16.msra.mxu1 %v3637_v18  ;;  %v81_v33 = vld [vmem:[#allocation5 + $0x98] sm:$0xff] }
  0x3f   :  { %4686 = vst [vmem:[#allocation19_spill] sm:$0xff] %v3640_v22  ;;  %v3646_v30 = vpack.c.bf16 %v76_v28, %v72_v27  ;;  %v91_v31 = vld [vmem:[#allocation5 + $0xe8] sm:$0xff]  ;;  %4689 = vst [vmem:[#allocation22_spill] sm:$0xff] %v3649_v32  ;;  %v85_v34 = vld [vmem:[#allocation5 + $0xb8] sm:$0xff] }
  0x40   :  { %4687 = vst [vmem:[#allocation20_spill] sm:$0xff] %v3643_v26  ;;  %2204 = vmatpush1.bf16.msra.mxu0 %v3633_v16  ;;  %2234 = vmatprep.subr.bf16.mxu1 %v3643_v26  ;;  %v80_v35 = vld [vmem:[#allocation5 + $0x90] sm:$0xff]  ;;  %v3653_v36 = vpack.c.bf16 %v91_v31, %v87_v29  ;;  %v86_v37 = vld [vmem:[#allocation5 + $0xc0] sm:$0xff]  ;;  %v3655_v39 = vpack.c.bf16 %v85_v34, %v81_v33  ;;  %v95_v41 = vld [vmem:[#allocation5 + $0x108] sm:$0xff] }
  0x41   :  { %4688 = vst [vmem:[#allocation21_spill] sm:$0xff] %v3646_v30  ;;  %2206 = vmatprep.subr.bf16.mxu0 %v3640_v22  ;;  %v90_v38 = vld [vmem:[#allocation5 + $0xe0] sm:$0xff]  ;;  %v84_v40 = vld [vmem:[#allocation5 + $0xb0] sm:$0xff]  ;;  %v99_v42 = vld [vmem:[#allocation5 + $0x128] sm:$0xff] }
  0x42   :  { %4690 = vst [vmem:[#allocation23_spill] sm:$0xff] %v3653_v36  ;;  %4691 = vst [vmem:[#allocation24_spill] sm:$0xff] %v3655_v39  ;;  %v89_v43 = vld [vmem:[#allocation5 + $0xd8] sm:$0xff]  ;;  %2236 = vmatpush1.bf16.msra.mxu1 %v3646_v30  ;;  %v3658_v44 = vpack.c.bf16 %v84_v40, %v80_v35  ;;  %v3661_v46 = vpack.c.bf16 %v90_v38, %v86_v37  ;;  %v94_v47 = vld [vmem:[#allocation5 + $0x100] sm:$0xff]  ;;  %v3667_v51 = vpack.c.bf16 %v99_v42, %v95_v41 }
  0x43   :  { %v93_v45 = vld [vmem:[#allocation5 + $0xf8] sm:$0xff]  ;;  %2238 = vmatprep.subr.bf16.mxu1 %v3655_v39  ;;  %v88_v49 = vld [vmem:[#allocation5 + $0xd0] sm:$0xff]  ;;  %v98_v52 = vld [vmem:[#allocation5 + $0x120] sm:$0xff] }
  0x44   :  { %4692 = vst [vmem:[#allocation25_spill] sm:$0xff] %v3658_v44  ;;  %2208 = vmatpush1.bf16.msra.mxu0 %v3649_v32  ;;  %4693 = vst [vmem:[#allocation26_spill] sm:$0xff] %v3661_v46  ;;  %v3664_v48 = vpack.c.bf16 %v93_v45, %v89_v43  ;;  %v92_v50 = vld [vmem:[#allocation5 + $0xf0] sm:$0xff]  ;;  %v97_v53 = vld [vmem:[#allocation5 + $0x118] sm:$0xff]  ;;  %v3673_v58 = vpack.c.bf16 %v98_v52, %v94_v47 }
  0x45   :  { %2210 = vmatprep.subr.bf16.mxu0 %v3653_v36  ;;  %4695 = vst [vmem:[#allocation28_spill] sm:$0xff] %v3667_v51  ;;  %v101_v54 = vld [vmem:[#allocation5 + $0x138] sm:$0xff]  ;;  %v103_v55 = vld [vmem:[#allocation5 + $0x148] sm:$0xff]  ;;  %v3670_v57 = vpack.c.bf16 %v92_v50, %v88_v49  ;;  %v102_v59 = vld [vmem:[#allocation5 + $0x140] sm:$0xff] }
  0x46   :  { %4694 = vst [vmem:[#allocation27_spill] sm:$0xff] %v3664_v48  ;;  %v107_v56 = vld [vmem:[#allocation5 + $0x168] sm:$0xff]  ;;  %2240 = vmatpush1.bf16.msra.mxu1 %v3658_v44  ;;  %4697 = vst [vmem:[#allocation30_spill] sm:$0xff] %v3673_v58  ;;  %v3676_v60 = vpack.c.bf16 %v101_v54, %v97_v53  ;;  %v96_v61 = vld [vmem:[#allocation5 + $0x110] sm:$0xff] }
  0x47   :  { %4696 = vst [vmem:[#allocation29_spill] sm:$0xff] %v3670_v57  ;;  %2242 = vmatprep.subr.bf16.mxu1 %v3664_v48  ;;  %v100_v62 = vld [vmem:[#allocation5 + $0x130] sm:$0xff]  ;;  %v3679_v63 = vpack.c.bf16 %v107_v56, %v103_v55  ;;  %v106_v1 = vld [vmem:[#allocation5 + $0x160] sm:$0xff]  ;;  %v105_v2 = vld [vmem:[#allocation5 + $0x158] sm:$0xff] }
  0x48   :  { %2212 = vmatpush1.bf16.msra.mxu0 %v3661_v46  ;;  %4698 = vst [vmem:[#allocation31_spill] sm:$0xff] %v3676_v60  ;;  %v109_v3 = vld [vmem:[#allocation5 + $0x178] sm:$0xff]  ;;  %v111_v5 = vld [vmem:[#allocation5 + $0x188] sm:$0xff]  ;;  %v3682_v7 = vpack.c.bf16 %v100_v62, %v96_v61  ;;  %v110_v10 = vld [vmem:[#allocation5 + $0x180] sm:$0xff]  ;;  %v3685_v11 = vpack.c.bf16 %v106_v1, %v102_v59 }
  0x49   :  { %2214 = vmatprep.subr.bf16.mxu0 %v3667_v51  ;;  %4699 = vst [vmem:[#allocation32_spill] sm:$0xff] %v3679_v63  ;;  %v115_v6 = vld [vmem:[#allocation5 + $0x1a8] sm:$0xff]  ;;  %v3688_v12 = vpack.c.bf16 %v109_v3, %v105_v2  ;;  %v104_v13 = vld [vmem:[#allocation5 + $0x150] sm:$0xff]  ;;  %v280_v15 = vld [vmem:[#allocation2] sm:$0xff] }
  0x4a   :  { %2244 = vmatpush1.bf16.msra.mxu1 %v3670_v57  ;;  %4700 = vst [vmem:[#allocation33_spill] sm:$0xff] %v3682_v7  ;;  %4701 = vst [vmem:[#allocation34_spill] sm:$0xff] %v3685_v11  ;;  %v108_v14 = vld [vmem:[#allocation5 + $0x170] sm:$0xff]  ;;  %v3691_v19 = vpack.c.bf16 %v115_v6, %v111_v5  ;;  %v114_v20 = vld [vmem:[#allocation5 + $0x1a0] sm:$0xff]  ;;  %v283_v24 = vmul.f32 0.5, %v280_v15 }
  0x4b   :  { %2246 = vmatprep.subr.bf16.mxu1 %v3676_v60  ;;  %4702 = vst [vmem:[#allocation35_spill] sm:$0xff] %v3688_v12  ;;  %v113_v21 = vld [vmem:[#allocation5 + $0x198] sm:$0xff]  ;;  %v119_v25 = vld [vmem:[#allocation5 + $0x1c8] sm:$0xff]  ;;  %v281_v28 = vld [vmem:[#allocation2 + $0x10] sm:$0xff]  ;;  %v3694_v29 = vpack.c.bf16 %v108_v14, %v104_v13  ;;  %v3697_v33 = vpack.c.bf16 %v114_v20, %v110_v10 }
  0x4c   :  { %2216 = vmatpush1.bf16.msra.mxu0 %v3673_v58  ;;  %4703 = vst [vmem:[#allocation36_spill] sm:$0xff] %v3691_v19  ;;  %v117_v23 = vld [vmem:[#allocation5 + $0x1b8] sm:$0xff]  ;;  %v123_v27 = vld [vmem:[#allocation5 + $0x1e8] sm:$0xff]  ;;  %3295 = vtanh.f32 %v283_v24  ;;  %v118_v34 = vld [vmem:[#allocation5 + $0x1c0] sm:$0xff] }
  0x4d   :  { %2218 = vmatprep.subr.bf16.mxu0 %v3679_v63  ;;  %4704 = vst [vmem:[#allocation37_spill] sm:$0xff] %v3694_v29  ;;  %v282_v31 = vld [vmem:[#allocation2 + $0x18] sm:$0xff]  ;;  %4705 = vst [vmem:[#allocation38_spill] sm:$0xff] %v3697_v33  ;;  %v3700_v35 = vpack.c.bf16 %v117_v23, %v113_v21  ;;  %v112_v37 = vld [vmem:[#allocation5 + $0x190] sm:$0xff]  ;;  %v3703_v40 = vpack.c.bf16 %v123_v27, %v119_v25  ;;  %3297 = vtanh.f32 %v281_v28 }
  0x4e   :  { %2248 = vmatpush1.bf16.msra.mxu1 %v3682_v7  ;;  %v116_v38 = vld [vmem:[#allocation5 + $0x1b0] sm:$0xff]  ;;  %v122_v41 = vld [vmem:[#allocation5 + $0x1e0] sm:$0xff]  ;;  %v121_v42 = vld [vmem:[#allocation5 + $0x1d8] sm:$0xff]  ;;  %v285_v45 = vmul.f32 0.5, %v282_v31 }
  0x4f   :  { %2250 = vmatprep.subr.bf16.mxu1 %v3688_v12  ;;  %4706 = vst [vmem:[#allocation39_spill] sm:$0xff] %v3700_v35  ;;  %4707 = vst [vmem:[#allocation40_spill] sm:$0xff] %v3703_v40  ;;  %v125_v43 = vld [vmem:[#allocation5 + $0x1f8] sm:$0xff]  ;;  %v127_v47 = vld [vmem:[#allocation7 + $0x8] sm:$0xff]  ;;  %v3706_v50 = vpack.c.bf16 %v116_v38, %v112_v37  ;;  %v3709_v52 = vpack.c.bf16 %v122_v41, %v118_v34 }
  0x50   :  { %2220 = vmatpush1.bf16.msra.mxu0 %v3685_v11  ;;  %v131_v49 = vld [vmem:[#allocation7 + $0x28] sm:$0xff]  ;;  %v3712_v53 = vpack.c.bf16 %v125_v43, %v121_v42  ;;  %v120_v54 = vld [vmem:[#allocation5 + $0x1d0] sm:$0xff]  ;;  %v129_v59 = vld [vmem:[#allocation7 + $0x18] sm:$0xff]  ;;  %3299 = vtanh.f32 %v285_v45 }
  0x51   :  { %2222 = vmatprep.subr.bf16.mxu0 %v3691_v19  ;;  %4708 = vst [vmem:[#allocation41_spill] sm:$0xff] %v3706_v50  ;;  %4709 = vst [vmem:[#allocation42_spill] sm:$0xff] %v3709_v52  ;;  %v124_v55 = vld [vmem:[#allocation5 + $0x1f0] sm:$0xff]  ;;  %v3715_v56 = vpack.c.bf16 %v131_v49, %v127_v47  ;;  %v133_v61 = vld [vmem:[#allocation7 + $0x38] sm:$0xff] }
  0x52   :  { %2252 = vmatpush1.bf16.msra.mxu1 %v3694_v29  ;;  %4710 = vst [vmem:[#allocation43_spill] sm:$0xff] %v3712_v53  ;;  %v3718_v62 = vpack.c.bf16 %v124_v55, %v120_v54  ;;  %v3722_v1 = vpack.c.bf16 %v133_v61, %v129_v59  ;;  %v126_v15 = vld [vmem:[#allocation7] sm:$0xff]  ;;  %v135_v23 = vld [vmem:[#allocation7 + $0x48] sm:$0xff]  ;;  %v128_v24 = vld [vmem:[#allocation7 + $0x10] sm:$0xff] }
  0x53   :  { %2254 = vmatprep.subr.bf16.mxu1 %v3700_v35  ;;  %4711 = vst [vmem:[#allocation44_spill] sm:$0xff] %v3715_v56  ;;  %v130_v20 = vld [vmem:[#allocation7 + $0x20] sm:$0xff]  ;;  %v132_v25 = vld [vmem:[#allocation7 + $0x30] sm:$0xff]  ;;  %v139_v27 = vld [vmem:[#allocation7 + $0x68] sm:$0xff] }
  0x54   :  { %2224 = vmatpush1.bf16.msra.mxu0 %v3697_v33  ;;  %4712 = vst [vmem:[#allocation45_spill] sm:$0xff] %v3718_v62  ;;  %4713 = vst [vmem:[#allocation46_spill] sm:$0xff] %v3722_v1  ;;  %v137_v28 = vld [vmem:[#allocation7 + $0x58] sm:$0xff]  ;;  %v3730_v37 = vpack.c.bf16 %v130_v20, %v126_v15  ;;  %v134_v38 = vld [vmem:[#allocation7 + $0x40] sm:$0xff]  ;;  %v3732_v42 = vpack.c.bf16 %v132_v25, %v128_v24  ;;  %v3736_v45 = vpack.c.bf16 %v139_v27, %v135_v23 }
  0x55   :  { %2226 = vmatprep.subr.bf16.mxu0 %v3703_v40  ;;  %v141_v31 = vld [vmem:[#allocation7 + $0x78] sm:$0xff]  ;;  %v138_v41 = vld [vmem:[#allocation7 + $0x60] sm:$0xff]  ;;  %v143_v47 = vld [vmem:[#allocation7 + $0x88] sm:$0xff] }
  0x56   :  { %2256 = vmatpush1.bf16.msra.mxu1 %v3706_v50  ;;  %v3296_v2 = vpop.eup %3295  ;;  %v3738_v49 = vpack.c.bf16 %v141_v31, %v137_v28  ;;  %v136_v54 = vld [vmem:[#allocation7 + $0x50] sm:$0xff]  ;;  %v147_v59 = vld [vmem:[#allocation7 + $0xa8] sm:$0xff]  ;;  %v145_v61 = vld [vmem:[#allocation7 + $0x98] sm:$0xff] }
  0x57   :  { %2258 = vmatprep.subr.bf16.mxu1 %v3712_v53  ;;  %v289_v3 = vmul.f32 0.5, %v3296_v2  ;;  %v3298_v5 = vpop.eup %3297  ;;  %v140_v55 = vld [vmem:[#allocation7 + $0x70] sm:$0xff]  ;;  %v149_v2 = vld [vmem:[#allocation7 + $0xb8] sm:$0xff]  ;;  %v151_v15 = vld [vmem:[#allocation7 + $0xc8] sm:$0xff] }
  0x58   :  { %2228 = vmatpush1.bf16.msra.mxu0 %v3709_v52  ;;  %v3752_v20 = vpack.c.bf16 %v149_v2, %v145_v61  ;;  %v148_v23 = vld [vmem:[#allocation7 + $0xb0] sm:$0xff]  ;;  %v155_v24 = vld [vmem:[#allocation7 + $0xe8] sm:$0xff]  ;;  %v153_v25 = vld [vmem:[#allocation7 + $0xd8] sm:$0xff] }
  0x59   :  { %2262 = vmatprep.subr.bf16.mxu0 %v3715_v56  ;;  %v292_v6 = vadd.f32 0.5, %v289_v3  ;;  %v3743_v3 = vpack.c.bf16 %v138_v41, %v134_v38  ;;  %v157_v27 = vld [vmem:[#allocation7 + $0xf8] sm:$0xff]  ;;  %v150_v31 = vld [vmem:[#allocation7 + $0xc0] sm:$0xff]  ;;  %v3763_v41 = vpack.c.bf16 %v155_v24, %v151_v15  ;;  %v163_v61 = vld [vmem:[#allocation7 + $0x128] sm:$0xff] }
  0x5a   :  { %2260 = vmatpush1.bf16.msra.mxu1 %v3718_v62  ;;  %v3300_v13 = vpop.eup %3299  ;;  %4714 = vst [vmem:[#allocation47_spill] sm:$0xff] %v3752_v20  ;;  %v161_v2 = vld [vmem:[#allocation7 + $0x118] sm:$0xff] }
  0x5b   :  { %2326 = vmatprep.subr.bf16.mxu1 %v3722_v1  ;;  %v3727_v10 = vmul.f32 %v3298_v5, %v292_v6  ;;  %v291_v14 = vmul.f32 0.5, %v3300_v13  ;;  %v142_v5 = vld [vmem:[#allocation7 + $0x80] sm:$0xff]  ;;  %v3746_v13 = vpack.c.bf16 %v140_v55, %v136_v54  ;;  %4717 = vst [vmem:[#allocation50_spill] sm:$0xff] %v3763_v41  ;;  %v3766_v54 = vpack.c.bf16 %v157_v27, %v153_v25  ;;  %v152_v55 = vld [vmem:[#allocation7 + $0xd0] sm:$0xff]  ;;  %v167_v25 = vld [vmem:[#allocation7 + $0x148] sm:$0xff] }
  0x5c   :  { %v146_v6 = vld [vmem:[#allocation7 + $0xa0] sm:$0xff] }
  0x5d   :  { %3301 = vtanh.f32 %v3727_v10  ;;  %v294_v21 = vadd.f32 0.5, %v291_v14  ;;  %v3749_v14 = vpack.c.bf16 %v147_v59, %v143_v47  ;;  %v3757_v28 = vpack.c.bf16 %v146_v6, %v142_v5  ;;  %v159_v47 = vld [vmem:[#allocation7 + $0x108] sm:$0xff]  ;;  %4718 = vst [vmem:[#allocation51_spill] sm:$0xff] %v3766_v54  ;;  %v156_v59 = vld [vmem:[#allocation7 + $0xf0] sm:$0xff]  ;;  %v165_v5 = vld [vmem:[#allocation7 + $0x138] sm:$0xff] }
  0x5e   :  { %v3772_v15 = vpack.c.bf16 %v156_v59, %v152_v55  ;;  %v3775_v24 = vpack.c.bf16 %v163_v61, %v159_v47  ;;  %v3778_v27 = vpack.c.bf16 %v165_v5, %v161_v2  ;;  %v166_v55 = vld [vmem:[#allocation7 + $0x140] sm:$0xff]  ;;  %v175_v2 = vld [vmem:[#allocation7 + $0x188] sm:$0xff] }
  0x5f   :  { %4715 = vst [vmem:[#allocation48_spill] sm:$0xff] %v3757_v28  ;;  %v170_v59 = vld [vmem:[#allocation7 + $0x160] sm:$0xff] }
  0x60   :  { %4720 = vst [vmem:[#allocation53_spill] sm:$0xff] %v3772_v15  ;;  %4721 = vst [vmem:[#allocation54_spill] sm:$0xff] %v3775_v24 }
  0x61   :  { %4722 = vst [vmem:[#allocation55_spill] sm:$0xff] %v3778_v27 }
  0x67   :  { %v3302_v34 = vpop.eup %3301 }
  0x68   :  { %v3734_v43 = vmul.f32 %v3302_v34, %v294_v21  ;;  %v144_v21 = vld [vmem:[#allocation7 + $0x90] sm:$0xff]  ;;  %v154_v34 = vld [vmem:[#allocation7 + $0xe0] sm:$0xff] }
  0x69   :  { %v3760_v38 = vpack.c.bf16 %v148_v23, %v144_v21  ;;  %v3769_v6 = vpack.c.bf16 %v154_v34, %v150_v31  ;;  %v158_v21 = vld [vmem:[#allocation7 + $0x100] sm:$0xff]  ;;  %v169_v31 = vld [vmem:[#allocation7 + $0x158] sm:$0xff] }
  0x6a   :  { %368 = vmatmul.mubr.f32.vlgmr.msra.gmra.mrb[0].mxu0 %v3734_v43  ;;  %439 = vmatmul.mubr.f32.vlgmr.msra.gmra.mrb[0].mxu1 %v3734_v43  ;;  %v162_v23 = vld [vmem:[#allocation7 + $0x120] sm:$0xff]  ;;  %v173_v34 = vld [vmem:[#allocation7 + $0x178] sm:$0xff] }
  0x6b   :  { %2264 = vmatpush1.bf16.msra.mxu0 %v3730_v37  ;;  %2328 = vmatpush1.bf16.msra.mxu1 %v3732_v42  ;;  %4716 = vst [vmem:[#allocation49_spill] sm:$0xff] %v3760_v38  ;;  %4719 = vst [vmem:[#allocation52_spill] sm:$0xff] %v3769_v6  ;;  %v3790_v5 = vpack.c.bf16 %v173_v34, %v169_v31  ;;  %v183_v31 = vld [vmem:[#allocation7 + $0x1c8] sm:$0xff] }
  0x6c   :  { %2266 = vmatprep.subr.bf16.mxu0 %v3736_v45  ;;  %2330 = vmatprep.subr.bf16.mxu1 %v3738_v49 }
  0x6d   :  { %555 = vmatprep.mubr.f32.mxu0 %v4502_v0  ;;  %626 = vmatprep.mubr.f32.mxu1 %v4502_v0  ;;  %v160_v0 = vld [vmem:[#allocation7 + $0x110] sm:$0xff]  ;;  %4726 = vst [vmem:[#allocation59_spill] sm:$0xff] %v3790_v5 }
  0x6f   :  { %2268 = vmatpush1.bf16.msra.mxu0 %v3743_v3  ;;  %2332 = vmatpush1.bf16.msra.mxu1 %v3746_v13 }
  0x70   :  { %2270 = vmatprep.subr.bf16.mxu0 %v3749_v14  ;;  %2334 = vmatprep.subr.bf16.mxu1 %v3752_v20  ;;  %v164_v20 = vld [vmem:[#allocation7 + $0x130] sm:$0xff] }
  0x71   :  { %v3784_v47 = vpack.c.bf16 %v164_v20, %v160_v0  ;;  %v174_v0 = vld [vmem:[#allocation7 + $0x180] sm:$0xff] }
  0x72   :  { %v178_v20 = vld [vmem:[#allocation7 + $0x1a0] sm:$0xff] }
  0x73   :  { %2272 = vmatpush1.bf16.msra.mxu0 %v3757_v28  ;;  %2336 = vmatpush1.bf16.msra.mxu1 %v3760_v38  ;;  %v171_v28 = vld [vmem:[#allocation7 + $0x168] sm:$0xff]  ;;  %v3781_v38 = vpack.c.bf16 %v162_v23, %v158_v21  ;;  %4724 = vst [vmem:[#allocation57_spill] sm:$0xff] %v3784_v47  ;;  %v177_v21 = vld [vmem:[#allocation7 + $0x198] sm:$0xff] }
  0x74   :  { %2274 = vmatprep.subr.bf16.mxu0 %v3763_v41  ;;  %2338 = vmatprep.subr.bf16.mxu1 %v3766_v54  ;;  %v3787_v61 = vpack.c.bf16 %v171_v28, %v167_v25  ;;  %v168_v54 = vld [vmem:[#allocation7 + $0x150] sm:$0xff]  ;;  %v181_v23 = vld [vmem:[#allocation7 + $0x1b8] sm:$0xff] }
  0x75   :  { %4723 = vst [vmem:[#allocation56_spill] sm:$0xff] %v3781_v38  ;;  %v172_v41 = vld [vmem:[#allocation7 + $0x170] sm:$0xff]  ;;  %v3802_v34 = vpack.c.bf16 %v181_v23, %v177_v21  ;;  %v191_v21 = vld [vmem:[#allocation7 + $0x208] sm:$0xff] }
  0x76   :  { %4725 = vst [vmem:[#allocation58_spill] sm:$0xff] %v3787_v61  ;;  %v3796_v28 = vpack.c.bf16 %v172_v41, %v168_v54  ;;  %v182_v41 = vld [vmem:[#allocation7 + $0x1c0] sm:$0xff] }
  0x77   :  { %2276 = vmatpush1.bf16.msra.mxu0 %v3769_v6  ;;  %2340 = vmatpush1.bf16.msra.mxu1 %v3772_v15  ;;  %v179_v6 = vld [vmem:[#allocation7 + $0x1a8] sm:$0xff]  ;;  %v3793_v15 = vpack.c.bf16 %v170_v59, %v166_v55  ;;  %4730 = vst [vmem:[#allocation63_spill] sm:$0xff] %v3802_v34  ;;  %v185_v55 = vld [vmem:[#allocation7 + $0x1d8] sm:$0xff]  ;;  %v186_v54 = vld [vmem:[#allocation7 + $0x1e0] sm:$0xff] }
  0x78   :  { %2278 = vmatprep.subr.bf16.mxu0 %v3775_v24  ;;  %2342 = vmatprep.subr.bf16.mxu1 %v3778_v27  ;;  %4728 = vst [vmem:[#allocation61_spill] sm:$0xff] %v3796_v28  ;;  %v3799_v25 = vpack.c.bf16 %v179_v6, %v175_v2  ;;  %v176_v27 = vld [vmem:[#allocation7 + $0x190] sm:$0xff]  ;;  %v189_v59 = vld [vmem:[#allocation7 + $0x1f8] sm:$0xff] }
  0x79   :  { %4727 = vst [vmem:[#allocation60_spill] sm:$0xff] %v3793_v15  ;;  %v180_v24 = vld [vmem:[#allocation7 + $0x1b0] sm:$0xff]  ;;  %v3814_v23 = vpack.c.bf16 %v189_v59, %v185_v55  ;;  %v199_v55 = vld [vmem:[#allocation7 + $0x248] sm:$0xff] }
  0x7a   :  { %4729 = vst [vmem:[#allocation62_spill] sm:$0xff] %v3799_v25  ;;  %v3808_v6 = vpack.c.bf16 %v180_v24, %v176_v27  ;;  %v190_v24 = vld [vmem:[#allocation7 + $0x200] sm:$0xff] }
  0x7b   :  { %2280 = vmatpush1.bf16.msra.mxu0 %v3781_v38  ;;  %2344 = vmatpush1.bf16.msra.mxu1 %v3784_v47  ;;  %v187_v38 = vld [vmem:[#allocation7 + $0x1e8] sm:$0xff]  ;;  %v3805_v47 = vpack.c.bf16 %v178_v20, %v174_v0  ;;  %4734 = vst [vmem:[#allocation67_spill] sm:$0xff] %v3814_v23  ;;  %v193_v0 = vld [vmem:[#allocation7 + $0x218] sm:$0xff]  ;;  %v194_v27 = vld [vmem:[#allocation7 + $0x220] sm:$0xff] }
  0x7c   :  { %2282 = vmatprep.subr.bf16.mxu0 %v3787_v61  ;;  %2346 = vmatprep.subr.bf16.mxu1 %v3790_v5  ;;  %4732 = vst [vmem:[#allocation65_spill] sm:$0xff] %v3808_v6  ;;  %v3811_v2 = vpack.c.bf16 %v187_v38, %v183_v31  ;;  %v184_v5 = vld [vmem:[#allocation7 + $0x1d0] sm:$0xff]  ;;  %v197_v20 = vld [vmem:[#allocation7 + $0x238] sm:$0xff] }
  0x7d   :  { %4731 = vst [vmem:[#allocation64_spill] sm:$0xff] %v3805_v47  ;;  %v188_v61 = vld [vmem:[#allocation7 + $0x1f0] sm:$0xff]  ;;  %v3826_v59 = vpack.c.bf16 %v197_v20, %v193_v0  ;;  %v207_v0 = vld [vmem:[#allocation7 + $0x288] sm:$0xff] }
  0x7e   :  { %4733 = vst [vmem:[#allocation66_spill] sm:$0xff] %v3811_v2  ;;  %v3820_v38 = vpack.c.bf16 %v188_v61, %v184_v5  ;;  %v198_v61 = vld [vmem:[#allocation7 + $0x240] sm:$0xff] }
  0x7f   :  { %2284 = vmatpush1.bf16.msra.mxu0 %v3793_v15  ;;  %2348 = vmatpush1.bf16.msra.mxu1 %v3796_v28  ;;  %v195_v15 = vld [vmem:[#allocation7 + $0x228] sm:$0xff]  ;;  %v3817_v28 = vpack.c.bf16 %v186_v54, %v182_v41  ;;  %4738 = vst [vmem:[#allocation71_spill] sm:$0xff] %v3826_v59  ;;  %v201_v41 = vld [vmem:[#allocation7 + $0x258] sm:$0xff]  ;;  %v202_v5 = vld [vmem:[#allocation7 + $0x260] sm:$0xff] }
  0x80   :  { %2286 = vmatprep.subr.bf16.mxu0 %v3799_v25  ;;  %2350 = vmatprep.subr.bf16.mxu1 %v3802_v34  ;;  %4736 = vst [vmem:[#allocation69_spill] sm:$0xff] %v3820_v38  ;;  %v3823_v31 = vpack.c.bf16 %v195_v15, %v191_v21  ;;  %v192_v34 = vld [vmem:[#allocation7 + $0x210] sm:$0xff]  ;;  %v205_v54 = vld [vmem:[#allocation7 + $0x278] sm:$0xff] }
  0x81   :  { %4735 = vst [vmem:[#allocation68_spill] sm:$0xff] %v3817_v28  ;;  %v196_v25 = vld [vmem:[#allocation7 + $0x230] sm:$0xff]  ;;  %v3838_v20 = vpack.c.bf16 %v205_v54, %v201_v41  ;;  %v215_v41 = vld [vmem:[#allocation7 + $0x2c8] sm:$0xff] }
  0x82   :  { %4737 = vst [vmem:[#allocation70_spill] sm:$0xff] %v3823_v31  ;;  %v3832_v15 = vpack.c.bf16 %v196_v25, %v192_v34  ;;  %v206_v25 = vld [vmem:[#allocation7 + $0x280] sm:$0xff] }
  0x83   :  { %2288 = vmatpush1.bf16.msra.mxu0 %v3805_v47  ;;  %2352 = vmatpush1.bf16.msra.mxu1 %v3808_v6  ;;  %v203_v47 = vld [vmem:[#allocation7 + $0x268] sm:$0xff]  ;;  %v3829_v6 = vpack.c.bf16 %v194_v27, %v190_v24  ;;  %4742 = vst [vmem:[#allocation75_spill] sm:$0xff] %v3838_v20  ;;  %v209_v24 = vld [vmem:[#allocation7 + $0x298] sm:$0xff]  ;;  %v210_v34 = vld [vmem:[#allocation7 + $0x2a0] sm:$0xff] }
  0x84   :  { %2290 = vmatprep.subr.bf16.mxu0 %v3811_v2  ;;  %2354 = vmatprep.subr.bf16.mxu1 %v3814_v23  ;;  %4740 = vst [vmem:[#allocation73_spill] sm:$0xff] %v3832_v15  ;;  %v3835_v21 = vpack.c.bf16 %v203_v47, %v199_v55  ;;  %v200_v23 = vld [vmem:[#allocation7 + $0x250] sm:$0xff]  ;;  %v213_v27 = vld [vmem:[#allocation7 + $0x2b8] sm:$0xff] }
  0x85   :  { %4739 = vst [vmem:[#allocation72_spill] sm:$0xff] %v3829_v6  ;;  %v204_v2 = vld [vmem:[#allocation7 + $0x270] sm:$0xff]  ;;  %v3850_v54 = vpack.c.bf16 %v213_v27, %v209_v24  ;;  %v223_v24 = vld [vmem:[#allocation7 + $0x308] sm:$0xff] }
  0x86   :  { %4741 = vst [vmem:[#allocation74_spill] sm:$0xff] %v3835_v21  ;;  %v3844_v47 = vpack.c.bf16 %v204_v2, %v200_v23  ;;  %v214_v2 = vld [vmem:[#allocation7 + $0x2c0] sm:$0xff] }
  0x87   :  { %2292 = vmatpush1.bf16.msra.mxu0 %v3817_v28  ;;  %2356 = vmatpush1.bf16.msra.mxu1 %v3820_v38  ;;  %v211_v28 = vld [vmem:[#allocation7 + $0x2a8] sm:$0xff]  ;;  %v3841_v38 = vpack.c.bf16 %v202_v5, %v198_v61  ;;  %4746 = vst [vmem:[#allocation79_spill] sm:$0xff] %v3850_v54  ;;  %v217_v61 = vld [vmem:[#allocation7 + $0x2d8] sm:$0xff]  ;;  %v218_v23 = vld [vmem:[#allocation7 + $0x2e0] sm:$0xff] }
  0x88   :  { %2294 = vmatprep.subr.bf16.mxu0 %v3823_v31  ;;  %2358 = vmatprep.subr.bf16.mxu1 %v3826_v59  ;;  %4744 = vst [vmem:[#allocation77_spill] sm:$0xff] %v3844_v47  ;;  %v3847_v55 = vpack.c.bf16 %v211_v28, %v207_v0  ;;  %v208_v59 = vld [vmem:[#allocation7 + $0x290] sm:$0xff]  ;;  %v221_v5 = vld [vmem:[#allocation7 + $0x2f8] sm:$0xff] }
  0x89   :  { %4743 = vst [vmem:[#allocation76_spill] sm:$0xff] %v3841_v38  ;;  %v212_v31 = vld [vmem:[#allocation7 + $0x2b0] sm:$0xff]  ;;  %v3862_v27 = vpack.c.bf16 %v221_v5, %v217_v61  ;;  %v231_v61 = vld [vmem:[#allocation7 + $0x348] sm:$0xff] }
  0x8a   :  { %4745 = vst [vmem:[#allocation78_spill] sm:$0xff] %v3847_v55  ;;  %v3856_v28 = vpack.c.bf16 %v212_v31, %v208_v59  ;;  %v222_v31 = vld [vmem:[#allocation7 + $0x300] sm:$0xff] }
  0x8b   :  { %2296 = vmatpush1.bf16.msra.mxu0 %v3829_v6  ;;  %2360 = vmatpush1.bf16.msra.mxu1 %v3832_v15  ;;  %v219_v6 = vld [vmem:[#allocation7 + $0x2e8] sm:$0xff]  ;;  %v3853_v15 = vpack.c.bf16 %v210_v34, %v206_v25  ;;  %4750 = vst [vmem:[#allocation83_spill] sm:$0xff] %v3862_v27  ;;  %v225_v25 = vld [vmem:[#allocation7 + $0x318] sm:$0xff]  ;;  %v226_v59 = vld [vmem:[#allocation7 + $0x320] sm:$0xff] }
  0x8c   :  { %2298 = vmatprep.subr.bf16.mxu0 %v3835_v21  ;;  %2362 = vmatprep.subr.bf16.mxu1 %v3838_v20  ;;  %4748 = vst [vmem:[#allocation81_spill] sm:$0xff] %v3856_v28  ;;  %v3859_v0 = vpack.c.bf16 %v219_v6, %v215_v41  ;;  %v216_v20 = vld [vmem:[#allocation7 + $0x2d0] sm:$0xff]  ;;  %v229_v34 = vld [vmem:[#allocation7 + $0x338] sm:$0xff] }
  0x8d   :  { %4747 = vst [vmem:[#allocation80_spill] sm:$0xff] %v3853_v15  ;;  %v220_v21 = vld [vmem:[#allocation7 + $0x2f0] sm:$0xff]  ;;  %v3874_v5 = vpack.c.bf16 %v229_v34, %v225_v25  ;;  %v239_v25 = vld [vmem:[#allocation7 + $0x388] sm:$0xff] }
  0x8e   :  { %4749 = vst [vmem:[#allocation82_spill] sm:$0xff] %v3859_v0  ;;  %v3868_v6 = vpack.c.bf16 %v220_v21, %v216_v20  ;;  %v230_v21 = vld [vmem:[#allocation7 + $0x340] sm:$0xff] }
  0x8f   :  { %2300 = vmatpush1.bf16.msra.mxu0 %v3841_v38  ;;  %2364 = vmatpush1.bf16.msra.mxu1 %v3844_v47  ;;  %v227_v38 = vld [vmem:[#allocation7 + $0x328] sm:$0xff]  ;;  %v3865_v47 = vpack.c.bf16 %v218_v23, %v214_v2  ;;  %4754 = vst [vmem:[#allocation87_spill] sm:$0xff] %v3874_v5  ;;  %v233_v2 = vld [vmem:[#allocation7 + $0x358] sm:$0xff]  ;;  %v234_v20 = vld [vmem:[#allocation7 + $0x360] sm:$0xff] }
  0x90   :  { %2302 = vmatprep.subr.bf16.mxu0 %v3847_v55  ;;  %2366 = vmatprep.subr.bf16.mxu1 %v3850_v54  ;;  %4752 = vst [vmem:[#allocation85_spill] sm:$0xff] %v3868_v6  ;;  %v3871_v41 = vpack.c.bf16 %v227_v38, %v223_v24  ;;  %v224_v54 = vld [vmem:[#allocation7 + $0x310] sm:$0xff]  ;;  %v237_v23 = vld [vmem:[#allocation7 + $0x378] sm:$0xff] }
  0x91   :  { %4751 = vst [vmem:[#allocation84_spill] sm:$0xff] %v3865_v47  ;;  %v228_v55 = vld [vmem:[#allocation7 + $0x330] sm:$0xff]  ;;  %v3886_v34 = vpack.c.bf16 %v237_v23, %v233_v2  ;;  %v247_v2 = vld [vmem:[#allocation7 + $0x3c8] sm:$0xff] }
  0x92   :  { %4753 = vst [vmem:[#allocation86_spill] sm:$0xff] %v3871_v41  ;;  %v3880_v38 = vpack.c.bf16 %v228_v55, %v224_v54  ;;  %v238_v55 = vld [vmem:[#allocation7 + $0x380] sm:$0xff] }
  0x93   :  { %2304 = vmatpush1.bf16.msra.mxu0 %v3853_v15  ;;  %2368 = vmatpush1.bf16.msra.mxu1 %v3856_v28  ;;  %v235_v15 = vld [vmem:[#allocation7 + $0x368] sm:$0xff]  ;;  %v3877_v28 = vpack.c.bf16 %v226_v59, %v222_v31  ;;  %4757 = vst [vmem:[#allocation90_spill] sm:$0xff] %v3886_v34  ;;  %v241_v31 = vld [vmem:[#allocation7 + $0x398] sm:$0xff]  ;;  %v242_v54 = vld [vmem:[#allocation7 + $0x3a0] sm:$0xff] }
  0x94   :  { %2306 = vmatprep.subr.bf16.mxu0 %v3859_v0  ;;  %2370 = vmatprep.subr.bf16.mxu1 %v3862_v27  ;;  %4756 = vst [vmem:[#allocation89_spill] sm:$0xff] %v3880_v38  ;;  %v3883_v24 = vpack.c.bf16 %v235_v15, %v231_v61  ;;  %v232_v27 = vld [vmem:[#allocation7 + $0x350] sm:$0xff]  ;;  %v245_v59 = vld [vmem:[#allocation7 + $0x3b8] sm:$0xff] }
  0x95   :  { %4755 = vst [vmem:[#allocation88_spill] sm:$0xff] %v3877_v28  ;;  %v236_v0 = vld [vmem:[#allocation7 + $0x370] sm:$0xff]  ;;  %v3898_v23 = vpack.c.bf16 %v245_v59, %v241_v31 }
  0x96   :  { %v3892_v15 = vpack.c.bf16 %v236_v0, %v232_v27  ;;  %v246_v0 = vld [vmem:[#allocation7 + $0x3c0] sm:$0xff]  ;;  %v248_v59 = vld [vmem:[#allocation7 + $0x3d0] sm:$0xff] }
  0x97   :  { %2308 = vmatpush1.bf16.msra.mxu0 %v3865_v47  ;;  %2372 = vmatpush1.bf16.msra.mxu1 %v3868_v6  ;;  %v243_v47 = vld [vmem:[#allocation7 + $0x3a8] sm:$0xff]  ;;  %v3889_v6 = vpack.c.bf16 %v234_v20, %v230_v21  ;;  %4761 = vst [vmem:[#allocation94_spill] sm:$0xff] %v3898_v23  ;;  %v249_v21 = vld [vmem:[#allocation7 + $0x3d8] sm:$0xff] }
  0x98   :  { %2310 = vmatprep.subr.bf16.mxu0 %v3871_v41  ;;  %2374 = vmatprep.subr.bf16.mxu1 %v3874_v5  ;;  %4759 = vst [vmem:[#allocation92_spill] sm:$0xff] %v3892_v15  ;;  %v3895_v61 = vpack.c.bf16 %v243_v47, %v239_v25  ;;  %v240_v5 = vld [vmem:[#allocation7 + $0x390] sm:$0xff]  ;;  %v253_v20 = vld [vmem:[#allocation7 + $0x3f8] sm:$0xff]  ;;  %v250_v25 = vld [vmem:[#allocation7 + $0x3e0] sm:$0xff] }
  0x99   :  { %4758 = vst [vmem:[#allocation91_spill] sm:$0xff] %v3889_v6  ;;  %v244_v41 = vld [vmem:[#allocation7 + $0x3b0] sm:$0xff]  ;;  %v3910_v31 = vpack.c.bf16 %v253_v20, %v249_v21 }
  0x9a   :  { %4760 = vst [vmem:[#allocation93_spill] sm:$0xff] %v3895_v61  ;;  %v3904_v27 = vpack.c.bf16 %v244_v41, %v240_v5  ;;  %v300_v41 = vld [vmem:[#allocation2 + $0x28] sm:$0xff] }
  0x9b   :  { %2312 = vmatpush1.bf16.msra.mxu0 %v3877_v28  ;;  %2376 = vmatpush1.bf16.msra.mxu1 %v3880_v38  ;;  %v251_v28 = vld [vmem:[#allocation7 + $0x3e8] sm:$0xff]  ;;  %v3901_v38 = vpack.c.bf16 %v242_v54, %v238_v55  ;;  %4765 = vst [vmem:[#allocation98_spill] sm:$0xff] %v3910_v31  ;;  %v3913_v55 = vpack.c.bf16 %v250_v25, %v246_v0 }
  0x9c   :  { %2314 = vmatprep.subr.bf16.mxu0 %v3883_v24  ;;  %2378 = vmatprep.subr.bf16.mxu1 %v3886_v34  ;;  %4763 = vst [vmem:[#allocation96_spill] sm:$0xff] %v3904_v27  ;;  %v3907_v47 = vpack.c.bf16 %v251_v28, %v247_v2  ;;  %v252_v34 = vld [vmem:[#allocation7 + $0x3f0] sm:$0xff]  ;;  %v4768_v28 = vmov 0.0  }
  0x9d   :  { %4762 = vst [vmem:[#allocation95_spill] sm:$0xff] %v3901_v38  ;;  %4766 = vst [vmem:[#allocation99_spill] sm:$0xff] %v3913_v55  ;;  %v3916_v54 = vpack.c.bf16 %v252_v34, %v248_v59  ;;  %v301_v34 = vld [vmem:[#allocation2 + $0x30] sm:$0xff] }
  0x9e   :  { %4764 = vst [vmem:[#allocation97_spill] sm:$0xff] %v3907_v47 }
  0x9f   :  { %2316 = vmatpush1.bf16.msra.mxu0 %v3889_v6  ;;  %2380 = vmatpush1.bf16.msra.mxu1 %v3892_v15  ;;  %4767 = vst [vmem:[#allocation100_spill] sm:$0xff] %v3916_v54 }
  0xa0   :  { %2318 = vmatprep.subr.bf16.mxu0 %v3895_v61  ;;  %2382 = vmatprep.subr.bf16.mxu1 %v3898_v23 }
  0xa3   :  { %2320 = vmatpush1.bf16.msra.mxu0 %v3901_v38  ;;  %2384 = vmatpush1.bf16.msra.mxu1 %v3904_v27 }
  0xa4   :  { %2322 = vmatprep.subr.bf16.mxu0 %v3907_v47  ;;  %2386 = vmatprep.subr.bf16.mxu1 %v3910_v31 }
  0xa7   :  { %2324 = vmatpush1.bf16.msra.mxu0 %v3913_v55  ;;  %2388 = vmatpush1.bf16.msra.mxu1 %v3916_v54 }
  0xa8   :  { %2390 = vmatprep.subr.bf16.mxu0 %v3625_v4  ;;  %2422 = vmatprep.subr.bf16.mxu1 %v3635_v17 }
  0xaa   :  { %556 = vmatmul.mubr.f32.vlgmr.msra.gmra.mrb[2].mxu0 %v3734_v43  ;;  %627 = vmatmul.mubr.f32.vlgmr.msra.gmra.mrb[2].mxu1 %v3734_v43  ;;  %v299_v43 = vld [vmem:[#allocation2 + $0x20] sm:$0xff] }
  0xab   :  { %2392 = vmatpush1.bf16.msra.mxu0 %v3627_v8  ;;  %2424 = vmatpush1.bf16.msra.mxu1 %v3637_v18 }
  0xac   :  { %2394 = vmatprep.subr.bf16.mxu0 %v3629_v9  ;;  %2426 = vmatprep.subr.bf16.mxu1 %v3643_v26 }
  0xad   :  { %723 = vmatprep.mubr.f32.mxu0 %v4768_v28  ;;  %794 = vmatprep.mubr.f32.mxu1 %v4768_v28 }
  0xaf   :  { %2396 = vmatpush1.bf16.msra.mxu0 %v3633_v16  ;;  %2428 = vmatpush1.bf16.msra.mxu1 %v3646_v30 }
  0xb0   :  { %2398 = vmatprep.subr.bf16.mxu0 %v3640_v22  ;;  %2430 = vmatprep.subr.bf16.mxu1 %v3655_v39 }
  0xb3   :  { %2400 = vmatpush1.bf16.msra.mxu0 %v3649_v32  ;;  %2432 = vmatpush1.bf16.msra.mxu1 %v3658_v44 }
  0xb4   :  { %2402 = vmatprep.subr.bf16.mxu0 %v3653_v36  ;;  %2434 = vmatprep.subr.bf16.mxu1 %v3664_v48 }
  0xb7   :  { %2404 = vmatpush1.bf16.msra.mxu0 %v3661_v46  ;;  %2436 = vmatpush1.bf16.msra.mxu1 %v3670_v57 }
  0xb8   :  { %2406 = vmatprep.subr.bf16.mxu0 %v3667_v51  ;;  %2438 = vmatprep.subr.bf16.mxu1 %v3676_v60 }
  0xbb   :  { %2408 = vmatpush1.bf16.msra.mxu0 %v3673_v58  ;;  %2440 = vmatpush1.bf16.msra.mxu1 %v3682_v7 }
  0xbc   :  { %2410 = vmatprep.subr.bf16.mxu0 %v3679_v63  ;;  %2442 = vmatprep.subr.bf16.mxu1 %v3688_v12 }
  0xbf   :  { %2412 = vmatpush1.bf16.msra.mxu0 %v3685_v11  ;;  %2444 = vmatpush1.bf16.msra.mxu1 %v3694_v29 }
  0xc0   :  { %2414 = vmatprep.subr.bf16.mxu0 %v3691_v19  ;;  %2446 = vmatprep.subr.bf16.mxu1 %v3700_v35 }
  0xc3   :  { %2416 = vmatpush1.bf16.msra.mxu0 %v3697_v33  ;;  %2448 = vmatpush1.bf16.msra.mxu1 %v3706_v50 }
  0xc4   :  { %2418 = vmatprep.subr.bf16.mxu0 %v3703_v40  ;;  %2450 = vmatprep.subr.bf16.mxu1 %v3712_v53 }
  0xc7   :  { %2420 = vmatpush1.bf16.msra.mxu0 %v3709_v52  ;;  %2452 = vmatpush1.bf16.msra.mxu1 %v3718_v62  ;;  %v302_v52 = vld [vmem:[#allocation2 + $0x38] sm:$0xff] }
  0xc8   :  { %2454 = vmatprep.subr.bf16.mxu0 %v3715_v56  ;;  %2518 = vmatprep.subr.bf16.mxu1 %v3722_v1 }
 0x13d   :  { %v369_v5 = vpop.f32.mrb[0].mxu0  ;;  %v440_v2 = vpop.f32.mrb[0].mxu1 }
 0x13e   :  { %v445_v21 = vadd.f32 %v369_v5, %v299_v43  ;;  %v371_v20 = vpop.f32.mrb[1].mxu0  ;;  %v442_v0 = vpop.f32.mrb[1].mxu1  ;;  %v447_v40 = vadd.f32 %v440_v2, %v301_v34  ;;  %v4776_v2 = vld [vmem:[#allocation54_spill] sm:$0xff] }
 0x13f   :  { %v446_v25 = vadd.f32 %v371_v20, %v300_v41  ;;  %v448_v62 = vadd.f32 %v442_v0, %v302_v52  ;;  %v4777_v20 = vld [vmem:[#allocation55_spill] sm:$0xff] }
 0x140   :  { %v449_v59 = vmul.f32 0.5, %v445_v21 }
 0x141   :  { %v450_v53 = vmul.f32 0.5, %v446_v25  ;;  %v452_v56 = vmul.f32 0.5, %v448_v62  ;;  %v4778_v25 = vld [vmem:[#allocation56_spill] sm:$0xff] }
 0x142   :  { %3303 = vtanh.f32 %v449_v59  ;;  %v4779_v59 = vld [vmem:[#allocation57_spill] sm:$0xff] }
 0x143   :  { %3305 = vtanh.f32 %v450_v53 }
 0x144   :  { %3307 = vtanh.f32 %v447_v40 }
 0x145   :  { %3309 = vtanh.f32 %v452_v56  ;;  %v471_v56 = vlaneseq }
 0x147   :  { %v472_v0 = vshrl.u32 %v471_v56, 7  ;;  %v4784_v56 = vld [vmem:[#allocation62_spill] sm:$0xff] }
 0x14c   :  { %v3304_v50 = vpop.eup %3303 }
 0x14d   :  { %v3306_v1 = vpop.eup %3305  ;;  %v457_v33 = vmul.f32 0.5, %v3304_v50  ;;  %v4773_v50 = vld [vmem:[#allocation51_spill] sm:$0xff] }
 0x14e   :  { %v3308_v35 = vpop.eup %3307  ;;  %v458_v19 = vmul.f32 0.5, %v3306_v1  ;;  %v4774_v1 = vld [vmem:[#allocation52_spill] sm:$0xff] }
 0x14f   :  { %v461_v29 = vadd.f32 0.5, %v457_v33  ;;  %v3310_v53 = vpop.eup %3309  ;;  %v4771_v33 = vld [vmem:[#allocation49_spill] sm:$0xff] }
 0x150   :  { %v462_v43 = vadd.f32 0.5, %v458_v19  ;;  %v460_v34 = vmul.f32 0.5, %v3310_v53  ;;  %v4769_v19 = vld [vmem:[#allocation47_spill] sm:$0xff] }
 0x151   :  { %v466_v5 = vmul.f32 %v3308_v35, %v461_v29  ;;  %v4770_v29 = vld [vmem:[#allocation48_spill] sm:$0xff]  ;;  %v4772_v35 = vld [vmem:[#allocation50_spill] sm:$0xff]  ;;  %v254_v53 = vld [vmem:[%s4499_s3] sm:$0xf]  ;;  %s3537_s3 = smov [#allocation9]  }
 0x152   :  { %v465_v41 = vmul.f32 %v462_v43, %v3727_v10  ;;  %v464_v40 = vadd.f32 0.5, %v460_v34  ;;  %v4775_v10 = vld [vmem:[#allocation53_spill] sm:$0xff]  ;;  %v4780_v43 = vld [vmem:[#allocation58_spill] sm:$0xff]  ;;  %v477_v34 = vsub.s32 1, %v472_v0  ;;  %s2180_s30 = sshll.u32 %s3537_s3, 4  ;;  %s2181_s30 = int_to_ptr.vmem [resolvable:$true] %s2180_s30 }
 0x153   :  { %s3479_s6 = scalar_lea.vmem %s2181_s30, 256  ;;  %p3484_p11 = scmp.lt.s32.totalorder %s2181_s30, %s2181_s30 }
 0x154   :  { %v3961_v21 = vadd.f32 %v466_v5, %v465_v41  ;;  %v4781_v5 = vld [vmem:[#allocation59_spill] sm:$0xff]  ;;  %v473_v41 = vsub.s32 0, %v472_v0  ;;  %p3480_p10 = scmp.ne.s32.totalorder %s2181_s30, %s3479_s6  ;;  %p3485_p12 = scmp.lt.s32.totalorder %s3479_s6, %s3479_s6 }
 0x156   :  { %3311 = vtanh.f32 %v3961_v21  ;;  %p3486_p13 = por %p3485_p12, %p3484_p11 }
 0x158   :  { %p3487_p0 = pnand %p3486_p13, %p3480_p10 }
 0x160   :  { %v3312_v52 = vpop.eup %3311 }
 0x161   :  { %v3964_v62 = vmul.f32 %v3312_v52, %v464_v40  ;;  %v4782_v40 = vld [vmem:[#allocation60_spill] sm:$0xff]  ;;  %v4783_v52 = vld [vmem:[#allocation61_spill] sm:$0xff] }
 0x163   :  { %724 = vmatmul.mubr.f32.vlgmr.msra.gmra.mrb[4].mxu0 %v3964_v62  ;;  %795 = vmatmul.mubr.f32.vlgmr.msra.gmra.mrb[4].mxu1 %v3964_v62 }
 0x164   :  { %2456 = vmatpush1.bf16.msra.mxu0 %v3730_v37  ;;  %2520 = vmatpush1.bf16.msra.mxu1 %v3732_v42 }
 0x165   :  { %2458 = vmatprep.subr.bf16.mxu0 %v3736_v45  ;;  %2522 = vmatprep.subr.bf16.mxu1 %v3738_v49 }
 0x168   :  { %2460 = vmatpush1.bf16.msra.mxu0 %v3743_v3  ;;  %2524 = vmatpush1.bf16.msra.mxu1 %v3746_v13 }
 0x169   :  { %2462 = vmatprep.subr.bf16.mxu0 %v3749_v14  ;;  %2526 = vmatprep.subr.bf16.mxu1 %v4769_v19  ;;  %v4795_v19 = vld [vmem:[#allocation70_spill] sm:$0xff] }
 0x16c   :  { %2464 = vmatpush1.bf16.msra.mxu0 %v4770_v29  ;;  %2528 = vmatpush1.bf16.msra.mxu1 %v4771_v33  ;;  %v4793_v29 = vld [vmem:[#allocation68_spill] sm:$0xff] }
 0x16d   :  { %2466 = vmatprep.subr.bf16.mxu0 %v4772_v35  ;;  %2530 = vmatprep.subr.bf16.mxu1 %v4773_v50  ;;  %v4791_v50 = vld [vmem:[#allocation66_spill] sm:$0xff] }
 0x170   :  { %2468 = vmatpush1.bf16.msra.mxu0 %v4774_v1  ;;  %2532 = vmatpush1.bf16.msra.mxu1 %v4775_v10 }
 0x171   :  { %2470 = vmatprep.subr.bf16.mxu0 %v4776_v2  ;;  %2534 = vmatprep.subr.bf16.mxu1 %v4777_v20  ;;  %v481_v20 = vsub.s32 2, %v472_v0  ;;  %v4789_v2 = vld [vmem:[#allocation65_spill] sm:$0xff] }
 0x173   :  { %v4001_v10 = vrot.slane %v254_v53, %v481_v20 }
 0x174   :  { %2472 = vmatpush1.bf16.msra.mxu0 %v4778_v25  ;;  %2536 = vmatpush1.bf16.msra.mxu1 %v4779_v59  ;;  %v4785_v25 = vld [vmem:[#allocation63_spill] sm:$0xff]  ;;  %v3995_v59 = vrot.slane %v254_v53, %v473_v41 }
 0x175   :  { %2474 = vmatprep.subr.bf16.mxu0 %v4780_v43  ;;  %2538 = vmatprep.subr.bf16.mxu1 %v4781_v5  ;;  %v3997_v43 = vrot.slane %v254_v53, %v477_v34  ;;  %v4788_v5 = vld [vmem:[#allocation64_spill] sm:$0xff]  ;;  %4790 = vst [vmem:[#allocation103_spill] sm:$0xff] %v4001_v10 }
 0x176   :  { %4786 = vst [vmem:[#allocation101_spill] sm:$0xff] %v3995_v59 }
 0x177   :  { %4787 = vst [vmem:[#allocation102_spill] sm:$0xff] %v3997_v43 }
 0x178   :  { %2476 = vmatpush1.bf16.msra.mxu0 %v4782_v40  ;;  %2540 = vmatpush1.bf16.msra.mxu1 %v4783_v52  ;;  %v4792_v40 = vld [vmem:[#allocation67_spill] sm:$0xff] }
 0x179   :  { %2478 = vmatprep.subr.bf16.mxu0 %v4784_v56  ;;  %2542 = vmatprep.subr.bf16.mxu1 %v4785_v25  ;;  %v485_v25 = vsub.s32 3, %v472_v0  ;;  %v4800_v0 = vld [vmem:[#allocation74_spill] sm:$0xff] }
 0x17c   :  { %2480 = vmatpush1.bf16.msra.mxu0 %v4788_v5  ;;  %2544 = vmatpush1.bf16.msra.mxu1 %v4789_v2  ;;  %v4794_v5 = vld [vmem:[#allocation69_spill] sm:$0xff] }
 0x17d   :  { %v557_v1 = vpop.f32.mrb[2].mxu0  ;;  %2482 = vmatprep.subr.bf16.mxu0 %v4791_v50  ;;  %2546 = vmatprep.subr.bf16.mxu1 %v4792_v40  ;;  %v628_v52 = vpop.f32.mrb[2].mxu1  ;;  %v4796_v50 = vld [vmem:[#allocation71_spill] sm:$0xff]  ;;  %v4012_v40 = vrot.slane %v254_v53, %v485_v25  ;;  %v4806_v53 = vld [vmem:[#allocation80_spill] sm:$0xff] }
 0x17e   :  { %v558_v56 = vadd.f32 %v557_v1, %v3995_v59  ;;  %v559_v35 = vpop.f32.mrb[3].mxu0  ;;  %v630_v41 = vpop.f32.mrb[3].mxu1  ;;  %v629_v20 = vadd.f32 %v628_v52, %v4001_v10  ;;  %v4798_v1 = vld [vmem:[#allocation72_spill] sm:$0xff]  ;;  %v4803_v10 = vld [vmem:[#allocation77_spill] sm:$0xff] }
 0x17f   :  { %v560_v34 = vadd.f32 %v559_v35, %v3997_v43  ;;  %4797 = vst [vmem:[#allocation104_spill] sm:$0xff] %v4012_v40  ;;  %v4799_v35 = vld [vmem:[#allocation73_spill] sm:$0xff]  ;;  %v631_v52 = vadd.f32 %v630_v41, %v4012_v40 }
 0x180   :  { %v633_v33 = vmul.f32 0.5, %v558_v56  ;;  %2484 = vmatpush1.bf16.msra.mxu0 %v4793_v29  ;;  %2548 = vmatpush1.bf16.msra.mxu1 %v4794_v5  ;;  %v4801_v56 = vld [vmem:[#allocation75_spill] sm:$0xff] }
 0x181   :  { %v634_v2 = vmul.f32 0.5, %v560_v34  ;;  %2486 = vmatprep.subr.bf16.mxu0 %v4795_v19  ;;  %2550 = vmatprep.subr.bf16.mxu1 %v4796_v50  ;;  %v4802_v34 = vld [vmem:[#allocation76_spill] sm:$0xff]  ;;  %v4804_v50 = vld [vmem:[#allocation78_spill] sm:$0xff] }
 0x182   :  { %3313 = vtanh.f32 %v633_v33  ;;  %v4805_v33 = vld [vmem:[#allocation79_spill] sm:$0xff]  ;;  %v4812_v19 = vld [vmem:[#allocation86_spill] sm:$0xff] }
 0x183   :  { %3315 = vtanh.f32 %v634_v2  ;;  %v636_v2 = vmul.f32 0.5, %v631_v52 }
 0x184   :  { %3317 = vtanh.f32 %v629_v20  ;;  %2488 = vmatpush1.bf16.msra.mxu0 %v4798_v1  ;;  %2552 = vmatpush1.bf16.msra.mxu1 %v4799_v35  ;;  %v4807_v20 = vld [vmem:[#allocation81_spill] sm:$0xff]  ;;  %v4808_v1 = vld [vmem:[#allocation82_spill] sm:$0xff] }
 0x185   :  { %2490 = vmatprep.subr.bf16.mxu0 %v4800_v0  ;;  %2554 = vmatprep.subr.bf16.mxu1 %v4801_v56  ;;  %v4809_v56 = vld [vmem:[#allocation83_spill] sm:$0xff]  ;;  %3319 = vtanh.f32 %v636_v2 }
 0x188   :  { %2492 = vmatpush1.bf16.msra.mxu0 %v4802_v34  ;;  %2556 = vmatpush1.bf16.msra.mxu1 %v4803_v10 }
 0x189   :  { %2494 = vmatprep.subr.bf16.mxu0 %v4804_v50  ;;  %2558 = vmatprep.subr.bf16.mxu1 %v4805_v33  ;;  %v4810_v50 = vld [vmem:[#allocation84_spill] sm:$0xff]  ;;  %v4811_v33 = vld [vmem:[#allocation85_spill] sm:$0xff] }
 0x18c   :  { %v3314_v25 = vpop.eup %3313  ;;  %2496 = vmatpush1.bf16.msra.mxu0 %v4806_v53  ;;  %2560 = vmatpush1.bf16.msra.mxu1 %v4807_v20  ;;  %v4813_v53 = vld [vmem:[#allocation87_spill] sm:$0xff] }
 0x18d   :  { %v3316_v35 = vpop.eup %3315  ;;  %v641_v0 = vmul.f32 0.5, %v3314_v25  ;;  %2498 = vmatprep.subr.bf16.mxu0 %v4808_v1  ;;  %2562 = vmatprep.subr.bf16.mxu1 %v4809_v56  ;;  %v4814_v1 = vld [vmem:[#allocation88_spill] sm:$0xff]  ;;  %v4815_v56 = vld [vmem:[#allocation89_spill] sm:$0xff] }
 0x18e   :  { %v3318_v41 = vpop.eup %3317  ;;  %v642_v34 = vmul.f32 0.5, %v3316_v35  ;;  %v4816_v35 = vld [vmem:[#allocation90_spill] sm:$0xff] }
 0x18f   :  { %v645_v10 = vadd.f32 0.5, %v641_v0  ;;  %v3320_v0 = vpop.eup %3319 }
 0x190   :  { %v646_v40 = vadd.f32 0.5, %v642_v34  ;;  %2500 = vmatpush1.bf16.msra.mxu0 %v4810_v50  ;;  %2564 = vmatpush1.bf16.msra.mxu1 %v4811_v33 }
 0x191   :  { %v650_v52 = vmul.f32 %v3318_v41, %v645_v10  ;;  %2502 = vmatprep.subr.bf16.mxu0 %v4812_v19  ;;  %2566 = vmatprep.subr.bf16.mxu1 %v4813_v53  ;;  %v644_v10 = vmul.f32 0.5, %v3320_v0  ;;  %v4819_v41 = vld [vmem:[#allocation39_spill] sm:$0xff]  ;;  %v4821_v0 = vld [vmem:[#allocation41_spill] sm:$0xff] }
 0x192   :  { %v649_v20 = vmul.f32 0.0, %v646_v40 }
 0x193   :  { %v648_v40 = vadd.f32 0.5, %v644_v10  ;;  %v4822_v10 = vld [vmem:[#allocation40_spill] sm:$0xff] }
 0x194   :  { %v4031_v25 = vadd.f32 %v650_v52, %v649_v20  ;;  %2504 = vmatpush1.bf16.msra.mxu0 %v4814_v1  ;;  %2568 = vmatpush1.bf16.msra.mxu1 %v4815_v56  ;;  %v4818_v20 = vld [vmem:[#allocation36_spill] sm:$0xff]  ;;  %v4820_v52 = vld [vmem:[#allocation38_spill] sm:$0xff] }
 0x195   :  { %2506 = vmatprep.subr.bf16.mxu0 %v3883_v24  ;;  %2570 = vmatprep.subr.bf16.mxu1 %v4816_v35 }
 0x196   :  { %3321 = vtanh.f32 %v4031_v25 }
 0x198   :  { %2508 = vmatpush1.bf16.msra.mxu0 %v3889_v6  ;;  %2572 = vmatpush1.bf16.msra.mxu1 %v3892_v15 }
 0x199   :  { %2510 = vmatprep.subr.bf16.mxu0 %v3895_v61  ;;  %2574 = vmatprep.subr.bf16.mxu1 %v3898_v23 }
 0x19c   :  { %2512 = vmatpush1.bf16.msra.mxu0 %v3901_v38  ;;  %2576 = vmatpush1.bf16.msra.mxu1 %v3904_v27 }
 0x19d   :  { %2514 = vmatprep.subr.bf16.mxu0 %v3907_v47  ;;  %2578 = vmatprep.subr.bf16.mxu1 %v3910_v31 }
 0x1a0   :  { %v3322_v34 = vpop.eup %3321  ;;  %2516 = vmatpush1.bf16.msra.mxu0 %v3913_v55  ;;  %2580 = vmatpush1.bf16.msra.mxu1 %v3916_v54 }
 0x1a1   :  { %v653_v2 = vmul.f32 %v3322_v34, %v648_v40  ;;  %2582 = vmatprep.subr.bf16.mxu0 %v3625_v4  ;;  %2614 = vmatprep.subr.bf16.mxu1 %v3635_v17  ;;  %v4823_v40 = vld [vmem:[#allocation43_spill] sm:$0xff]  ;;  %v4824_v34 = vld [vmem:[#allocation42_spill] sm:$0xff] }
 0x1a3   :  { %890 = vmatprep.mubr.f32.mxu0 %v653_v2  ;;  %961 = vmatprep.mubr.f32.mxu1 %v653_v2  ;;  %v4825_v2 = vld [vmem:[#allocation45_spill] sm:$0xff] }
 0x1a4   :  { %891 = vmatmul.mubr.f32.vlgmr.msra.gmra.mrb[6].mxu0 %v3964_v62  ;;  %962 = vmatmul.mubr.f32.vlgmr.msra.gmra.mrb[6].mxu1 %v3964_v62  ;;  %v4817_v62 = vld [vmem:[#allocation37_spill] sm:$0xff] }
 0x1a5   :  { %2584 = vmatpush1.bf16.msra.mxu0 %v3627_v8  ;;  %2616 = vmatpush1.bf16.msra.mxu1 %v3637_v18 }
 0x1a6   :  { %2586 = vmatprep.subr.bf16.mxu0 %v3629_v9  ;;  %2618 = vmatprep.subr.bf16.mxu1 %v3643_v26 }
 0x1a7   :  { %1058 = vmatprep.mubr.f32.mxu0 %v4768_v28  ;;  %1129 = vmatprep.mubr.f32.mxu1 %v4768_v28 }
 0x1a9   :  { %2588 = vmatpush1.bf16.msra.mxu0 %v3633_v16  ;;  %2620 = vmatpush1.bf16.msra.mxu1 %v3646_v30 }
 0x1aa   :  { %2590 = vmatprep.subr.bf16.mxu0 %v3640_v22  ;;  %2622 = vmatprep.subr.bf16.mxu1 %v3655_v39 }
 0x1ad   :  { %2592 = vmatpush1.bf16.msra.mxu0 %v3649_v32  ;;  %2624 = vmatpush1.bf16.msra.mxu1 %v3658_v44 }
 0x1ae   :  { %2594 = vmatprep.subr.bf16.mxu0 %v3653_v36  ;;  %2626 = vmatprep.subr.bf16.mxu1 %v3664_v48 }
 0x1b1   :  { %2596 = vmatpush1.bf16.msra.mxu0 %v3661_v46  ;;  %2628 = vmatpush1.bf16.msra.mxu1 %v3670_v57 }
 0x1b2   :  { %2598 = vmatprep.subr.bf16.mxu0 %v3667_v51  ;;  %2630 = vmatprep.subr.bf16.mxu1 %v3676_v60 }
 0x1b5   :  { %2600 = vmatpush1.bf16.msra.mxu0 %v3673_v58  ;;  %2632 = vmatpush1.bf16.msra.mxu1 %v3682_v7 }
 0x1b6   :  { %2602 = vmatprep.subr.bf16.mxu0 %v3679_v63  ;;  %2634 = vmatprep.subr.bf16.mxu1 %v3688_v12  ;;  %v4826_v12 = vld [vmem:[#allocation44_spill] sm:$0xff] }
 0x1b9   :  { %2604 = vmatpush1.bf16.msra.mxu0 %v3685_v11  ;;  %2636 = vmatpush1.bf16.msra.mxu1 %v4817_v62  ;;  %v4827_v11 = vld [vmem:[#allocation46_spill] sm:$0xff]  ;;  %v655_v62 = vld [vmem:[#allocation2 + $0x40] sm:$0xff] }
 0x1ba   :  { %2606 = vmatprep.subr.bf16.mxu0 %v4818_v20  ;;  %2638 = vmatprep.subr.bf16.mxu1 %v4819_v41  ;;  %v656_v20 = vld [vmem:[#allocation2 + $0x48] sm:$0xff] }
 0x1bd   :  { %2608 = vmatpush1.bf16.msra.mxu0 %v4820_v52  ;;  %2640 = vmatpush1.bf16.msra.mxu1 %v4821_v0  ;;  %v657_v0 = vld [vmem:[#allocation2 + $0x50] sm:$0xff] }
 0x1be   :  { %2610 = vmatprep.subr.bf16.mxu0 %v4822_v10  ;;  %2642 = vmatprep.subr.bf16.mxu1 %v4823_v40 }
 0x1c1   :  { %2612 = vmatpush1.bf16.msra.mxu0 %v4824_v34  ;;  %2644 = vmatpush1.bf16.msra.mxu1 %v4825_v2  ;;  %v658_v34 = vld [vmem:[#allocation2 + $0x58] sm:$0xff] }
 0x1c2   :  { %2646 = vmatprep.subr.bf16.mxu0 %v4826_v12  ;;  %2710 = vmatprep.subr.bf16.mxu1 %v4827_v11 }
 0x236   :  { %v725_v63 = vpop.f32.mrb[4].mxu0  ;;  %v796_v41 = vpop.f32.mrb[4].mxu1 }
 0x237   :  { %v801_v7 = vadd.f32 %v725_v63, %v655_v62  ;;  %v727_v52 = vpop.f32.mrb[5].mxu0  ;;  %v798_v58 = vpop.f32.mrb[5].mxu1  ;;  %v803_v40 = vadd.f32 %v796_v41, %v657_v0  ;;  %v4836_v0 = vld [vmem:[#allocation55_spill] sm:$0xff] }
 0x238   :  { %v802_v60 = vadd.f32 %v727_v52, %v656_v20  ;;  %v804_v2 = vadd.f32 %v798_v58, %v658_v34  ;;  %v4839_v34 = vld [vmem:[#allocation58_spill] sm:$0xff] }
 0x239   :  { %v805_v10 = vmul.f32 0.5, %v801_v7 }
 0x23a   :  { %v806_v51 = vmul.f32 0.5, %v802_v60  ;;  %v808_v12 = vmul.f32 0.5, %v804_v2  ;;  %v4840_v2 = vld [vmem:[#allocation59_spill] sm:$0xff] }
 0x23b   :  { %3323 = vtanh.f32 %v805_v10  ;;  %v4837_v10 = vld [vmem:[#allocation56_spill] sm:$0xff] }
 0x23c   :  { %3325 = vtanh.f32 %v806_v51 }
 0x23d   :  { %3327 = vtanh.f32 %v803_v40  ;;  %v4838_v40 = vld [vmem:[#allocation57_spill] sm:$0xff] }
 0x23e   :  { %3329 = vtanh.f32 %v808_v12  ;;  %v4834_v12 = vld [vmem:[#allocation53_spill] sm:$0xff] }
 0x245   :  { %v3324_v57 = vpop.eup %3323 }
 0x246   :  { %v3326_v11 = vpop.eup %3325  ;;  %v813_v46 = vmul.f32 0.5, %v3324_v57  ;;  %v4832_v57 = vld [vmem:[#allocation51_spill] sm:$0xff] }
 0x247   :  { %v814_v48 = vmul.f32 0.5, %v3326_v11  ;;  %v3328_v63 = vpop.eup %3327  ;;  %v4833_v11 = vld [vmem:[#allocation52_spill] sm:$0xff] }
 0x248   :  { %v817_v36 = vadd.f32 0.5, %v813_v46  ;;  %v3330_v51 = vpop.eup %3329  ;;  %v4830_v46 = vld [vmem:[#allocation49_spill] sm:$0xff] }
 0x249   :  { %v818_v62 = vadd.f32 0.5, %v814_v48  ;;  %v816_v60 = vmul.f32 0.5, %v3330_v51  ;;  %v4831_v48 = vld [vmem:[#allocation50_spill] sm:$0xff]  ;;  %v4844_v51 = vld [vmem:[#allocation63_spill] sm:$0xff] }
 0x24a   :  { %v822_v44 = vmul.f32 %v3328_v63, %v817_v36  ;;  %v4828_v36 = vld [vmem:[#allocation47_spill] sm:$0xff]  ;;  %v4841_v63 = vld [vmem:[#allocation60_spill] sm:$0xff] }
 0x24b   :  { %v821_v20 = vmul.f32 %v818_v62, %v3961_v21  ;;  %v820_v41 = vadd.f32 0.5, %v816_v60  ;;  %v4835_v21 = vld [vmem:[#allocation54_spill] sm:$0xff]  ;;  %v4842_v62 = vld [vmem:[#allocation61_spill] sm:$0xff]  ;;  %v4845_v60 = vld [vmem:[#allocation64_spill] sm:$0xff] }
 0x24d   :  { %v4087_v7 = vadd.f32 %v822_v44, %v821_v20  ;;  %v4829_v44 = vld [vmem:[#allocation48_spill] sm:$0xff]  ;;  %v4843_v20 = vld [vmem:[#allocation62_spill] sm:$0xff] }
 0x24f   :  { %3331 = vtanh.f32 %v4087_v7 }
 0x259   :  { %v3332_v58 = vpop.eup %3331 }
 0x25a   :  { %v4090_v52 = vmul.f32 %v3332_v58, %v820_v41  ;;  %v4846_v41 = vld [vmem:[#allocation65_spill] sm:$0xff]  ;;  %v4847_v58 = vld [vmem:[#allocation66_spill] sm:$0xff] }
 0x25c   :  { %1059 = vmatmul.mubr.f32.vlgmr.msra.gmra.mrb[8].mxu0 %v4090_v52  ;;  %1130 = vmatmul.mubr.f32.vlgmr.msra.gmra.mrb[8].mxu1 %v4090_v52 }
 0x25d   :  { %2648 = vmatpush1.bf16.msra.mxu0 %v3730_v37  ;;  %2712 = vmatpush1.bf16.msra.mxu1 %v3732_v42 }
 0x25e   :  { %2650 = vmatprep.subr.bf16.mxu0 %v3736_v45  ;;  %2714 = vmatprep.subr.bf16.mxu1 %v3738_v49 }
 0x261   :  { %2652 = vmatpush1.bf16.msra.mxu0 %v3743_v3  ;;  %2716 = vmatpush1.bf16.msra.mxu1 %v3746_v13 }
 0x262   :  { %2654 = vmatprep.subr.bf16.mxu0 %v3749_v14  ;;  %2718 = vmatprep.subr.bf16.mxu1 %v4828_v36 }
 0x265   :  { %2656 = vmatpush1.bf16.msra.mxu0 %v4829_v44  ;;  %2720 = vmatpush1.bf16.msra.mxu1 %v4830_v46 }
 0x266   :  { %2658 = vmatprep.subr.bf16.mxu0 %v4831_v48  ;;  %2722 = vmatprep.subr.bf16.mxu1 %v4832_v57 }
 0x269   :  { %2660 = vmatpush1.bf16.msra.mxu0 %v4833_v11  ;;  %2724 = vmatpush1.bf16.msra.mxu1 %v4834_v12 }
 0x26a   :  { %2662 = vmatprep.subr.bf16.mxu0 %v4835_v21  ;;  %2726 = vmatprep.subr.bf16.mxu1 %v4836_v0  ;;  %v4852_v21 = vld [vmem:[#allocation72_spill] sm:$0xff] }
 0x26d   :  { %2664 = vmatpush1.bf16.msra.mxu0 %v4837_v10  ;;  %2728 = vmatpush1.bf16.msra.mxu1 %v4838_v40  ;;  %v4848_v10 = vld [vmem:[#allocation67_spill] sm:$0xff] }
 0x26e   :  { %2666 = vmatprep.subr.bf16.mxu0 %v4839_v34  ;;  %2730 = vmatprep.subr.bf16.mxu1 %v4840_v2 }
 0x271   :  { %2668 = vmatpush1.bf16.msra.mxu0 %v4841_v63  ;;  %2732 = vmatpush1.bf16.msra.mxu1 %v4842_v62 }
 0x272   :  { %2670 = vmatprep.subr.bf16.mxu0 %v4843_v20  ;;  %2734 = vmatprep.subr.bf16.mxu1 %v4844_v51 }
 0x275   :  { %2672 = vmatpush1.bf16.msra.mxu0 %v4845_v60  ;;  %2736 = vmatpush1.bf16.msra.mxu1 %v4846_v41  ;;  %v4849_v60 = vld [vmem:[#allocation70_spill] sm:$0xff]  ;;  %v4850_v41 = vld [vmem:[#allocation71_spill] sm:$0xff] }
 0x276   :  { %2674 = vmatprep.subr.bf16.mxu0 %v4847_v58  ;;  %2738 = vmatprep.subr.bf16.mxu1 %v4848_v10  ;;  %v4851_v10 = vld [vmem:[#allocation103_spill] sm:$0xff] }
 0x277   :  { %v892_v40 = vpop.f32.mrb[6].mxu0  ;;  %v963_v34 = vpop.f32.mrb[6].mxu1 }
 0x278   :  { %v893_v2 = vadd.f32 %v892_v40, %v3995_v59  ;;  %v894_v0 = vpop.f32.mrb[7].mxu0  ;;  %v965_v63 = vpop.f32.mrb[7].mxu1  ;;  %v964_v20 = vadd.f32 %v963_v34, %v4851_v10  ;;  %v4853_v40 = vld [vmem:[#allocation73_spill] sm:$0xff]  ;;  %v4854_v59 = vld [vmem:[#allocation74_spill] sm:$0xff] }
 0x279   :  { %v895_v62 = vadd.f32 %v894_v0, %v3997_v43  ;;  %2676 = vmatpush1.bf16.msra.mxu0 %v4793_v29  ;;  %2740 = vmatpush1.bf16.msra.mxu1 %v4794_v5  ;;  %v4855_v0 = vld [vmem:[#allocation75_spill] sm:$0xff]  ;;  %v4856_v43 = vld [vmem:[#allocation104_spill] sm:$0xff] }
 0x27a   :  { %v968_v51 = vmul.f32 0.5, %v893_v2  ;;  %2678 = vmatprep.subr.bf16.mxu0 %v4849_v60  ;;  %2742 = vmatprep.subr.bf16.mxu1 %v4850_v41  ;;  %v966_v2 = vadd.f32 %v965_v63, %v4856_v43  ;;  %v4857_v5 = vld [vmem:[#allocation76_spill] sm:$0xff]  ;;  %v4858_v60 = vld [vmem:[#allocation77_spill] sm:$0xff] }
 0x27b   :  { %v969_v58 = vmul.f32 0.5, %v895_v62  ;;  %v4859_v62 = vld [vmem:[#allocation78_spill] sm:$0xff] }
 0x27c   :  { %3333 = vtanh.f32 %v968_v51  ;;  %v4860_v51 = vld [vmem:[#allocation79_spill] sm:$0xff]  ;;  %v971_v34 = vmul.f32 0.5, %v966_v2 }
 0x27d   :  { %3335 = vtanh.f32 %v969_v58  ;;  %2680 = vmatpush1.bf16.msra.mxu0 %v4852_v21  ;;  %2744 = vmatpush1.bf16.msra.mxu1 %v4853_v40  ;;  %v4861_v58 = vld [vmem:[#allocation80_spill] sm:$0xff]  ;;  %v4862_v21 = vld [vmem:[#allocation81_spill] sm:$0xff] }
 0x27e   :  { %2682 = vmatprep.subr.bf16.mxu0 %v4854_v59  ;;  %2746 = vmatprep.subr.bf16.mxu1 %v4855_v0  ;;  %3337 = vtanh.f32 %v964_v20  ;;  %v4863_v59 = vld [vmem:[#allocation82_spill] sm:$0xff]  ;;  %v4864_v0 = vld [vmem:[#allocation83_spill] sm:$0xff] }
 0x27f   :  { %3339 = vtanh.f32 %v971_v34  ;;  %v4867_v34 = vld [vmem:[#allocation27_spill] sm:$0xff] }
 0x281   :  { %2684 = vmatpush1.bf16.msra.mxu0 %v4857_v5  ;;  %2748 = vmatpush1.bf16.msra.mxu1 %v4858_v60 }
 0x282   :  { %2686 = vmatprep.subr.bf16.mxu0 %v4859_v62  ;;  %2750 = vmatprep.subr.bf16.mxu1 %v4860_v51 }
 0x285   :  { %2688 = vmatpush1.bf16.msra.mxu0 %v4861_v58  ;;  %2752 = vmatpush1.bf16.msra.mxu1 %v4862_v21 }
 0x286   :  { %v3334_v40 = vpop.eup %3333  ;;  %2690 = vmatprep.subr.bf16.mxu0 %v4863_v59  ;;  %2754 = vmatprep.subr.bf16.mxu1 %v4864_v0 }
 0x287   :  { %v3336_v20 = vpop.eup %3335  ;;  %v976_v63 = vmul.f32 0.5, %v3334_v40 }
 0x288   :  { %v977_v43 = vmul.f32 0.5, %v3336_v20  ;;  %v3338_v51 = vpop.eup %3337  ;;  %v4868_v20 = vld [vmem:[#allocation26_spill] sm:$0xff] }
 0x289   :  { %v980_v5 = vadd.f32 0.5, %v976_v63  ;;  %2692 = vmatpush1.bf16.msra.mxu0 %v4810_v50  ;;  %2756 = vmatpush1.bf16.msra.mxu1 %v4811_v33  ;;  %v4869_v63 = vld [vmem:[#allocation29_spill] sm:$0xff] }
 0x28a   :  { %v981_v2 = vadd.f32 0.5, %v977_v43  ;;  %2694 = vmatprep.subr.bf16.mxu0 %v4812_v19  ;;  %2758 = vmatprep.subr.bf16.mxu1 %v4813_v53  ;;  %v3340_v43 = vpop.eup %3339 }
 0x28b   :  { %v985_v21 = vmul.f32 %v3338_v51, %v980_v5  ;;  %v979_v5 = vmul.f32 0.5, %v3340_v43  ;;  %v4866_v51 = vld [vmem:[#allocation23_spill] sm:$0xff] }
 0x28c   :  { %v984_v59 = vmul.f32 %v981_v2, %v4031_v25  ;;  %v4870_v2 = vld [vmem:[#allocation28_spill] sm:$0xff]  ;;  %v4871_v43 = vld [vmem:[#allocation31_spill] sm:$0xff] }
 0x28d   :  { %2696 = vmatpush1.bf16.msra.mxu0 %v4814_v1  ;;  %2760 = vmatpush1.bf16.msra.mxu1 %v4815_v56 }
 0x28e   :  { %v4149_v40 = vadd.f32 %v985_v21, %v984_v59  ;;  %2698 = vmatprep.subr.bf16.mxu0 %v3883_v24  ;;  %2762 = vmatprep.subr.bf16.mxu1 %v4816_v35  ;;  %v983_v59 = vadd.f32 0.5, %v979_v5  ;;  %v4872_v5 = vld [vmem:[#allocation30_spill] sm:$0xff] }
 0x290   :  { %3341 = vtanh.f32 %v4149_v40 }
 0x291   :  { %2700 = vmatpush1.bf16.msra.mxu0 %v3889_v6  ;;  %2764 = vmatpush1.bf16.msra.mxu1 %v3892_v15 }
 0x292   :  { %2702 = vmatprep.subr.bf16.mxu0 %v3895_v61  ;;  %2766 = vmatprep.subr.bf16.mxu1 %v3898_v23 }
 0x295   :  { %2704 = vmatpush1.bf16.msra.mxu0 %v3901_v38  ;;  %2768 = vmatpush1.bf16.msra.mxu1 %v3904_v27 }
 0x296   :  { %2706 = vmatprep.subr.bf16.mxu0 %v3907_v47  ;;  %2770 = vmatprep.subr.bf16.mxu1 %v3910_v31 }
 0x299   :  { %2708 = vmatpush1.bf16.msra.mxu0 %v3913_v55  ;;  %2772 = vmatpush1.bf16.msra.mxu1 %v3916_v54 }
 0x29a   :  { %v3342_v25 = vpop.eup %3341  ;;  %2774 = vmatprep.subr.bf16.mxu0 %v3625_v4  ;;  %2806 = vmatprep.subr.bf16.mxu1 %v3635_v17 }
 0x29b   :  { %v988_v21 = vmul.f32 %v3342_v25, %v983_v59  ;;  %v4873_v59 = vld [vmem:[#allocation33_spill] sm:$0xff]  ;;  %v4874_v25 = vld [vmem:[#allocation32_spill] sm:$0xff] }
 0x29d   :  { %1225 = vmatprep.mubr.f32.mxu0 %v988_v21  ;;  %1296 = vmatprep.mubr.f32.mxu1 %v988_v21  ;;  %v4875_v21 = vld [vmem:[#allocation35_spill] sm:$0xff] }
 0x29e   :  { %1226 = vmatmul.mubr.f32.vlgmr.msra.gmra.mrb[10].mxu0 %v4090_v52  ;;  %1297 = vmatmul.mubr.f32.vlgmr.msra.gmra.mrb[10].mxu1 %v4090_v52  ;;  %v4865_v52 = vld [vmem:[#allocation25_spill] sm:$0xff] }
 0x29f   :  { %2776 = vmatpush1.bf16.msra.mxu0 %v3627_v8  ;;  %2808 = vmatpush1.bf16.msra.mxu1 %v3637_v18 }
 0x2a0   :  { %2778 = vmatprep.subr.bf16.mxu0 %v3629_v9  ;;  %2810 = vmatprep.subr.bf16.mxu1 %v3643_v26 }
 0x2a1   :  { %1393 = vmatprep.mubr.f32.mxu0 %v4768_v28  ;;  %1464 = vmatprep.mubr.f32.mxu1 %v4768_v28 }
 0x2a3   :  { %2780 = vmatpush1.bf16.msra.mxu0 %v3633_v16  ;;  %2812 = vmatpush1.bf16.msra.mxu1 %v3646_v30 }
 0x2a4   :  { %2782 = vmatprep.subr.bf16.mxu0 %v3640_v22  ;;  %2814 = vmatprep.subr.bf16.mxu1 %v3655_v39 }
 0x2a7   :  { %2784 = vmatpush1.bf16.msra.mxu0 %v3649_v32  ;;  %2816 = vmatpush1.bf16.msra.mxu1 %v4865_v52  ;;  %v4876_v52 = vld [vmem:[#allocation34_spill] sm:$0xff] }
 0x2a8   :  { %2786 = vmatprep.subr.bf16.mxu0 %v4866_v51  ;;  %2818 = vmatprep.subr.bf16.mxu1 %v4867_v34  ;;  %v4877_v51 = vld [vmem:[#allocation37_spill] sm:$0xff]  ;;  %v4878_v34 = vld [vmem:[#allocation36_spill] sm:$0xff] }
 0x2ab   :  { %2788 = vmatpush1.bf16.msra.mxu0 %v4868_v20  ;;  %2820 = vmatpush1.bf16.msra.mxu1 %v4869_v63  ;;  %v4879_v20 = vld [vmem:[#allocation39_spill] sm:$0xff]  ;;  %v4880_v63 = vld [vmem:[#allocation38_spill] sm:$0xff] }
 0x2ac   :  { %2790 = vmatprep.subr.bf16.mxu0 %v4870_v2  ;;  %2822 = vmatprep.subr.bf16.mxu1 %v4871_v43  ;;  %v4881_v2 = vld [vmem:[#allocation41_spill] sm:$0xff]  ;;  %v4882_v43 = vld [vmem:[#allocation40_spill] sm:$0xff] }
 0x2af   :  { %2792 = vmatpush1.bf16.msra.mxu0 %v4872_v5  ;;  %2824 = vmatpush1.bf16.msra.mxu1 %v4873_v59  ;;  %v4883_v5 = vld [vmem:[#allocation43_spill] sm:$0xff]  ;;  %v4884_v59 = vld [vmem:[#allocation42_spill] sm:$0xff] }
 0x2b0   :  { %2794 = vmatprep.subr.bf16.mxu0 %v4874_v25  ;;  %2826 = vmatprep.subr.bf16.mxu1 %v4875_v21  ;;  %v4885_v25 = vld [vmem:[#allocation45_spill] sm:$0xff]  ;;  %v4886_v21 = vld [vmem:[#allocation44_spill] sm:$0xff] }
 0x2b3   :  { %2796 = vmatpush1.bf16.msra.mxu0 %v4876_v52  ;;  %2828 = vmatpush1.bf16.msra.mxu1 %v4877_v51  ;;  %v4887_v52 = vld [vmem:[#allocation46_spill] sm:$0xff]  ;;  %v990_v51 = vld [vmem:[#allocation2 + $0x60] sm:$0xff] }
 0x2b4   :  { %2798 = vmatprep.subr.bf16.mxu0 %v4878_v34  ;;  %2830 = vmatprep.subr.bf16.mxu1 %v4879_v20  ;;  %v991_v34 = vld [vmem:[#allocation2 + $0x68] sm:$0xff] }
 0x2b7   :  { %2800 = vmatpush1.bf16.msra.mxu0 %v4880_v63  ;;  %2832 = vmatpush1.bf16.msra.mxu1 %v4881_v2  ;;  %v992_v2 = vld [vmem:[#allocation2 + $0x70] sm:$0xff] }
 0x2b8   :  { %2802 = vmatprep.subr.bf16.mxu0 %v4882_v43  ;;  %2834 = vmatprep.subr.bf16.mxu1 %v4883_v5 }
 0x2bb   :  { %2804 = vmatpush1.bf16.msra.mxu0 %v4884_v59  ;;  %2836 = vmatpush1.bf16.msra.mxu1 %v4885_v25  ;;  %v993_v59 = vld [vmem:[#allocation2 + $0x78] sm:$0xff] }
 0x2bc   :  { %2838 = vmatprep.subr.bf16.mxu0 %v4886_v21  ;;  %2902 = vmatprep.subr.bf16.mxu1 %v4887_v52 }
 0x32f   :  { %v1060_v32 = vpop.f32.mrb[8].mxu0  ;;  %v1131_v20 = vpop.f32.mrb[8].mxu1 }
 0x330   :  { %v1136_v39 = vadd.f32 %v1060_v32, %v990_v51  ;;  %v1062_v63 = vpop.f32.mrb[9].mxu0  ;;  %v1133_v22 = vpop.f32.mrb[9].mxu1  ;;  %v1138_v5 = vadd.f32 %v1131_v20, %v992_v2  ;;  %v4895_v2 = vld [vmem:[#allocation61_spill] sm:$0xff] }
 0x331   :  { %v1137_v30 = vadd.f32 %v1062_v63, %v991_v34  ;;  %v1139_v25 = vadd.f32 %v1133_v22, %v993_v59  ;;  %v4898_v59 = vld [vmem:[#allocation64_spill] sm:$0xff] }
 0x332   :  { %v1140_v43 = vmul.f32 0.5, %v1136_v39 }
 0x333   :  { %v1141_v16 = vmul.f32 0.5, %v1137_v30  ;;  %v1143_v21 = vmul.f32 0.5, %v1139_v25  ;;  %v4899_v25 = vld [vmem:[#allocation65_spill] sm:$0xff] }
 0x334   :  { %3343 = vtanh.f32 %v1140_v43  ;;  %v4896_v43 = vld [vmem:[#allocation62_spill] sm:$0xff] }
 0x335   :  { %3345 = vtanh.f32 %v1141_v16 }
 0x336   :  { %3347 = vtanh.f32 %v1138_v5  ;;  %v4897_v5 = vld [vmem:[#allocation63_spill] sm:$0xff] }
 0x337   :  { %3349 = vtanh.f32 %v1143_v21  ;;  %v4900_v21 = vld [vmem:[#allocation66_spill] sm:$0xff] }
 0x33e   :  { %v3344_v28 = vpop.eup %3343 }
 0x33f   :  { %v3346_v52 = vpop.eup %3345  ;;  %v1148_v26 = vmul.f32 0.5, %v3344_v28  ;;  %v4892_v28 = vld [vmem:[#allocation58_spill] sm:$0xff] }
 0x340   :  { %v1149_v9 = vmul.f32 0.5, %v3346_v52  ;;  %v3348_v32 = vpop.eup %3347  ;;  %v4894_v52 = vld [vmem:[#allocation60_spill] sm:$0xff] }
 0x341   :  { %v1152_v18 = vadd.f32 0.5, %v1148_v26  ;;  %v3350_v16 = vpop.eup %3349  ;;  %v4891_v26 = vld [vmem:[#allocation57_spill] sm:$0xff] }
 0x342   :  { %v1153_v51 = vadd.f32 0.5, %v1149_v9  ;;  %v1151_v30 = vmul.f32 0.5, %v3350_v16  ;;  %v4889_v9 = vld [vmem:[#allocation55_spill] sm:$0xff]  ;;  %v4902_v16 = vld [vmem:[#allocation101_spill] sm:$0xff] }
 0x343   :  { %v1157_v8 = vmul.f32 %v3348_v32, %v1152_v18  ;;  %v4890_v18 = vld [vmem:[#allocation56_spill] sm:$0xff]  ;;  %v4901_v32 = vld [vmem:[#allocation67_spill] sm:$0xff] }
 0x344   :  { %v1156_v34 = vmul.f32 %v1153_v51, %v4087_v7  ;;  %v1155_v20 = vadd.f32 0.5, %v1151_v30  ;;  %v4893_v7 = vld [vmem:[#allocation59_spill] sm:$0xff] }
 0x346   :  { %v4203_v39 = vadd.f32 %v1157_v8, %v1156_v34  ;;  %v4888_v8 = vld [vmem:[#allocation54_spill] sm:$0xff] }
 0x348   :  { %3351 = vtanh.f32 %v4203_v39 }
 0x352   :  { %v3352_v22 = vpop.eup %3351 }
 0x353   :  { %v4206_v63 = vmul.f32 %v3352_v22, %v1155_v20 }
 0x355   :  { %1394 = vmatmul.mubr.f32.vlgmr.msra.gmra.mrb[12].mxu0 %v4206_v63  ;;  %1465 = vmatmul.mubr.f32.vlgmr.msra.gmra.mrb[12].mxu1 %v4206_v63 }
 0x356   :  { %2840 = vmatpush1.bf16.msra.mxu0 %v3730_v37  ;;  %2904 = vmatpush1.bf16.msra.mxu1 %v3732_v42 }
 0x357   :  { %2842 = vmatprep.subr.bf16.mxu0 %v3736_v45  ;;  %2906 = vmatprep.subr.bf16.mxu1 %v3738_v49 }
 0x35a   :  { %2844 = vmatpush1.bf16.msra.mxu0 %v3743_v3  ;;  %2908 = vmatpush1.bf16.msra.mxu1 %v3746_v13 }
 0x35b   :  { %2846 = vmatprep.subr.bf16.mxu0 %v3749_v14  ;;  %2910 = vmatprep.subr.bf16.mxu1 %v4828_v36 }
 0x35e   :  { %2848 = vmatpush1.bf16.msra.mxu0 %v4829_v44  ;;  %2912 = vmatpush1.bf16.msra.mxu1 %v4830_v46 }
 0x35f   :  { %2850 = vmatprep.subr.bf16.mxu0 %v4831_v48  ;;  %2914 = vmatprep.subr.bf16.mxu1 %v4832_v57 }
 0x362   :  { %2852 = vmatpush1.bf16.msra.mxu0 %v4833_v11  ;;  %2916 = vmatpush1.bf16.msra.mxu1 %v4834_v12 }
 0x363   :  { %2854 = vmatprep.subr.bf16.mxu0 %v4888_v8  ;;  %2918 = vmatprep.subr.bf16.mxu1 %v4889_v9 }
 0x366   :  { %2856 = vmatpush1.bf16.msra.mxu0 %v4890_v18  ;;  %2920 = vmatpush1.bf16.msra.mxu1 %v4891_v26 }
 0x367   :  { %2858 = vmatprep.subr.bf16.mxu0 %v4892_v28  ;;  %2922 = vmatprep.subr.bf16.mxu1 %v4893_v7 }
 0x36a   :  { %2860 = vmatpush1.bf16.msra.mxu0 %v4894_v52  ;;  %2924 = vmatpush1.bf16.msra.mxu1 %v4895_v2  ;;  %v4903_v2 = vld [vmem:[#allocation69_spill] sm:$0xff]  ;;  %v4905_v52 = vld [vmem:[#allocation70_spill] sm:$0xff] }
 0x36b   :  { %2862 = vmatprep.subr.bf16.mxu0 %v4896_v43  ;;  %2926 = vmatprep.subr.bf16.mxu1 %v4897_v5  ;;  %v4904_v43 = vld [vmem:[#allocation102_spill] sm:$0xff] }
 0x36e   :  { %2864 = vmatpush1.bf16.msra.mxu0 %v4898_v59  ;;  %2928 = vmatpush1.bf16.msra.mxu1 %v4899_v25  ;;  %v4906_v59 = vld [vmem:[#allocation72_spill] sm:$0xff] }
 0x36f   :  { %2866 = vmatprep.subr.bf16.mxu0 %v4900_v21  ;;  %2930 = vmatprep.subr.bf16.mxu1 %v4901_v32 }
 0x371   :  { %v1227_v51 = vpop.f32.mrb[10].mxu0  ;;  %v1298_v34 = vpop.f32.mrb[10].mxu1 }
 0x372   :  { %v1228_v30 = vadd.f32 %v1227_v51, %v4902_v16  ;;  %v1229_v20 = vpop.f32.mrb[11].mxu0  ;;  %v1300_v22 = vpop.f32.mrb[11].mxu1  ;;  %2868 = vmatpush1.bf16.msra.mxu0 %v4793_v29  ;;  %2932 = vmatpush1.bf16.msra.mxu1 %v4903_v2  ;;  %v1299_v32 = vadd.f32 %v1298_v34, %v4851_v10  ;;  %v4907_v51 = vld [vmem:[#allocation73_spill] sm:$0xff]  ;;  %v4908_v16 = vld [vmem:[#allocation74_spill] sm:$0xff]  ;;  %v4909_v29 = vld [vmem:[#allocation75_spill] sm:$0xff] }
 0x373   :  { %v1230_v5 = vadd.f32 %v1229_v20, %v4904_v43  ;;  %2870 = vmatprep.subr.bf16.mxu0 %v4905_v52  ;;  %2934 = vmatprep.subr.bf16.mxu1 %v4850_v41  ;;  %v4910_v20 = vld [vmem:[#allocation104_spill] sm:$0xff]  ;;  %v4913_v34 = vld [vmem:[#allocation81_spill] sm:$0xff] }
 0x374   :  { %v1303_v25 = vmul.f32 0.5, %v1228_v30  ;;  %v1301_v43 = vadd.f32 %v1300_v22, %v4910_v20  ;;  %v4911_v52 = vld [vmem:[#allocation76_spill] sm:$0xff] }
 0x375   :  { %v1304_v21 = vmul.f32 0.5, %v1230_v5  ;;  %v4912_v5 = vld [vmem:[#allocation79_spill] sm:$0xff] }
 0x376   :  { %3353 = vtanh.f32 %v1303_v25  ;;  %2872 = vmatpush1.bf16.msra.mxu0 %v4906_v59  ;;  %2936 = vmatpush1.bf16.msra.mxu1 %v4907_v51  ;;  %v1306_v25 = vmul.f32 0.5, %v1301_v43 }
 0x377   :  { %3355 = vtanh.f32 %v1304_v21  ;;  %2874 = vmatprep.subr.bf16.mxu0 %v4908_v16  ;;  %2938 = vmatprep.subr.bf16.mxu1 %v4909_v29  ;;  %v4914_v21 = vld [vmem:[#allocation82_spill] sm:$0xff] }
 0x378   :  { %3357 = vtanh.f32 %v1299_v32 }
 0x379   :  { %3359 = vtanh.f32 %v1306_v25 }
 0x37a   :  { %2876 = vmatpush1.bf16.msra.mxu0 %v4911_v52  ;;  %2940 = vmatpush1.bf16.msra.mxu1 %v4858_v60 }
 0x37b   :  { %2878 = vmatprep.subr.bf16.mxu0 %v4859_v62  ;;  %2942 = vmatprep.subr.bf16.mxu1 %v4912_v5 }
 0x37e   :  { %2880 = vmatpush1.bf16.msra.mxu0 %v4861_v58  ;;  %2944 = vmatpush1.bf16.msra.mxu1 %v4913_v34 }
 0x37f   :  { %2882 = vmatprep.subr.bf16.mxu0 %v4914_v21  ;;  %2946 = vmatprep.subr.bf16.mxu1 %v4864_v0 }
 0x380   :  { %v3354_v32 = vpop.eup %3353 }
 0x381   :  { %v3356_v30 = vpop.eup %3355  ;;  %v1311_v22 = vmul.f32 0.5, %v3354_v32  ;;  %v4916_v32 = vld [vmem:[#allocation18_spill] sm:$0xff] }
 0x382   :  { %v1312_v20 = vmul.f32 0.5, %v3356_v30  ;;  %2884 = vmatpush1.bf16.msra.mxu0 %v4810_v50  ;;  %2948 = vmatpush1.bf16.msra.mxu1 %v4811_v33  ;;  %v3358_v43 = vpop.eup %3357  ;;  %v4917_v30 = vld [vmem:[#allocation16_spill] sm:$0xff] }
 0x383   :  { %v1315_v62 = vadd.f32 0.5, %v1311_v22  ;;  %2886 = vmatprep.subr.bf16.mxu0 %v4812_v19  ;;  %2950 = vmatprep.subr.bf16.mxu1 %v4813_v53  ;;  %v4918_v22 = vld [vmem:[#allocation20_spill] sm:$0xff] }
 0x384   :  { %v1316_v34 = vadd.f32 0.5, %v1312_v20 }
 0x385   :  { %v1320_v58 = vmul.f32 %v3358_v43, %v1315_v62  ;;  %v3360_v62 = vpop.eup %3359  ;;  %v4919_v43 = vmov 0.0  }
 0x386   :  { %v1319_v21 = vmul.f32 %v1316_v34, %v4149_v40  ;;  %2888 = vmatpush1.bf16.msra.mxu0 %v4814_v1  ;;  %2952 = vmatpush1.bf16.msra.mxu1 %v4815_v56  ;;  %v1314_v40 = vmul.f32 0.5, %v3360_v62  ;;  %v4922_v62 = vld [vmem:[#allocation19_spill] sm:$0xff] }
 0x387   :  { %2890 = vmatprep.subr.bf16.mxu0 %v3883_v24  ;;  %2954 = vmatprep.subr.bf16.mxu1 %v4816_v35 }
 0x388   :  { %v4267_v25 = vadd.f32 %v1320_v58, %v1319_v21  ;;  %v1318_v58 = vadd.f32 0.5, %v1314_v40  ;;  %v4915_v21 = vld [vmem:[#allocation15_spill] sm:$0xff]  ;;  %v4923_v40 = vld [vmem:[#allocation24_spill] sm:$0xff] }
 0x38a   :  { %3361 = vtanh.f32 %v4267_v25  ;;  %2892 = vmatpush1.bf16.msra.mxu0 %v3889_v6  ;;  %2956 = vmatpush1.bf16.msra.mxu1 %v3892_v15 }
 0x38b   :  { %2894 = vmatprep.subr.bf16.mxu0 %v3895_v61  ;;  %2958 = vmatprep.subr.bf16.mxu1 %v3898_v23 }
 0x38e   :  { %2896 = vmatpush1.bf16.msra.mxu0 %v3901_v38  ;;  %2960 = vmatpush1.bf16.msra.mxu1 %v3904_v27 }
 0x38f   :  { %2898 = vmatprep.subr.bf16.mxu0 %v3907_v47  ;;  %2962 = vmatprep.subr.bf16.mxu1 %v3910_v31 }
 0x392   :  { %2900 = vmatpush1.bf16.msra.mxu0 %v3913_v55  ;;  %2964 = vmatpush1.bf16.msra.mxu1 %v3916_v54 }
 0x393   :  { %2966 = vmatprep.subr.bf16.mxu0 %v3625_v4  ;;  %2998 = vmatprep.subr.bf16.mxu1 %v3635_v17  ;;  %v4920_v4 = vld [vmem:[#allocation17_spill] sm:$0xff] }
 0x394   :  { %v3362_v20 = vpop.eup %3361  ;;  %v4921_v17 = vld [vmem:[#allocation21_spill] sm:$0xff] }
 0x395   :  { %v1323_v34 = vmul.f32 %v3362_v20, %v1318_v58  ;;  %v4925_v58 = vld [vmem:[#allocation25_spill] sm:$0xff]  ;;  %v4926_v20 = vld [vmem:[#allocation23_spill] sm:$0xff] }
 0x397   :  { %1560 = vmatprep.mubr.f32.mxu0 %v1323_v34  ;;  %1631 = vmatprep.mubr.f32.mxu1 %v1323_v34  ;;  %v4927_v34 = vld [vmem:[#allocation27_spill] sm:$0xff] }
 0x398   :  { %1561 = vmatmul.mubr.f32.vlgmr.msra.gmra.mrb[14].mxu0 %v4206_v63  ;;  %1632 = vmatmul.mubr.f32.vlgmr.msra.gmra.mrb[14].mxu1 %v4206_v63  ;;  %v4924_v63 = vld [vmem:[#allocation22_spill] sm:$0xff] }
 0x399   :  { %2968 = vmatpush1.bf16.msra.mxu0 %v4915_v21  ;;  %3000 = vmatpush1.bf16.msra.mxu1 %v4916_v32  ;;  %v4928_v21 = vld [vmem:[#allocation26_spill] sm:$0xff]  ;;  %v4929_v32 = vld [vmem:[#allocation29_spill] sm:$0xff] }
 0x39a   :  { %2970 = vmatprep.subr.bf16.mxu0 %v4917_v30  ;;  %3002 = vmatprep.subr.bf16.mxu1 %v4918_v22  ;;  %v4930_v30 = vld [vmem:[#allocation28_spill] sm:$0xff]  ;;  %v4931_v22 = vld [vmem:[#allocation31_spill] sm:$0xff] }
 0x39b   :  { %1728 = vmatprep.mubr.f32.mxu0 %v4919_v43  ;;  %1799 = vmatprep.mubr.f32.mxu1 %v4919_v43  ;;  %v4932_v43 = vld [vmem:[#allocation30_spill] sm:$0xff] }
 0x39d   :  { %2972 = vmatpush1.bf16.msra.mxu0 %v4920_v4  ;;  %3004 = vmatpush1.bf16.msra.mxu1 %v4921_v17  ;;  %v4933_v4 = vld [vmem:[#allocation33_spill] sm:$0xff]  ;;  %v4934_v17 = vld [vmem:[#allocation32_spill] sm:$0xff] }
 0x39e   :  { %2974 = vmatprep.subr.bf16.mxu0 %v4922_v62  ;;  %3006 = vmatprep.subr.bf16.mxu1 %v4923_v40  ;;  %v4935_v62 = vld [vmem:[#allocation35_spill] sm:$0xff]  ;;  %v4936_v40 = vld [vmem:[#allocation34_spill] sm:$0xff] }
 0x3a1   :  { %2976 = vmatpush1.bf16.msra.mxu0 %v4924_v63  ;;  %3008 = vmatpush1.bf16.msra.mxu1 %v4925_v58  ;;  %v4937_v63 = vld [vmem:[#allocation37_spill] sm:$0xff]  ;;  %v4938_v58 = vld [vmem:[#allocation36_spill] sm:$0xff] }
 0x3a2   :  { %2978 = vmatprep.subr.bf16.mxu0 %v4926_v20  ;;  %3010 = vmatprep.subr.bf16.mxu1 %v4927_v34  ;;  %v4939_v20 = vld [vmem:[#allocation39_spill] sm:$0xff]  ;;  %v4940_v34 = vld [vmem:[#allocation38_spill] sm:$0xff] }
 0x3a5   :  { %2980 = vmatpush1.bf16.msra.mxu0 %v4928_v21  ;;  %3012 = vmatpush1.bf16.msra.mxu1 %v4929_v32  ;;  %v4941_v21 = vld [vmem:[#allocation41_spill] sm:$0xff]  ;;  %v4942_v32 = vld [vmem:[#allocation40_spill] sm:$0xff] }
 0x3a6   :  { %2982 = vmatprep.subr.bf16.mxu0 %v4930_v30  ;;  %3014 = vmatprep.subr.bf16.mxu1 %v4931_v22  ;;  %v4943_v30 = vld [vmem:[#allocation43_spill] sm:$0xff]  ;;  %v4944_v22 = vld [vmem:[#allocation42_spill] sm:$0xff] }
 0x3a9   :  { %2984 = vmatpush1.bf16.msra.mxu0 %v4932_v43  ;;  %3016 = vmatpush1.bf16.msra.mxu1 %v4933_v4  ;;  %v4945_v43 = vld [vmem:[#allocation45_spill] sm:$0xff]  ;;  %v4946_v4 = vld [vmem:[#allocation44_spill] sm:$0xff] }
 0x3aa   :  { %2986 = vmatprep.subr.bf16.mxu0 %v4934_v17  ;;  %3018 = vmatprep.subr.bf16.mxu1 %v4935_v62  ;;  %v4947_v17 = vld [vmem:[#allocation46_spill] sm:$0xff]  ;;  %v1325_v62 = vld [vmem:[#allocation2 + $0x80] sm:$0xff] }
 0x3ad   :  { %2988 = vmatpush1.bf16.msra.mxu0 %v4936_v40  ;;  %3020 = vmatpush1.bf16.msra.mxu1 %v4937_v63  ;;  %v1326_v40 = vld [vmem:[#allocation2 + $0x88] sm:$0xff] }
 0x3ae   :  { %2990 = vmatprep.subr.bf16.mxu0 %v4938_v58  ;;  %3022 = vmatprep.subr.bf16.mxu1 %v4939_v20 }
 0x3b1   :  { %2992 = vmatpush1.bf16.msra.mxu0 %v4940_v34  ;;  %3024 = vmatpush1.bf16.msra.mxu1 %v4941_v21  ;;  %v1327_v21 = vld [vmem:[#allocation2 + $0x90] sm:$0xff] }
 0x3b2   :  { %2994 = vmatprep.subr.bf16.mxu0 %v4942_v32  ;;  %3026 = vmatprep.subr.bf16.mxu1 %v4943_v30 }
 0x3b5   :  { %2996 = vmatpush1.bf16.msra.mxu0 %v4944_v22  ;;  %3028 = vmatpush1.bf16.msra.mxu1 %v4945_v43  ;;  %v1328_v22 = vld [vmem:[#allocation2 + $0x98] sm:$0xff] }
 0x3b6   :  { %3030 = vmatprep.subr.bf16.mxu0 %v4946_v4  ;;  %3094 = vmatprep.subr.bf16.mxu1 %v4947_v17 }
 0x428   :  { %v1395_v63 = vpop.f32.mrb[12].mxu0  ;;  %v1466_v58 = vpop.f32.mrb[12].mxu1 }
 0x429   :  { %v1471_v20 = vadd.f32 %v1395_v63, %v1325_v62  ;;  %v1397_v34 = vpop.f32.mrb[13].mxu0  ;;  %v1468_v54 = vpop.f32.mrb[13].mxu1  ;;  %v1473_v30 = vadd.f32 %v1466_v58, %v1327_v21 }
 0x42a   :  { %v1472_v55 = vadd.f32 %v1397_v34, %v1326_v40  ;;  %v1474_v43 = vadd.f32 %v1468_v54, %v1328_v22  ;;  %v4958_v22 = vld [vmem:[#allocation101_spill] sm:$0xff] }
 0x42b   :  { %v1475_v32 = vmul.f32 0.5, %v1471_v20 }
 0x42c   :  { %v1476_v31 = vmul.f32 0.5, %v1472_v55  ;;  %v1478_v4 = vmul.f32 0.5, %v1474_v43 }
 0x42d   :  { %3363 = vtanh.f32 %v1475_v32 }
 0x42e   :  { %3365 = vtanh.f32 %v1476_v31 }
 0x42f   :  { %3367 = vtanh.f32 %v1473_v30  ;;  %v4957_v30 = vld [vmem:[#allocation68_spill] sm:$0xff] }
 0x430   :  { %3369 = vtanh.f32 %v1478_v4  ;;  %v4955_v4 = vld [vmem:[#allocation66_spill] sm:$0xff] }
 0x437   :  { %v3364_v47 = vpop.eup %3363 }
 0x438   :  { %v3366_v17 = vpop.eup %3365  ;;  %v1483_v27 = vmul.f32 0.5, %v3364_v47  ;;  %v4953_v47 = vld [vmem:[#allocation64_spill] sm:$0xff] }
 0x439   :  { %v1484_v38 = vmul.f32 0.5, %v3366_v17  ;;  %v3368_v62 = vpop.eup %3367  ;;  %v4956_v17 = vld [vmem:[#allocation67_spill] sm:$0xff] }
 0x43a   :  { %v1487_v23 = vadd.f32 0.5, %v1483_v27  ;;  %v3370_v31 = vpop.eup %3369  ;;  %v4952_v27 = vld [vmem:[#allocation63_spill] sm:$0xff] }
 0x43b   :  { %v1488_v63 = vadd.f32 0.5, %v1484_v38  ;;  %v1486_v55 = vmul.f32 0.5, %v3370_v31  ;;  %v4949_v38 = vld [vmem:[#allocation60_spill] sm:$0xff]  ;;  %v4960_v31 = vld [vmem:[#allocation102_spill] sm:$0xff] }
 0x43c   :  { %v1492_v61 = vmul.f32 %v3368_v62, %v1487_v23  ;;  %v4951_v23 = vld [vmem:[#allocation62_spill] sm:$0xff] }
 0x43d   :  { %v1491_v40 = vmul.f32 %v1488_v63, %v4203_v39  ;;  %v1490_v58 = vadd.f32 0.5, %v1486_v55  ;;  %v4954_v39 = vld [vmem:[#allocation65_spill] sm:$0xff] }
 0x43f   :  { %v4319_v20 = vadd.f32 %v1492_v61, %v1491_v40  ;;  %v4950_v61 = vld [vmem:[#allocation61_spill] sm:$0xff]  ;;  %v4959_v40 = vld [vmem:[#allocation70_spill] sm:$0xff] }
 0x441   :  { %4948 = vst [vmem:[#allocation84_spill] sm:$0xff] %v4319_v20  ;;  %3371 = vtanh.f32 %v4319_v20 }
 0x44b   :  { %v3372_v54 = vpop.eup %3371 }
 0x44c   :  { %v4322_v34 = vmul.f32 %v3372_v54, %v1490_v58 }
 0x44e   :  { %1729 = vmatmul.mubr.f32.vlgmr.msra.gmra.mrb[16].mxu0 %v4322_v34  ;;  %1800 = vmatmul.mubr.f32.vlgmr.msra.gmra.mrb[16].mxu1 %v4322_v34 }
 0x44f   :  { %3032 = vmatpush1.bf16.msra.mxu0 %v3730_v37  ;;  %3096 = vmatpush1.bf16.msra.mxu1 %v3732_v42 }
 0x450   :  { %3034 = vmatprep.subr.bf16.mxu0 %v3736_v45  ;;  %3098 = vmatprep.subr.bf16.mxu1 %v3738_v49 }
 0x453   :  { %3036 = vmatpush1.bf16.msra.mxu0 %v3743_v3  ;;  %3100 = vmatpush1.bf16.msra.mxu1 %v3746_v13 }
 0x454   :  { %3038 = vmatprep.subr.bf16.mxu0 %v3749_v14  ;;  %3102 = vmatprep.subr.bf16.mxu1 %v4828_v36 }
 0x457   :  { %3040 = vmatpush1.bf16.msra.mxu0 %v4829_v44  ;;  %3104 = vmatpush1.bf16.msra.mxu1 %v4830_v46 }
 0x458   :  { %3042 = vmatprep.subr.bf16.mxu0 %v4831_v48  ;;  %3106 = vmatprep.subr.bf16.mxu1 %v4832_v57 }
 0x45b   :  { %3044 = vmatpush1.bf16.msra.mxu0 %v4833_v11  ;;  %3108 = vmatpush1.bf16.msra.mxu1 %v4834_v12 }
 0x45c   :  { %3046 = vmatprep.subr.bf16.mxu0 %v4888_v8  ;;  %3110 = vmatprep.subr.bf16.mxu1 %v4889_v9 }
 0x45f   :  { %3048 = vmatpush1.bf16.msra.mxu0 %v4890_v18  ;;  %3112 = vmatpush1.bf16.msra.mxu1 %v4891_v26 }
 0x460   :  { %3050 = vmatprep.subr.bf16.mxu0 %v4892_v28  ;;  %3114 = vmatprep.subr.bf16.mxu1 %v4893_v7 }
 0x463   :  { %3052 = vmatpush1.bf16.msra.mxu0 %v4949_v38  ;;  %3116 = vmatpush1.bf16.msra.mxu1 %v4950_v61 }
 0x464   :  { %3054 = vmatprep.subr.bf16.mxu0 %v4951_v23  ;;  %3118 = vmatprep.subr.bf16.mxu1 %v4952_v27 }
 0x467   :  { %3056 = vmatpush1.bf16.msra.mxu0 %v4953_v47  ;;  %3120 = vmatpush1.bf16.msra.mxu1 %v4954_v39 }
 0x468   :  { %3058 = vmatprep.subr.bf16.mxu0 %v4955_v4  ;;  %3122 = vmatprep.subr.bf16.mxu1 %v4956_v17 }
 0x46b   :  { %v1562_v21 = vpop.f32.mrb[14].mxu0  ;;  %v1633_v32 = vpop.f32.mrb[14].mxu1  ;;  %3060 = vmatpush1.bf16.msra.mxu0 %v4957_v30  ;;  %3124 = vmatpush1.bf16.msra.mxu1 %v4903_v2 }
 0x46c   :  { %v1563_v43 = vadd.f32 %v1562_v21, %v4958_v22  ;;  %v1564_v62 = vpop.f32.mrb[15].mxu0  ;;  %v1635_v63 = vpop.f32.mrb[15].mxu1  ;;  %3062 = vmatprep.subr.bf16.mxu0 %v4959_v40  ;;  %3126 = vmatprep.subr.bf16.mxu1 %v4850_v41  ;;  %v1634_v20 = vadd.f32 %v1633_v32, %v4851_v10  ;;  %v4961_v21 = vld [vmem:[#allocation104_spill] sm:$0xff]  ;;  %v4965_v10 = vld [vmem:[#allocation82_spill] sm:$0xff] }
 0x46d   :  { %v1565_v55 = vadd.f32 %v1564_v62, %v4960_v31  ;;  %v4962_v62 = vld [vmem:[#allocation78_spill] sm:$0xff] }
 0x46e   :  { %v1638_v58 = vmul.f32 0.5, %v1563_v43  ;;  %v1636_v43 = vadd.f32 %v1635_v63, %v4961_v21 }
 0x46f   :  { %v1639_v54 = vmul.f32 0.5, %v1565_v55  ;;  %3064 = vmatpush1.bf16.msra.mxu0 %v4906_v59  ;;  %3128 = vmatpush1.bf16.msra.mxu1 %v4907_v51  ;;  %v4963_v55 = vld [vmem:[#allocation80_spill] sm:$0xff] }
 0x470   :  { %3373 = vtanh.f32 %v1638_v58  ;;  %3066 = vmatprep.subr.bf16.mxu0 %v4908_v16  ;;  %3130 = vmatprep.subr.bf16.mxu1 %v4909_v29  ;;  %v4964_v58 = vld [vmem:[#allocation81_spill] sm:$0xff]  ;;  %v1641_v32 = vmul.f32 0.5, %v1636_v43 }
 0x471   :  { %3375 = vtanh.f32 %v1639_v54 }
 0x472   :  { %3377 = vtanh.f32 %v1634_v20 }
 0x473   :  { %3068 = vmatpush1.bf16.msra.mxu0 %v4911_v52  ;;  %3132 = vmatpush1.bf16.msra.mxu1 %v4858_v60  ;;  %3379 = vtanh.f32 %v1641_v32 }
 0x474   :  { %3070 = vmatprep.subr.bf16.mxu0 %v4962_v62  ;;  %3134 = vmatprep.subr.bf16.mxu1 %v4912_v5 }
 0x477   :  { %3072 = vmatpush1.bf16.msra.mxu0 %v4963_v55  ;;  %3136 = vmatpush1.bf16.msra.mxu1 %v4964_v58 }
 0x478   :  { %3074 = vmatprep.subr.bf16.mxu0 %v4965_v10  ;;  %3138 = vmatprep.subr.bf16.mxu1 %v4864_v0 }
 0x47a   :  { %v3374_v54 = vpop.eup %3373 }
 0x47b   :  { %v3376_v31 = vpop.eup %3375  ;;  %v1646_v22 = vmul.f32 0.5, %v3374_v54  ;;  %3076 = vmatpush1.bf16.msra.mxu0 %v4810_v50  ;;  %3140 = vmatpush1.bf16.msra.mxu1 %v4811_v33 }
 0x47c   :  { %v1647_v20 = vmul.f32 0.5, %v3376_v31  ;;  %3078 = vmatprep.subr.bf16.mxu0 %v4812_v19  ;;  %3142 = vmatprep.subr.bf16.mxu1 %v4813_v53  ;;  %v3378_v21 = vpop.eup %3377 }
 0x47d   :  { %v1650_v63 = vadd.f32 0.5, %v1646_v22  ;;  %v4967_v22 = vld [vmem:[#allocation93_spill] sm:$0xff]  ;;  %v3380_v32 = vpop.eup %3379 }
 0x47e   :  { %v1651_v43 = vadd.f32 0.5, %v1647_v20  ;;  %v4969_v20 = vld [vmem:[#allocation95_spill] sm:$0xff] }
 0x47f   :  { %v1655_v58 = vmul.f32 %v3378_v21, %v1650_v63  ;;  %3080 = vmatpush1.bf16.msra.mxu0 %v4814_v1  ;;  %3144 = vmatpush1.bf16.msra.mxu1 %v4815_v56  ;;  %v4968_v21 = vld [vmem:[#allocation94_spill] sm:$0xff]  ;;  %v4971_v63 = vld [vmem:[#allocation97_spill] sm:$0xff] }
 0x480   :  { %v1654_v54 = vmul.f32 %v1651_v43, %v4267_v25  ;;  %3082 = vmatprep.subr.bf16.mxu0 %v3883_v24  ;;  %3146 = vmatprep.subr.bf16.mxu1 %v4816_v35  ;;  %v4970_v25 = vld [vmem:[#allocation96_spill] sm:$0xff]  ;;  %v4972_v43 = vld [vmem:[#allocation98_spill] sm:$0xff] }
 0x482   :  { %v4383_v31 = vadd.f32 %v1655_v58, %v1654_v54  ;;  %v1649_v58 = vmul.f32 0.5, %v3380_v32  ;;  %v4973_v54 = vld [vmem:[#allocation99_spill] sm:$0xff] }
 0x483   :  { %3084 = vmatpush1.bf16.msra.mxu0 %v3889_v6  ;;  %3148 = vmatpush1.bf16.msra.mxu1 %v3892_v15  ;;  %v4974_v6 = vld [vmem:[#allocation100_spill] sm:$0xff] }
 0x484   :  { %4966 = vst [vmem:[#allocation85_spill] sm:$0xff] %v4383_v31  ;;  %3381 = vtanh.f32 %v4383_v31  ;;  %3086 = vmatprep.subr.bf16.mxu0 %v4967_v22  ;;  %3150 = vmatprep.subr.bf16.mxu1 %v4968_v21  ;;  %v4975_v15 = vld [vmem:[#allocation44_spill] sm:$0xff]  ;;  %v4976_v31 = vld [vmem:[#allocation46_spill] sm:$0xff]  ;;  %v1653_v22 = vadd.f32 0.5, %v1649_v58 }
 0x487   :  { %3088 = vmatpush1.bf16.msra.mxu0 %v4969_v20  ;;  %3152 = vmatpush1.bf16.msra.mxu1 %v4970_v25 }
 0x488   :  { %3090 = vmatprep.subr.bf16.mxu0 %v4971_v63  ;;  %3154 = vmatprep.subr.bf16.mxu1 %v4972_v43 }
 0x48b   :  { %3092 = vmatpush1.bf16.msra.mxu0 %v4973_v54  ;;  %3156 = vmatpush1.bf16.msra.mxu1 %v4974_v6 }
 0x48c   :  { %3158 = vmatprep.subr.bf16.mxu0 %v4975_v15  ;;  %3222 = vmatprep.subr.bf16.mxu1 %v4976_v31 }
 0x48e   :  { %v3382_v21 = vpop.eup %3381 }
 0x48f   :  { %v1658_v35 = vmul.f32 %v3382_v21, %v1653_v22 }
 0x491   :  { %1895 = vmatprep.mubr.f32.mxu0 %v1658_v35  ;;  %1966 = vmatprep.mubr.f32.mxu1 %v1658_v35 }
 0x492   :  { %1896 = vmatmul.mubr.f32.vlgmr.msra.gmra.mrb[18].mxu0 %v4322_v34  ;;  %1967 = vmatmul.mubr.f32.vlgmr.msra.gmra.mrb[18].mxu1 %v4322_v34 }
 0x493   :  { %3160 = vmatpush1.bf16.msra.mxu0 %v3730_v37  ;;  %3224 = vmatpush1.bf16.msra.mxu1 %v3732_v42  ;;  %v4977_v37 = vld [vmem:[#allocation81_spill] sm:$0xff]  ;;  %v4978_v42 = vld [vmem:[#allocation90_spill] sm:$0xff] }
 0x494   :  { %3162 = vmatprep.subr.bf16.mxu0 %v3736_v45  ;;  %3226 = vmatprep.subr.bf16.mxu1 %v3738_v49  ;;  %v4979_v45 = vld [vmem:[#allocation91_spill] sm:$0xff]  ;;  %v4980_v49 = vld [vmem:[#allocation92_spill] sm:$0xff] }
 0x497   :  { %3164 = vmatpush1.bf16.msra.mxu0 %v3743_v3  ;;  %3228 = vmatpush1.bf16.msra.mxu1 %v3746_v13  ;;  %v4981_v3 = vld [vmem:[#allocation93_spill] sm:$0xff]  ;;  %v4982_v13 = vld [vmem:[#allocation94_spill] sm:$0xff] }
 0x498   :  { %3166 = vmatprep.subr.bf16.mxu0 %v3749_v14  ;;  %3230 = vmatprep.subr.bf16.mxu1 %v4828_v36  ;;  %v1660_v14 = vld [vmem:[#allocation2 + $0xa0] sm:$0xff] }
 0x49b   :  { %3168 = vmatpush1.bf16.msra.mxu0 %v4829_v44  ;;  %3232 = vmatpush1.bf16.msra.mxu1 %v4830_v46  ;;  %v1663_v44 = vld [vmem:[#allocation2 + $0xb8] sm:$0xff] }
 0x49c   :  { %3170 = vmatprep.subr.bf16.mxu0 %v4831_v48  ;;  %3234 = vmatprep.subr.bf16.mxu1 %v4832_v57 }
 0x49f   :  { %3172 = vmatpush1.bf16.msra.mxu0 %v4833_v11  ;;  %3236 = vmatpush1.bf16.msra.mxu1 %v4834_v12 }
 0x4a0   :  { %3174 = vmatprep.subr.bf16.mxu0 %v4888_v8  ;;  %3238 = vmatprep.subr.bf16.mxu1 %v4889_v9  ;;  %v4983_v8 = vld [vmem:[#allocation84_spill] sm:$0xff] }
 0x4a3   :  { %3176 = vmatpush1.bf16.msra.mxu0 %v4890_v18  ;;  %3240 = vmatpush1.bf16.msra.mxu1 %v4891_v26 }
 0x4a4   :  { %3178 = vmatprep.subr.bf16.mxu0 %v4892_v28  ;;  %3242 = vmatprep.subr.bf16.mxu1 %v4893_v7 }
 0x4a7   :  { %3180 = vmatpush1.bf16.msra.mxu0 %v4949_v38  ;;  %3244 = vmatpush1.bf16.msra.mxu1 %v4950_v61  ;;  %v4985_v61 = vld [vmem:[#allocation102_spill] sm:$0xff] }
 0x4a8   :  { %3182 = vmatprep.subr.bf16.mxu0 %v4951_v23  ;;  %3246 = vmatprep.subr.bf16.mxu1 %v4952_v27 }
 0x4ab   :  { %3184 = vmatpush1.bf16.msra.mxu0 %v4953_v47  ;;  %3248 = vmatpush1.bf16.msra.mxu1 %v4954_v39  ;;  %v4986_v39 = vld [vmem:[#allocation103_spill] sm:$0xff] }
 0x4ac   :  { %3186 = vmatprep.subr.bf16.mxu0 %v4955_v4  ;;  %3250 = vmatprep.subr.bf16.mxu1 %v4956_v17  ;;  %v4987_v17 = vld [vmem:[#allocation104_spill] sm:$0xff] }
 0x4af   :  { %3188 = vmatpush1.bf16.msra.mxu0 %v4957_v30  ;;  %3252 = vmatpush1.bf16.msra.mxu1 %v4903_v2 }
 0x4b0   :  { %3190 = vmatprep.subr.bf16.mxu0 %v4959_v40  ;;  %3254 = vmatprep.subr.bf16.mxu1 %v4850_v41 }
 0x4b3   :  { %3192 = vmatpush1.bf16.msra.mxu0 %v4906_v59  ;;  %3256 = vmatpush1.bf16.msra.mxu1 %v4907_v51  ;;  %v4984_v51 = vld [vmem:[#allocation101_spill] sm:$0xff] }
 0x4b4   :  { %3194 = vmatprep.subr.bf16.mxu0 %v4908_v16  ;;  %3258 = vmatprep.subr.bf16.mxu1 %v4909_v29 }
 0x4b7   :  { %3196 = vmatpush1.bf16.msra.mxu0 %v4911_v52  ;;  %3260 = vmatpush1.bf16.msra.mxu1 %v4858_v60 }
 0x4b8   :  { %3198 = vmatprep.subr.bf16.mxu0 %v4962_v62  ;;  %3262 = vmatprep.subr.bf16.mxu1 %v4912_v5 }
 0x4bb   :  { %3200 = vmatpush1.bf16.msra.mxu0 %v4963_v55  ;;  %3264 = vmatpush1.bf16.msra.mxu1 %v4977_v37 }
 0x4bc   :  { %3202 = vmatprep.subr.bf16.mxu0 %v4965_v10  ;;  %3266 = vmatprep.subr.bf16.mxu1 %v4864_v0 }
 0x4bf   :  { %3204 = vmatpush1.bf16.msra.mxu0 %v4810_v50  ;;  %3268 = vmatpush1.bf16.msra.mxu1 %v4811_v33 }
 0x4c0   :  { %3206 = vmatprep.subr.bf16.mxu0 %v4812_v19  ;;  %3270 = vmatprep.subr.bf16.mxu1 %v4813_v53 }
 0x4c3   :  { %3208 = vmatpush1.bf16.msra.mxu0 %v4814_v1  ;;  %3272 = vmatpush1.bf16.msra.mxu1 %v4815_v56  ;;  %v1662_v56 = vld [vmem:[#allocation2 + $0xb0] sm:$0xff] }
 0x4c4   :  { %3210 = vmatprep.subr.bf16.mxu0 %v3883_v24  ;;  %3274 = vmatprep.subr.bf16.mxu1 %v4978_v42  ;;  %v1661_v24 = vld [vmem:[#allocation2 + $0xa8] sm:$0xff] }
 0x4c7   :  { %3212 = vmatpush1.bf16.msra.mxu0 %v4979_v45  ;;  %3276 = vmatpush1.bf16.msra.mxu1 %v4980_v49 }
 0x4c8   :  { %3214 = vmatprep.subr.bf16.mxu0 %v4981_v3  ;;  %3278 = vmatprep.subr.bf16.mxu1 %v4982_v13 }
 0x4cb   :  { %3216 = vmatpush1.bf16.msra.mxu0 %v4969_v20  ;;  %3280 = vmatpush1.bf16.msra.mxu1 %v4970_v25 }
 0x4cc   :  { %3218 = vmatprep.subr.bf16.mxu0 %v4971_v63  ;;  %3282 = vmatprep.subr.bf16.mxu1 %v4972_v43  ;;  %v4988_v63 = vld [vmem:[#allocation85_spill] sm:$0xff] }
 0x4cf   :  { %3220 = vmatpush1.bf16.msra.mxu0 %v4973_v54  ;;  %3284 = vmatpush1.bf16.msra.mxu1 %v4974_v6 }
 0x521   :  { %v1730_v15 = vpop.f32.mrb[16].mxu0  ;;  %v1801_v19 = vpop.f32.mrb[16].mxu1 }
 0x522   :  { %v1806_v29 = vadd.f32 %v1730_v15, %v1660_v14  ;;  %v1732_v50 = vpop.f32.mrb[17].mxu0  ;;  %v1803_v1 = vpop.f32.mrb[17].mxu1  ;;  %v1808_v36 = vadd.f32 %v1801_v19, %v1662_v56 }
 0x523   :  { %v1807_v33 = vadd.f32 %v1732_v50, %v1661_v24  ;;  %v1809_v46 = vadd.f32 %v1803_v1, %v1663_v44 }
 0x524   :  { %v1810_v53 = vmul.f32 0.5, %v1806_v29 }
 0x525   :  { %v1811_v35 = vmul.f32 0.5, %v1807_v33  ;;  %v1813_v48 = vmul.f32 0.5, %v1809_v46 }
 0x526   :  { %3383 = vtanh.f32 %v1810_v53 }
 0x527   :  { %3385 = vtanh.f32 %v1811_v35 }
 0x528   :  { %3387 = vtanh.f32 %v1808_v36 }
 0x529   :  { %3389 = vtanh.f32 %v1813_v48 }
 0x530   :  { %v3384_v57 = vpop.eup %3383 }
 0x531   :  { %v3386_v6 = vpop.eup %3385  ;;  %v1818_v11 = vmul.f32 0.5, %v3384_v57 }
 0x532   :  { %v1819_v12 = vmul.f32 0.5, %v3386_v6  ;;  %v3388_v60 = vpop.eup %3387 }
 0x533   :  { %v1822_v10 = vadd.f32 0.5, %v1818_v11  ;;  %v3390_v26 = vpop.eup %3389 }
 0x534   :  { %v1823_v41 = vadd.f32 0.5, %v1819_v12  ;;  %v1821_v28 = vmul.f32 0.5, %v3390_v26 }
 0x535   :  { %v1827_v0 = vmul.f32 %v3388_v60, %v1822_v10 }
 0x536   :  { %v1826_v9 = vmul.f32 %v1823_v41, %v4983_v8  ;;  %v1825_v7 = vadd.f32 0.5, %v1821_v28 }
 0x538   :  { %v1828_v18 = vadd.f32 %v1827_v0, %v1826_v9 }
 0x53a   :  { %3391 = vtanh.f32 %v1828_v18  ;;  %2160 = vst [vmem:[#allocation9] sm:$0xff] %v1828_v18 }
 0x544   :  { %v3392_v52 = vpop.eup %3391 }
 0x545   :  { %v1830_v2 = vmul.f32 %v3392_v52, %v1825_v7 }
 0x547   :  { %2157 = vst [vmem:[#allocation8] sm:$0xff] %v1830_v2 }
 0x565   :  { %v1897_v59 = vpop.f32.mrb[18].mxu0  ;;  %v1968_v16 = vpop.f32.mrb[18].mxu1 }
 0x566   :  { %v1898_v5 = vadd.f32 %v1897_v59, %v4984_v51  ;;  %v1899_v34 = vpop.f32.mrb[19].mxu0  ;;  %v1970_v38 = vpop.f32.mrb[19].mxu1  ;;  %v1969_v4 = vadd.f32 %v1968_v16, %v4986_v39 }
 0x567   :  { %v1900_v23 = vadd.f32 %v1899_v34, %v4985_v61  ;;  %v1971_v30 = vadd.f32 %v1970_v38, %v4987_v17 }
 0x568   :  { %v1973_v27 = vmul.f32 0.5, %v1898_v5 }
 0x569   :  { %v1974_v47 = vmul.f32 0.5, %v1900_v23  ;;  %v1976_v40 = vmul.f32 0.5, %v1971_v30 }
 0x56a   :  { %3393 = vtanh.f32 %v1973_v27 }
 0x56b   :  { %3395 = vtanh.f32 %v1974_v47 }
 0x56c   :  { %3397 = vtanh.f32 %v1969_v4 }
 0x56d   :  { %3399 = vtanh.f32 %v1976_v40 }
 0x574   :  { %v3394_v62 = vpop.eup %3393 }
 0x575   :  { %v3396_v55 = vpop.eup %3395  ;;  %v1981_v31 = vmul.f32 0.5, %v3394_v62 }
 0x576   :  { %v1982_v22 = vmul.f32 0.5, %v3396_v55  ;;  %v3398_v32 = vpop.eup %3397 }
 0x577   :  { %v1985_v21 = vadd.f32 0.5, %v1981_v31  ;;  %v3400_v54 = vpop.eup %3399 }
 0x578   :  { %v1986_v20 = vadd.f32 0.5, %v1982_v22  ;;  %v1984_v37 = vmul.f32 0.5, %v3400_v54 }
 0x579   :  { %v1990_v25 = vmul.f32 %v3398_v32, %v1985_v21 }
 0x57a   :  { %v1989_v43 = vmul.f32 %v1986_v20, %v4988_v63  ;;  %v1988_v42 = vadd.f32 0.5, %v1984_v37 }
 0x57c   :  { %v1991_v58 = vadd.f32 %v1990_v25, %v1989_v43 }
 0x57e   :  { %3401 = vtanh.f32 %v1991_v58 }
 0x588   :  { %v3402_v45 = vpop.eup %3401 }
 0x589   :  { %v1993_v49 = vmul.f32 %v3402_v45, %v1988_v42 }
 0x58b   :  { %2058 = vmatprep.mubr.f32.mxu0 %v1993_v49  ;;  %2129 = vmatprep.mubr.f32.mxu1 %v1993_v49 }
 0x58c   :  { %2059 = vmatmul.mubr.f32.vlgmr.msra.gmra.mrb[20].mxu0 %v1830_v2  ;;  %2130 = vmatmul.mubr.f32.vlgmr.msra.gmra.mrb[20].mxu1 %v1830_v2 }
 0x65f   :  { %v2060_v3 = vpop.f32.mrb[20].mxu0  ;;  %v2131_v13 = vpop.f32.mrb[20].mxu1 }
 0x660   :  { %v2061_v14 = vadd.f32 %v2060_v3, %v4984_v51  ;;  %v2062_v24 = vpop.f32.mrb[21].mxu0  ;;  %v2133_v15 = vpop.f32.mrb[21].mxu1  ;;  %v2132_v1 = vadd.f32 %v2131_v13, %v4986_v39 }
 0x661   :  { %v2063_v19 = vadd.f32 %v2062_v24, %v4985_v61  ;;  %v2134_v56 = vadd.f32 %v2133_v15, %v4987_v17 }
 0x662   :  { %v2136_v29 = vmul.f32 0.5, %v2061_v14 }
 0x663   :  { %v2137_v50 = vmul.f32 0.5, %v2063_v19  ;;  %v2139_v33 = vmul.f32 0.5, %v2134_v56 }
 0x664   :  { %3403 = vtanh.f32 %v2136_v29 }
 0x665   :  { %3405 = vtanh.f32 %v2137_v50 }
 0x666   :  { %3407 = vtanh.f32 %v2132_v1 }
 0x667   :  { %3409 = vtanh.f32 %v2139_v33 }
 0x66e   :  { %v3404_v53 = vpop.eup %3403 }
 0x66f   :  { %v3406_v35 = vpop.eup %3405  ;;  %v2144_v36 = vmul.f32 0.5, %v3404_v53 }
 0x670   :  { %v2145_v44 = vmul.f32 0.5, %v3406_v35  ;;  %v3408_v48 = vpop.eup %3407 }
 0x671   :  { %v2148_v46 = vadd.f32 0.5, %v2144_v36 }
 0x672   :  { %v2149_v57 = vadd.f32 0.5, %v2145_v44 }
 0x673   :  { %v2153_v6 = vmul.f32 %v3408_v48, %v2148_v46 }
 0x674   :  { %v2152_v11 = vmul.f32 %v2149_v57, %v1991_v58 }
 0x676   :  { %v2154_v12 = vadd.f32 %v2153_v6, %v2152_v11 }
 0x678   :  { %3411 = vtanh.f32 %v2154_v12  ;;  %2162 = vst [vmem:[#allocation9 + $0x8] sm:$0xff] %v2154_v12 }
 0x679   :  { %3490 = shalt.err (!%p3487_p0)
}
 0x67a   :  { %s3491_s9 = scalar_lea.hbm %s4501_s5, 256 }
 0x67b   :  { %p3492_p1 = scmp.ne.s32.totalorder %s4501_s5, %s3491_s9  ;;  %p3495_p2 = scmp.lt.u32.totalorder %s3491_s9, %s4501_s5 }
 0x67d   :  { %p3497_p3 = pnand %p3495_p2, %p3492_p1 }
 0x67f   :  { %3500 = shalt.err (!%p3497_p3)
}
 0x680   :  { %s3538_s14 = smov 128   ;;  %s3539_s15 = smov 8   ;;  %v3410_v10 = vpop.eup %3409 }
 0x681   :  { %2186 = dma.vmem_to_hbm [thread:$0]  %s2181_s30, 256, %s4501_s5, [#allocation10], %s3538_s14, %s3538_s14, %s3539_s15   ;;  %v2147_v60 = vmul.f32 0.5, %v3410_v10 }
 0x682   :  { %s3540_s17 = smov [#allocation8]   ;;  %v3412_v0 = vpop.eup %3411 }
 0x683   :  { %s2168_s18 = sshll.u32 %s3540_s17, 4  ;;  %v2151_v41 = vadd.f32 0.5, %v2147_v60  ;;  %s2169_s18 = int_to_ptr.vmem [resolvable:$true] %s2168_s18 }
 0x684   :  { %s3501_s19 = scalar_lea.vmem %s2169_s18, 256  ;;  %p3506_p5 = scmp.lt.s32.totalorder %s2169_s18, %s2169_s18 }
 0x685   :  { %v2156_v8 = vmul.f32 %v3412_v0, %v2151_v41  ;;  %p3502_p4 = scmp.ne.s32.totalorder %s2169_s18, %s3501_s19  ;;  %p3507_p6 = scmp.lt.s32.totalorder %s3501_s19, %s3501_s19 }
 0x687   :  { %2159 = vst [vmem:[#allocation8 + $0x8] sm:$0xff] %v2156_v8  ;;  %p3508_p7 = por %p3507_p6, %p3506_p5 }
 0x689   :  { %p3509_p8 = pnand %p3508_p7, %p3502_p4 }
 0x68b   :  { %3512 = shalt.err (!%p3509_p8)
}
 0x68c   :  { %s3513_s5 = scalar_lea.hbm %s4500_s4, 256 }
 0x68d   :  { %p3514_p9 = scmp.ne.s32.totalorder %s4500_s4, %s3513_s5  ;;  %p3517_p10 = scmp.lt.u32.totalorder %s3513_s5, %s4500_s4 }
 0x68f   :  { %p3519_p11 = pnand %p3517_p10, %p3514_p9 }
 0x691   :  { %3522 = shalt.err (!%p3519_p11)
}
 0x692   :  { %2174 = dma.vmem_to_hbm [thread:$0]  %s2169_s18, 256, %s4500_s4, [#allocation4], %s3538_s14, %s3538_s14, %s3539_s15  }
 0x693   :  { %3527 = dma.done.wait [#allocation4], 256  }
 0x694   :  { %3528 = vsyncadd [#allocation4], 4294967040 }
 0x695   :  { %3529 = dma.done.wait [#allocation10], 256  }
 0x696   :  { %3530 = vsyncadd [#allocation10], 4294967040 }
 0x697   :  { %2193 = vsyncpa [#allocation3], 1 }
 0x698   :  { %2194 = vsyncpa [#allocation6], 1 }
 0x699   :  { %2195 = vsyncpa [#allocation4], 1 }
 0x69a   :  { %2196 = vsyncpa [#allocation10], 1 }

</bundles_post_ra>
